<compile_context>
chip_gen: v7x
topology: tpu7x:2x2x1
jax: 0.10.0
libtpu: 0.0.40
codegen_flags: <defaults>
</compile_context>

<pallas_src>
import functools

import jax
import jax.numpy as jnp
from jax import lax
from jax.experimental import pallas as pl
from jax.experimental.pallas import tpu as pltpu

IMG_HEIGHT = 16
IMG_WIDTH = 16
ENCODING_DIM = 32
K = 3

H4, W4 = IMG_HEIGHT // 4, IMG_WIDTH // 4      # 4 x 4 coarse grid after fc
NPIX = H4 * W4                                # 16 coarse pixels
C_FC = 128                                    # channels after fc / view
C1 = 64                                       # conv1 output channels
C2 = 32                                       # upconv1 output channels
C_OUT = 3                                     # upconv2 real output channels
PHASE_PAD = 32                                # per-phase channel pad (3 -> 32)
MAX_TB = 16                                   # batch tile: M = TB*NPIX = 256

COMPUTE_DTYPE = jnp.bfloat16                  # MXU operand dtype (f32 accum)


# ----------------------------------------------------------------------------
# Fused decoder kernel (one grid step == TB images, rows ordered [pixel][image])
# ----------------------------------------------------------------------------
def _decoder_kernel(v_ref, fcw_ref, fcb_ref, w1_ref, b1_ref, w2_ref, b2_ref,
                    w3_ref, b3_ref, o_ref, *, tb):
    f32 = jnp.float32
    cdt = fcw_ref.dtype
    m = tb * NPIX
    lt = tb.bit_length() - 1                       # log2(tb); tb is a power of 2

    # Per-row coarse-grid coordinates.  Row index = p * tb + b_local.
    row = lax.broadcasted_iota(jnp.int32, (m, 1), 0)
    pidx = row >> lt                               # coarse pixel p = r*4 + c
    rr = pidx >> 2
    cc = pidx & 3

    def shifted(x, dy, dx):
        """out[row=(p,b)] = x[row of pixel (r+dy, c+dx), same image], 0 if OOB."""
        if dy == 0 and dx == 0:
            return x
        s = (dy * W4 + dx) * tb                    # row shift (sublanes)
        cols = x.shape[1]
        if s > 0:
            y = jnp.concatenate(
                [x[s:, :], jnp.zeros((s, cols), x.dtype)], axis=0)
        else:
            y = jnp.concatenate(
                [jnp.zeros((-s, cols), x.dtype), x[:m + s, :]], axis=0)
        valid = ((rr + dy >= 0) & (rr + dy < H4) &
                 (cc + dx >= 0) & (cc + dx < W4))
        return jnp.where(valid, y, 0.0)

    # ---------------- fc: (TB, E) @ (E, NPIX*128), relayout to (M, 128) ------
    h = jnp.dot(v_ref[...].astype(cdt), fcw_ref[...],
                preferred_element_type=f32) + fcb_ref[...]        # (TB, 2048)
    # lane-block p of every image -> rows [p*tb, (p+1)*tb)  (single concat)
    x0 = jnp.concatenate(
        [h[:, p * C_FC:(p + 1) * C_FC] for p in range(NPIX)], axis=0)  # (M,128)

    # ---------------- conv1: 9 shifted taps, ONE big-K matmul, ReLU ----------
    parts = [shifted(x0, dy, dx).astype(cdt)
             for dy in (-1, 0, 1) for dx in (-1, 0, 1)]
    xcat = jnp.concatenate(parts, axis=1)                         # (M, 1152)
    x1 = jnp.dot(xcat, w1_ref[...], preferred_element_type=f32) + b1_ref[...]
    x1 = jnp.maximum(x1, 0.0)                                     # (M, 64)

    # ---------------- upconv1: phase-packed ConvT(64->32), ReLU --------------
    xc1 = jnp.concatenate(
        [x1, shifted(x1, 0, 1), shifted(x1, 1, 0), shifted(x1, 1, 1)], axis=1)
    q = jnp.dot(xc1.astype(cdt), w2_ref[...],
                preferred_element_type=f32) + b2_ref[...]
    q = jnp.maximum(q, 0.0)                    # (M, 128) = [q00 | q01 | q10 | q11]
    q00, q01 = q[:, 0:C2], q[:, C2:2 * C2]
    q10, q11 = q[:, 2 * C2:3 * C2], q[:, 3 * C2:4 * C2]
    cs00 = shifted(q00, 0, 1)                  # coarse column +1
    cs10 = shifted(q10, 0, 1)
    rs00 = shifted(q00, 1, 0)                  # coarse row +1
    rs01 = shifted(q01, 1, 0)
    rcs00 = shifted(q00, 1, 1)                 # row & column +1

    # ---------------- upconv2: phase-packed ConvT(32->3 pad 32), sigmoid -----
    # One matmul per fine-grid sub-pixel block (s, t); inputs are the four
    # y1 neighbours [y(I,J) | y(I,J+1) | y(I+1,J) | y(I+1,J+1)] packed in lanes.
    xin = (
        q,                                                          # (s,t)=(0,0)
        jnp.concatenate([q01, cs00, q11, cs10], axis=1),            # (0,1)
        jnp.concatenate([q10, q11, rs00, rs01], axis=1),            # (1,0)
        jnp.concatenate([q11, cs10, rs01, rcs00], axis=1),          # (1,1)
    )
    for k in range(4):
        z = jnp.dot(xin[k].astype(cdt), w3_ref[...],
                    preferred_element_type=f32) + b3_ref[...]       # (M, 128)
        y = pl.reciprocal(1.0 + jnp.exp(-z), approx=True)           # sigmoid
        o_ref[0, k, :, :] = y.astype(o_ref.dtype)


# ----------------------------------------------------------------------------
# One-time parameter preparation (all weight transforms hoisted out of forward)
# ----------------------------------------------------------------------------
def init_raw_params(key):
    """Synthetic parameters in PyTorch layouts."""
    fc_out = C_FC * H4 * W4
    ks = jax.random.split(key, 8)
    wn = lambda k, shape, fan_in: jax.random.normal(k, shape, jnp.float32) / jnp.sqrt(
        jnp.float32(fan_in))
    return {
        "fc_w": wn(ks[0], (fc_out, ENCODING_DIM), ENCODING_DIM),   # Linear (out, in)
        "fc_b": wn(ks[1], (fc_out,), ENCODING_DIM),
        "conv1_w": wn(ks[2], (C1, C_FC, K, K), C_FC * K * K),      # Conv2d (Cout,Cin,kh,kw)
        "conv1_b": wn(ks[3], (C1,), C_FC * K * K),
        "up1_w": wn(ks[4], (C1, C2, K, K), C1 * K * K),            # ConvT (Cin,Cout,kh,kw)
        "up1_b": wn(ks[5], (C2,), C1 * K * K),
        "up2_w": wn(ks[6], (C2, C_OUT, K, K), C2 * K * K),
        "up2_b": wn(ks[7], (C_OUT,), C2 * K * K),
    }


def prepare_params(raw, compute_dtype=COMPUTE_DTYPE):
    cdt = compute_dtype
    f32 = jnp.float32

    # fc: (out, in) -> (in, NPIX*128) with columns permuted to pixel-major order
    fc_w = raw["fc_w"].T.reshape(ENCODING_DIM, C_FC, H4, W4)
    fc_w = fc_w.transpose(0, 2, 3, 1).reshape(ENCODING_DIM, NPIX * C_FC)
    fc_b = raw["fc_b"].reshape(C_FC, H4, W4).transpose(1, 2, 0).reshape(1, NPIX * C_FC)

    # conv1: (Cout, Cin, kh, kw) -> big-K (9*Cin, Cout), tap-major rows
    w1 = raw["conv1_w"].transpose(2, 3, 1, 0).reshape(K * K * C_FC, C1)
    b1 = raw["conv1_b"].reshape(1, C1)

    def convT_taps(w):  # (Cin, Cout, kh, kw) -> spatially flipped (9, Cin, Cout)
        return jnp.flip(w, axis=(2, 3)).transpose(2, 3, 0, 1).reshape(
            K * K, w.shape[0], w.shape[1])

    def phase_block(t, cout_pad):
        """Block weight (4*Cin, 4*cout_pad) packing the 4 output phases into N."""
        cin, cout = t.shape[1], t.shape[2]
        pad = lambda x: jnp.pad(x, ((0, 0), (0, cout_pad - cout)))
        z = jnp.zeros((cin, cout_pad), f32)
        rows = [
            # input y(I,J)     -> phases [00, 01, 10, 11]
            jnp.concatenate([pad(t[4]), pad(t[3]), pad(t[1]), pad(t[0])], axis=1),
            # input y(I,J+1)
            jnp.concatenate([z,         pad(t[5]), z,         pad(t[2])], axis=1),
            # input y(I+1,J)
            jnp.concatenate([z,         z,         pad(t[7]), pad(t[6])], axis=1),
            # input y(I+1,J+1)
            jnp.concatenate([z,         z,         z,         pad(t[8])], axis=1),
        ]
        return jnp.concatenate(rows, axis=0)

    w2 = phase_block(convT_taps(raw["up1_w"]), C2)                 # (256, 128)
    b2 = jnp.tile(raw["up1_b"].reshape(1, C2), (1, 4))             # (1, 128)
    w3 = phase_block(convT_taps(raw["up2_w"]), PHASE_PAD)          # (128, 128)
    b3 = jnp.tile(jnp.pad(raw["up2_b"], (0, PHASE_PAD - C_OUT)).reshape(1, PHASE_PAD),
                  (1, 4))                                          # (1, 128)

    return {
        "fc_w": fc_w.astype(cdt), "fc_b": fc_b.astype(f32),        # biases stay f32
        "w1": w1.astype(cdt), "b1": b1.astype(f32),
        "w2": w2.astype(cdt), "b2": b2.astype(f32),
        "w3": w3.astype(cdt), "b3": b3.astype(f32),
    }


# ----------------------------------------------------------------------------
# Forward pass (single fused pallas_call, grid over batch tiles)
# ----------------------------------------------------------------------------
def _const_spec(a):
    nd = a.ndim
    return pl.BlockSpec(a.shape, lambda i, _nd=nd: (0,) * _nd)


def decoder_forward(v, params):
    B = v.shape[0]
    tb = 1
    while tb < B and tb < MAX_TB:
        tb *= 2
    bp = ((B + tb - 1) // tb) * tb
    if bp != B:
        v = jnp.pad(v, ((0, bp - B), (0, 0)))
    g = bp // tb
    m = tb * NPIX
    n_out = 4 * PHASE_PAD

    kernel = functools.partial(_decoder_kernel, tb=tb)
    out5 = pl.pallas_call(
        kernel,
        out_shape=jax.ShapeDtypeStruct((g, 4, m, n_out), jnp.bfloat16),
        grid=(g,),
        in_specs=[
            pl.BlockSpec((tb, ENCODING_DIM), lambda i: (i, 0)),
            _const_spec(params["fc_w"]), _const_spec(params["fc_b"]),
            _const_spec(params["w1"]), _const_spec(params["b1"]),
            _const_spec(params["w2"]), _const_spec(params["b2"]),
            _const_spec(params["w3"]), _const_spec(params["b3"]),
        ],
        out_specs=pl.BlockSpec((1, 4, m, n_out), lambda i: (i, 0, 0, 0)),
        compiler_params=pltpu.CompilerParams(
            dimension_semantics=("parallel",)),
    )(v, params["fc_w"], params["fc_b"], params["w1"], params["b1"],
      params["w2"], params["b2"], params["w3"], params["b3"])

    # Host-side un-shuffle (free reshapes/transposes):
    #   out5[g, s*2+t, p*tb + bl, (u*2+v)*32 + ch]
    #     -> image g*tb+bl, channel ch, pixel (4a + 2s + u, 4b + 2t + v), p=a*4+b
    out = out5.astype(jnp.float32)
    out = out.reshape(g, 2, 2, H4, W4, tb, 2, 2, PHASE_PAD)   # [g,s,t,a,b,bl,u,v,ch]
    out = jnp.transpose(out, (0, 5, 8, 3, 1, 6, 4, 2, 7))     # [g,bl,ch,a,s,u,b,t,v]
    out = out.reshape(bp, PHASE_PAD, IMG_HEIGHT, IMG_WIDTH)
    return out[:B, :C_OUT]                                    # (B, 3, 16, 16)


# ----------------------------------------------------------------------------
# Pure-JAX (f32) reference used only for the self-check
# ----------------------------------------------------------------------------
def decoder_reference(v, raw):
    B = v.shape[0]
    dn = ("NCHW", "OIHW", "NCHW")
    x = (v @ raw["fc_w"].T + raw["fc_b"]).reshape(B, C_FC, H4, W4)
    x = jax.lax.conv_general_dilated(x, raw["conv1_w"], (1, 1), ((1, 1), (1, 1)),
                                     dimension_numbers=dn)
    x = jnp.maximum(x + raw["conv1_b"].reshape(1, -1, 1, 1), 0.0)

    def convT(x, w, b):  # ConvTranspose2d(k=3, s=2, p=1, output_padding=1)
        w_oihw = jnp.flip(w, axis=(2, 3)).transpose(1, 0, 2, 3)
        y = jax.lax.conv_general_dilated(x, w_oihw, (1, 1), ((1, 2), (1, 2)),
                                         lhs_dilation=(2, 2), dimension_numbers=dn)
        return y + b.reshape(1, -1, 1, 1)

    x = jnp.maximum(convT(x, raw["up1_w"], raw["up1_b"]), 0.0)
    return jax.nn.sigmoid(convT(x, raw["up2_w"], raw["up2_b"]))


if __name__ == "__main__":
    k_v, k_p = jax.random.split(jax.random.PRNGKey(0))
    B = 2
    v = jax.random.normal(k_v, (B, ENCODING_DIM), dtype=jnp.float32)

    raw = init_raw_params(k_p)
    params = prepare_params(raw)

    fwd = jax.jit(decoder_forward)
    out = jax.block_until_ready(fwd(v, params))

    assert out.shape == (B, C_OUT, IMG_HEIGHT, IMG_WIDTH), out.shape
    assert bool(jnp.all(jnp.isfinite(out)))
    assert bool(jnp.all((out >= 0.0) & (out <= 1.0)))          # sigmoid range

    ref = decoder_reference(v, raw)
    err = float(jnp.max(jnp.abs(out - ref)))
    assert err < 5e-2, f"mismatch vs reference: max abs err = {err}"

    print("KERNEL_OK")
</pallas_src>

<mosaic_0001>
module attributes {stable_mosaic.version = 11 : i64} {
  func.func @_decoder_kernel(%arg0: i32, %arg1: memref<2x32xf32, #tpu.memory_space<vmem>>, %arg2: memref<32x2048xbf16, #tpu.memory_space<vmem>>, %arg3: memref<1x2048xf32, #tpu.memory_space<vmem>>, %arg4: memref<1152x64xbf16, #tpu.memory_space<vmem>>, %arg5: memref<1x64xf32, #tpu.memory_space<vmem>>, %arg6: memref<256x128xbf16, #tpu.memory_space<vmem>>, %arg7: memref<1x128xf32, #tpu.memory_space<vmem>>, %arg8: memref<128x128xbf16, #tpu.memory_space<vmem>>, %arg9: memref<1x128xf32, #tpu.memory_space<vmem>>, %arg10: memref<1x4x32x128xbf16, #tpu.memory_space<vmem>>) attributes {dimension_semantics = [#tpu.dimension_semantics<parallel>], iteration_bounds = array<i64: 1>, scalar_prefetch = 0 : i64, scratch_operands = 0 : i64, tpu.core_type = #tpu.core_type<tc>, window_params = [{transform_indices = @transform_0, window_bounds = array<i64: 2, 32>}, {pipeline_mode = #tpu.pipeline_mode<synchronous>, transform_indices = @transform_1, window_bounds = array<i64: 32, 2048>}, {pipeline_mode = #tpu.pipeline_mode<synchronous>, transform_indices = @transform_2, window_bounds = array<i64: 1, 2048>}, {pipeline_mode = #tpu.pipeline_mode<synchronous>, transform_indices = @transform_3, window_bounds = array<i64: 1152, 64>}, {pipeline_mode = #tpu.pipeline_mode<synchronous>, transform_indices = @transform_4, window_bounds = array<i64: 1, 64>}, {pipeline_mode = #tpu.pipeline_mode<synchronous>, transform_indices = @transform_5, window_bounds = array<i64: 256, 128>}, {pipeline_mode = #tpu.pipeline_mode<synchronous>, transform_indices = @transform_6, window_bounds = array<i64: 1, 128>}, {pipeline_mode = #tpu.pipeline_mode<synchronous>, transform_indices = @transform_7, window_bounds = array<i64: 128, 128>}, {pipeline_mode = #tpu.pipeline_mode<synchronous>, transform_indices = @transform_8, window_bounds = array<i64: 1, 128>}, {transform_indices = @transform_9, window_bounds = array<i64: 1, 4, 32, 128>}]} {
    %0 = tpu.iota {dimensions = array<i32: 0>} : vector<32x1xi32>
    %c1_i32 = arith.constant 1 : i32
    %1 = vector.broadcast %c1_i32 : i32 to vector<32x1xi32>
    %2 = arith.shrsi %0, %1 : vector<32x1xi32>
    %c2_i32 = arith.constant 2 : i32
    %3 = vector.broadcast %c2_i32 : i32 to vector<32x1xi32>
    %4 = arith.shrsi %2, %3 : vector<32x1xi32>
    %c3_i32 = arith.constant 3 : i32
    %5 = vector.broadcast %c3_i32 : i32 to vector<32x1xi32>
    %6 = arith.andi %2, %5 : vector<32x1xi32>
    %c0 = arith.constant 0 : index
    %c0_0 = arith.constant 0 : index
    %7 = vector.load %arg1[%c0, %c0_0] : memref<2x32xf32, #tpu.memory_space<vmem>>, vector<2x32xf32>
    %8 = arith.truncf %7 : vector<2x32xf32> to vector<2x32xbf16>
    %c0_1 = arith.constant 0 : index
    %c0_2 = arith.constant 0 : index
    %9 = vector.load %arg2[%c0_1, %c0_2] : memref<32x2048xbf16, #tpu.memory_space<vmem>>, vector<32x2048xbf16>
    %cst = arith.constant dense<0.000000e+00> : vector<2x2048xf32>
    %10 = tpu.matmul %8, %9, %cst {dimension_numbers = #tpu.dot_dimension_numbers<[1], [0], [0], [1], [0, 0, 1, 1], [], []>} : vector<2x32xbf16>, vector<32x2048xbf16>, vector<2x2048xf32> -> vector<2x2048xf32>
    %c0_3 = arith.constant 0 : index
    %c0_4 = arith.constant 0 : index
    %11 = vector.load %arg3[%c0_3, %c0_4] : memref<1x2048xf32, #tpu.memory_space<vmem>>, vector<1x2048xf32>
    %12 = vector.broadcast %11 : vector<1x2048xf32> to vector<2x2048xf32>
    %13 = arith.addf %10, %12 : vector<2x2048xf32>
    %14 = vector.extract_strided_slice %13 {offsets = [0, 0], sizes = [2, 128], strides = [1, 1]} : vector<2x2048xf32> to vector<2x128xf32>
    %15 = vector.extract_strided_slice %13 {offsets = [0, 128], sizes = [2, 128], strides = [1, 1]} : vector<2x2048xf32> to vector<2x128xf32>
    %16 = vector.extract_strided_slice %13 {offsets = [0, 256], sizes = [2, 128], strides = [1, 1]} : vector<2x2048xf32> to vector<2x128xf32>
    %17 = vector.extract_strided_slice %13 {offsets = [0, 384], sizes = [2, 128], strides = [1, 1]} : vector<2x2048xf32> to vector<2x128xf32>
    %18 = vector.extract_strided_slice %13 {offsets = [0, 512], sizes = [2, 128], strides = [1, 1]} : vector<2x2048xf32> to vector<2x128xf32>
    %19 = vector.extract_strided_slice %13 {offsets = [0, 640], sizes = [2, 128], strides = [1, 1]} : vector<2x2048xf32> to vector<2x128xf32>
    %20 = vector.extract_strided_slice %13 {offsets = [0, 768], sizes = [2, 128], strides = [1, 1]} : vector<2x2048xf32> to vector<2x128xf32>
    %21 = vector.extract_strided_slice %13 {offsets = [0, 896], sizes = [2, 128], strides = [1, 1]} : vector<2x2048xf32> to vector<2x128xf32>
    %22 = vector.extract_strided_slice %13 {offsets = [0, 1024], sizes = [2, 128], strides = [1, 1]} : vector<2x2048xf32> to vector<2x128xf32>
    %23 = vector.extract_strided_slice %13 {offsets = [0, 1152], sizes = [2, 128], strides = [1, 1]} : vector<2x2048xf32> to vector<2x128xf32>
    %24 = vector.extract_strided_slice %13 {offsets = [0, 1280], sizes = [2, 128], strides = [1, 1]} : vector<2x2048xf32> to vector<2x128xf32>
    %25 = vector.extract_strided_slice %13 {offsets = [0, 1408], sizes = [2, 128], strides = [1, 1]} : vector<2x2048xf32> to vector<2x128xf32>
    %26 = vector.extract_strided_slice %13 {offsets = [0, 1536], sizes = [2, 128], strides = [1, 1]} : vector<2x2048xf32> to vector<2x128xf32>
    %27 = vector.extract_strided_slice %13 {offsets = [0, 1664], sizes = [2, 128], strides = [1, 1]} : vector<2x2048xf32> to vector<2x128xf32>
    %28 = vector.extract_strided_slice %13 {offsets = [0, 1792], sizes = [2, 128], strides = [1, 1]} : vector<2x2048xf32> to vector<2x128xf32>
    %29 = vector.extract_strided_slice %13 {offsets = [0, 1920], sizes = [2, 128], strides = [1, 1]} : vector<2x2048xf32> to vector<2x128xf32>
    %30 = tpu.concatenate %14, %15, %16, %17, %18, %19, %20, %21, %22, %23, %24, %25, %26, %27, %28, %29 in 0 : vector<2x128xf32>, vector<2x128xf32>, vector<2x128xf32>, vector<2x128xf32>, vector<2x128xf32>, vector<2x128xf32>, vector<2x128xf32>, vector<2x128xf32>, vector<2x128xf32>, vector<2x128xf32>, vector<2x128xf32>, vector<2x128xf32>, vector<2x128xf32>, vector<2x128xf32>, vector<2x128xf32>, vector<2x128xf32> -> vector<32x128xf32>
    %cst_5 = arith.constant 0.000000e+00 : f32
    %31 = vector.broadcast %cst_5 : f32 to vector<10x128xf32>
    %32 = vector.extract_strided_slice %30 {offsets = [0, 0], sizes = [22, 128], strides = [1, 1]} : vector<32x128xf32> to vector<22x128xf32>
    %33 = tpu.concatenate %31, %32 in 0 : vector<10x128xf32>, vector<22x128xf32> -> vector<32x128xf32>
    %c-1_i32 = arith.constant -1 : i32
    %34 = vector.broadcast %c-1_i32 : i32 to vector<32x1xi32>
    %35 = arith.addi %4, %34 : vector<32x1xi32>
    %c0_i32 = arith.constant 0 : i32
    %36 = vector.broadcast %c0_i32 : i32 to vector<32x1xi32>
    %37 = arith.cmpi sge, %35, %36 : vector<32x1xi32>
    %c-1_i32_6 = arith.constant -1 : i32
    %38 = vector.broadcast %c-1_i32_6 : i32 to vector<32x1xi32>
    %39 = arith.addi %4, %38 : vector<32x1xi32>
    %c4_i32 = arith.constant 4 : i32
    %40 = vector.broadcast %c4_i32 : i32 to vector<32x1xi32>
    %41 = arith.cmpi slt, %39, %40 : vector<32x1xi32>
    %42 = arith.andi %37, %41 : vector<32x1xi1>
    %c-1_i32_7 = arith.constant -1 : i32
    %43 = vector.broadcast %c-1_i32_7 : i32 to vector<32x1xi32>
    %44 = arith.addi %6, %43 : vector<32x1xi32>
    %c0_i32_8 = arith.constant 0 : i32
    %45 = vector.broadcast %c0_i32_8 : i32 to vector<32x1xi32>
    %46 = arith.cmpi sge, %44, %45 : vector<32x1xi32>
    %47 = arith.andi %42, %46 : vector<32x1xi1>
    %c-1_i32_9 = arith.constant -1 : i32
    %48 = vector.broadcast %c-1_i32_9 : i32 to vector<32x1xi32>
    %49 = arith.addi %6, %48 : vector<32x1xi32>
    %c4_i32_10 = arith.constant 4 : i32
    %50 = vector.broadcast %c4_i32_10 : i32 to vector<32x1xi32>
    %51 = arith.cmpi slt, %49, %50 : vector<32x1xi32>
    %52 = arith.andi %47, %51 : vector<32x1xi1>
    %cst_11 = arith.constant 0.000000e+00 : f32
    %53 = vector.shape_cast %52 : vector<32x1xi1> to vector<32x1xi1>
    %54 = vector.broadcast %53 : vector<32x1xi1> to vector<32x128xi1>
    %55 = vector.broadcast %cst_11 : f32 to vector<32x128xf32>
    %56 = arith.select %54, %33, %55 : vector<32x128xi1>, vector<32x128xf32>
    %57 = arith.truncf %56 : vector<32x128xf32> to vector<32x128xbf16>
    %cst_12 = arith.constant 0.000000e+00 : f32
    %58 = vector.broadcast %cst_12 : f32 to vector<8x128xf32>
    %59 = vector.extract_strided_slice %30 {offsets = [0, 0], sizes = [24, 128], strides = [1, 1]} : vector<32x128xf32> to vector<24x128xf32>
    %60 = tpu.concatenate %58, %59 in 0 : vector<8x128xf32>, vector<24x128xf32> -> vector<32x128xf32>
    %c-1_i32_13 = arith.constant -1 : i32
    %61 = vector.broadcast %c-1_i32_13 : i32 to vector<32x1xi32>
    %62 = arith.addi %4, %61 : vector<32x1xi32>
    %c0_i32_14 = arith.constant 0 : i32
    %63 = vector.broadcast %c0_i32_14 : i32 to vector<32x1xi32>
    %64 = arith.cmpi sge, %62, %63 : vector<32x1xi32>
    %c-1_i32_15 = arith.constant -1 : i32
    %65 = vector.broadcast %c-1_i32_15 : i32 to vector<32x1xi32>
    %66 = arith.addi %4, %65 : vector<32x1xi32>
    %c4_i32_16 = arith.constant 4 : i32
    %67 = vector.broadcast %c4_i32_16 : i32 to vector<32x1xi32>
    %68 = arith.cmpi slt, %66, %67 : vector<32x1xi32>
    %69 = arith.andi %64, %68 : vector<32x1xi1>
    %c0_i32_17 = arith.constant 0 : i32
    %70 = vector.broadcast %c0_i32_17 : i32 to vector<32x1xi32>
    %71 = arith.addi %6, %70 : vector<32x1xi32>
    %c0_i32_18 = arith.constant 0 : i32
    %72 = vector.broadcast %c0_i32_18 : i32 to vector<32x1xi32>
    %73 = arith.cmpi sge, %71, %72 : vector<32x1xi32>
    %74 = arith.andi %69, %73 : vector<32x1xi1>
    %c0_i32_19 = arith.constant 0 : i32
    %75 = vector.broadcast %c0_i32_19 : i32 to vector<32x1xi32>
    %76 = arith.addi %6, %75 : vector<32x1xi32>
    %c4_i32_20 = arith.constant 4 : i32
    %77 = vector.broadcast %c4_i32_20 : i32 to vector<32x1xi32>
    %78 = arith.cmpi slt, %76, %77 : vector<32x1xi32>
    %79 = arith.andi %74, %78 : vector<32x1xi1>
    %cst_21 = arith.constant 0.000000e+00 : f32
    %80 = vector.shape_cast %79 : vector<32x1xi1> to vector<32x1xi1>
    %81 = vector.broadcast %80 : vector<32x1xi1> to vector<32x128xi1>
    %82 = vector.broadcast %cst_21 : f32 to vector<32x128xf32>
    %83 = arith.select %81, %60, %82 : vector<32x128xi1>, vector<32x128xf32>
    %84 = arith.truncf %83 : vector<32x128xf32> to vector<32x128xbf16>
    %cst_22 = arith.constant 0.000000e+00 : f32
    %85 = vector.broadcast %cst_22 : f32 to vector<6x128xf32>
    %86 = vector.extract_strided_slice %30 {offsets = [0, 0], sizes = [26, 128], strides = [1, 1]} : vector<32x128xf32> to vector<26x128xf32>
    %87 = tpu.concatenate %85, %86 in 0 : vector<6x128xf32>, vector<26x128xf32> -> vector<32x128xf32>
    %c-1_i32_23 = arith.constant -1 : i32
    %88 = vector.broadcast %c-1_i32_23 : i32 to vector<32x1xi32>
    %89 = arith.addi %4, %88 : vector<32x1xi32>
    %c0_i32_24 = arith.constant 0 : i32
    %90 = vector.broadcast %c0_i32_24 : i32 to vector<32x1xi32>
    %91 = arith.cmpi sge, %89, %90 : vector<32x1xi32>
    %c-1_i32_25 = arith.constant -1 : i32
    %92 = vector.broadcast %c-1_i32_25 : i32 to vector<32x1xi32>
    %93 = arith.addi %4, %92 : vector<32x1xi32>
    %c4_i32_26 = arith.constant 4 : i32
    %94 = vector.broadcast %c4_i32_26 : i32 to vector<32x1xi32>
    %95 = arith.cmpi slt, %93, %94 : vector<32x1xi32>
    %96 = arith.andi %91, %95 : vector<32x1xi1>
    %c1_i32_27 = arith.constant 1 : i32
    %97 = vector.broadcast %c1_i32_27 : i32 to vector<32x1xi32>
    %98 = arith.addi %6, %97 : vector<32x1xi32>
    %c0_i32_28 = arith.constant 0 : i32
    %99 = vector.broadcast %c0_i32_28 : i32 to vector<32x1xi32>
    %100 = arith.cmpi sge, %98, %99 : vector<32x1xi32>
    %101 = arith.andi %96, %100 : vector<32x1xi1>
    %c1_i32_29 = arith.constant 1 : i32
    %102 = vector.broadcast %c1_i32_29 : i32 to vector<32x1xi32>
    %103 = arith.addi %6, %102 : vector<32x1xi32>
    %c4_i32_30 = arith.constant 4 : i32
    %104 = vector.broadcast %c4_i32_30 : i32 to vector<32x1xi32>
    %105 = arith.cmpi slt, %103, %104 : vector<32x1xi32>
    %106 = arith.andi %101, %105 : vector<32x1xi1>
    %cst_31 = arith.constant 0.000000e+00 : f32
    %107 = vector.shape_cast %106 : vector<32x1xi1> to vector<32x1xi1>
    %108 = vector.broadcast %107 : vector<32x1xi1> to vector<32x128xi1>
    %109 = vector.broadcast %cst_31 : f32 to vector<32x128xf32>
    %110 = arith.select %108, %87, %109 : vector<32x128xi1>, vector<32x128xf32>
    %111 = arith.truncf %110 : vector<32x128xf32> to vector<32x128xbf16>
    %cst_32 = arith.constant 0.000000e+00 : f32
    %112 = vector.broadcast %cst_32 : f32 to vector<2x128xf32>
    %113 = vector.extract_strided_slice %30 {offsets = [0, 0], sizes = [30, 128], strides = [1, 1]} : vector<32x128xf32> to vector<30x128xf32>
    %114 = tpu.concatenate %112, %113 in 0 : vector<2x128xf32>, vector<30x128xf32> -> vector<32x128xf32>
    %c0_i32_33 = arith.constant 0 : i32
    %115 = vector.broadcast %c0_i32_33 : i32 to vector<32x1xi32>
    %116 = arith.addi %4, %115 : vector<32x1xi32>
    %c0_i32_34 = arith.constant 0 : i32
    %117 = vector.broadcast %c0_i32_34 : i32 to vector<32x1xi32>
    %118 = arith.cmpi sge, %116, %117 : vector<32x1xi32>
    %c0_i32_35 = arith.constant 0 : i32
    %119 = vector.broadcast %c0_i32_35 : i32 to vector<32x1xi32>
    %120 = arith.addi %4, %119 : vector<32x1xi32>
    %c4_i32_36 = arith.constant 4 : i32
    %121 = vector.broadcast %c4_i32_36 : i32 to vector<32x1xi32>
    %122 = arith.cmpi slt, %120, %121 : vector<32x1xi32>
    %123 = arith.andi %118, %122 : vector<32x1xi1>
    %c-1_i32_37 = arith.constant -1 : i32
    %124 = vector.broadcast %c-1_i32_37 : i32 to vector<32x1xi32>
    %125 = arith.addi %6, %124 : vector<32x1xi32>
    %c0_i32_38 = arith.constant 0 : i32
    %126 = vector.broadcast %c0_i32_38 : i32 to vector<32x1xi32>
    %127 = arith.cmpi sge, %125, %126 : vector<32x1xi32>
    %128 = arith.andi %123, %127 : vector<32x1xi1>
    %c-1_i32_39 = arith.constant -1 : i32
    %129 = vector.broadcast %c-1_i32_39 : i32 to vector<32x1xi32>
    %130 = arith.addi %6, %129 : vector<32x1xi32>
    %c4_i32_40 = arith.constant 4 : i32
    %131 = vector.broadcast %c4_i32_40 : i32 to vector<32x1xi32>
    %132 = arith.cmpi slt, %130, %131 : vector<32x1xi32>
    %133 = arith.andi %128, %132 : vector<32x1xi1>
    %cst_41 = arith.constant 0.000000e+00 : f32
    %134 = vector.shape_cast %133 : vector<32x1xi1> to vector<32x1xi1>
    %135 = vector.broadcast %134 : vector<32x1xi1> to vector<32x128xi1>
    %136 = vector.broadcast %cst_41 : f32 to vector<32x128xf32>
    %137 = arith.select %135, %114, %136 : vector<32x128xi1>, vector<32x128xf32>
    %138 = arith.truncf %137 : vector<32x128xf32> to vector<32x128xbf16>
    %139 = arith.truncf %30 : vector<32x128xf32> to vector<32x128xbf16>
    %140 = vector.extract_strided_slice %30 {offsets = [2, 0], sizes = [30, 128], strides = [1, 1]} : vector<32x128xf32> to vector<30x128xf32>
    %cst_42 = arith.constant 0.000000e+00 : f32
    %141 = vector.broadcast %cst_42 : f32 to vector<2x128xf32>
    %142 = tpu.concatenate %140, %141 in 0 : vector<30x128xf32>, vector<2x128xf32> -> vector<32x128xf32>
    %c0_i32_43 = arith.constant 0 : i32
    %143 = vector.broadcast %c0_i32_43 : i32 to vector<32x1xi32>
    %144 = arith.addi %4, %143 : vector<32x1xi32>
    %c0_i32_44 = arith.constant 0 : i32
    %145 = vector.broadcast %c0_i32_44 : i32 to vector<32x1xi32>
    %146 = arith.cmpi sge, %144, %145 : vector<32x1xi32>
    %c0_i32_45 = arith.constant 0 : i32
    %147 = vector.broadcast %c0_i32_45 : i32 to vector<32x1xi32>
    %148 = arith.addi %4, %147 : vector<32x1xi32>
    %c4_i32_46 = arith.constant 4 : i32
    %149 = vector.broadcast %c4_i32_46 : i32 to vector<32x1xi32>
    %150 = arith.cmpi slt, %148, %149 : vector<32x1xi32>
    %151 = arith.andi %146, %150 : vector<32x1xi1>
    %c1_i32_47 = arith.constant 1 : i32
    %152 = vector.broadcast %c1_i32_47 : i32 to vector<32x1xi32>
    %153 = arith.addi %6, %152 : vector<32x1xi32>
    %c0_i32_48 = arith.constant 0 : i32
    %154 = vector.broadcast %c0_i32_48 : i32 to vector<32x1xi32>
    %155 = arith.cmpi sge, %153, %154 : vector<32x1xi32>
    %156 = arith.andi %151, %155 : vector<32x1xi1>
    %c1_i32_49 = arith.constant 1 : i32
    %157 = vector.broadcast %c1_i32_49 : i32 to vector<32x1xi32>
    %158 = arith.addi %6, %157 : vector<32x1xi32>
    %c4_i32_50 = arith.constant 4 : i32
    %159 = vector.broadcast %c4_i32_50 : i32 to vector<32x1xi32>
    %160 = arith.cmpi slt, %158, %159 : vector<32x1xi32>
    %161 = arith.andi %156, %160 : vector<32x1xi1>
    %cst_51 = arith.constant 0.000000e+00 : f32
    %162 = vector.shape_cast %161 : vector<32x1xi1> to vector<32x1xi1>
    %163 = vector.broadcast %162 : vector<32x1xi1> to vector<32x128xi1>
    %164 = vector.broadcast %cst_51 : f32 to vector<32x128xf32>
    %165 = arith.select %163, %142, %164 : vector<32x128xi1>, vector<32x128xf32>
    %166 = arith.truncf %165 : vector<32x128xf32> to vector<32x128xbf16>
    %167 = vector.extract_strided_slice %30 {offsets = [6, 0], sizes = [26, 128], strides = [1, 1]} : vector<32x128xf32> to vector<26x128xf32>
    %cst_52 = arith.constant 0.000000e+00 : f32
    %168 = vector.broadcast %cst_52 : f32 to vector<6x128xf32>
    %169 = tpu.concatenate %167, %168 in 0 : vector<26x128xf32>, vector<6x128xf32> -> vector<32x128xf32>
    %c1_i32_53 = arith.constant 1 : i32
    %170 = vector.broadcast %c1_i32_53 : i32 to vector<32x1xi32>
    %171 = arith.addi %4, %170 : vector<32x1xi32>
    %c0_i32_54 = arith.constant 0 : i32
    %172 = vector.broadcast %c0_i32_54 : i32 to vector<32x1xi32>
    %173 = arith.cmpi sge, %171, %172 : vector<32x1xi32>
    %c1_i32_55 = arith.constant 1 : i32
    %174 = vector.broadcast %c1_i32_55 : i32 to vector<32x1xi32>
    %175 = arith.addi %4, %174 : vector<32x1xi32>
    %c4_i32_56 = arith.constant 4 : i32
    %176 = vector.broadcast %c4_i32_56 : i32 to vector<32x1xi32>
    %177 = arith.cmpi slt, %175, %176 : vector<32x1xi32>
    %178 = arith.andi %173, %177 : vector<32x1xi1>
    %c-1_i32_57 = arith.constant -1 : i32
    %179 = vector.broadcast %c-1_i32_57 : i32 to vector<32x1xi32>
    %180 = arith.addi %6, %179 : vector<32x1xi32>
    %c0_i32_58 = arith.constant 0 : i32
    %181 = vector.broadcast %c0_i32_58 : i32 to vector<32x1xi32>
    %182 = arith.cmpi sge, %180, %181 : vector<32x1xi32>
    %183 = arith.andi %178, %182 : vector<32x1xi1>
    %c-1_i32_59 = arith.constant -1 : i32
    %184 = vector.broadcast %c-1_i32_59 : i32 to vector<32x1xi32>
    %185 = arith.addi %6, %184 : vector<32x1xi32>
    %c4_i32_60 = arith.constant 4 : i32
    %186 = vector.broadcast %c4_i32_60 : i32 to vector<32x1xi32>
    %187 = arith.cmpi slt, %185, %186 : vector<32x1xi32>
    %188 = arith.andi %183, %187 : vector<32x1xi1>
    %cst_61 = arith.constant 0.000000e+00 : f32
    %189 = vector.shape_cast %188 : vector<32x1xi1> to vector<32x1xi1>
    %190 = vector.broadcast %189 : vector<32x1xi1> to vector<32x128xi1>
    %191 = vector.broadcast %cst_61 : f32 to vector<32x128xf32>
    %192 = arith.select %190, %169, %191 : vector<32x128xi1>, vector<32x128xf32>
    %193 = arith.truncf %192 : vector<32x128xf32> to vector<32x128xbf16>
    %194 = vector.extract_strided_slice %30 {offsets = [8, 0], sizes = [24, 128], strides = [1, 1]} : vector<32x128xf32> to vector<24x128xf32>
    %cst_62 = arith.constant 0.000000e+00 : f32
    %195 = vector.broadcast %cst_62 : f32 to vector<8x128xf32>
    %196 = tpu.concatenate %194, %195 in 0 : vector<24x128xf32>, vector<8x128xf32> -> vector<32x128xf32>
    %c1_i32_63 = arith.constant 1 : i32
    %197 = vector.broadcast %c1_i32_63 : i32 to vector<32x1xi32>
    %198 = arith.addi %4, %197 : vector<32x1xi32>
    %c0_i32_64 = arith.constant 0 : i32
    %199 = vector.broadcast %c0_i32_64 : i32 to vector<32x1xi32>
    %200 = arith.cmpi sge, %198, %199 : vector<32x1xi32>
    %c1_i32_65 = arith.constant 1 : i32
    %201 = vector.broadcast %c1_i32_65 : i32 to vector<32x1xi32>
    %202 = arith.addi %4, %201 : vector<32x1xi32>
    %c4_i32_66 = arith.constant 4 : i32
    %203 = vector.broadcast %c4_i32_66 : i32 to vector<32x1xi32>
    %204 = arith.cmpi slt, %202, %203 : vector<32x1xi32>
    %205 = arith.andi %200, %204 : vector<32x1xi1>
    %c0_i32_67 = arith.constant 0 : i32
    %206 = vector.broadcast %c0_i32_67 : i32 to vector<32x1xi32>
    %207 = arith.addi %6, %206 : vector<32x1xi32>
    %c0_i32_68 = arith.constant 0 : i32
    %208 = vector.broadcast %c0_i32_68 : i32 to vector<32x1xi32>
    %209 = arith.cmpi sge, %207, %208 : vector<32x1xi32>
    %210 = arith.andi %205, %209 : vector<32x1xi1>
    %c0_i32_69 = arith.constant 0 : i32
    %211 = vector.broadcast %c0_i32_69 : i32 to vector<32x1xi32>
    %212 = arith.addi %6, %211 : vector<32x1xi32>
    %c4_i32_70 = arith.constant 4 : i32
    %213 = vector.broadcast %c4_i32_70 : i32 to vector<32x1xi32>
    %214 = arith.cmpi slt, %212, %213 : vector<32x1xi32>
    %215 = arith.andi %210, %214 : vector<32x1xi1>
    %cst_71 = arith.constant 0.000000e+00 : f32
    %216 = vector.shape_cast %215 : vector<32x1xi1> to vector<32x1xi1>
    %217 = vector.broadcast %216 : vector<32x1xi1> to vector<32x128xi1>
    %218 = vector.broadcast %cst_71 : f32 to vector<32x128xf32>
    %219 = arith.select %217, %196, %218 : vector<32x128xi1>, vector<32x128xf32>
    %220 = arith.truncf %219 : vector<32x128xf32> to vector<32x128xbf16>
    %221 = vector.extract_strided_slice %30 {offsets = [10, 0], sizes = [22, 128], strides = [1, 1]} : vector<32x128xf32> to vector<22x128xf32>
    %cst_72 = arith.constant 0.000000e+00 : f32
    %222 = vector.broadcast %cst_72 : f32 to vector<10x128xf32>
    %223 = tpu.concatenate %221, %222 in 0 : vector<22x128xf32>, vector<10x128xf32> -> vector<32x128xf32>
    %c1_i32_73 = arith.constant 1 : i32
    %224 = vector.broadcast %c1_i32_73 : i32 to vector<32x1xi32>
    %225 = arith.addi %4, %224 : vector<32x1xi32>
    %c0_i32_74 = arith.constant 0 : i32
    %226 = vector.broadcast %c0_i32_74 : i32 to vector<32x1xi32>
    %227 = arith.cmpi sge, %225, %226 : vector<32x1xi32>
    %c1_i32_75 = arith.constant 1 : i32
    %228 = vector.broadcast %c1_i32_75 : i32 to vector<32x1xi32>
    %229 = arith.addi %4, %228 : vector<32x1xi32>
    %c4_i32_76 = arith.constant 4 : i32
    %230 = vector.broadcast %c4_i32_76 : i32 to vector<32x1xi32>
    %231 = arith.cmpi slt, %229, %230 : vector<32x1xi32>
    %232 = arith.andi %227, %231 : vector<32x1xi1>
    %c1_i32_77 = arith.constant 1 : i32
    %233 = vector.broadcast %c1_i32_77 : i32 to vector<32x1xi32>
    %234 = arith.addi %6, %233 : vector<32x1xi32>
    %c0_i32_78 = arith.constant 0 : i32
    %235 = vector.broadcast %c0_i32_78 : i32 to vector<32x1xi32>
    %236 = arith.cmpi sge, %234, %235 : vector<32x1xi32>
    %237 = arith.andi %232, %236 : vector<32x1xi1>
    %c1_i32_79 = arith.constant 1 : i32
    %238 = vector.broadcast %c1_i32_79 : i32 to vector<32x1xi32>
    %239 = arith.addi %6, %238 : vector<32x1xi32>
    %c4_i32_80 = arith.constant 4 : i32
    %240 = vector.broadcast %c4_i32_80 : i32 to vector<32x1xi32>
    %241 = arith.cmpi slt, %239, %240 : vector<32x1xi32>
    %242 = arith.andi %237, %241 : vector<32x1xi1>
    %cst_81 = arith.constant 0.000000e+00 : f32
    %243 = vector.shape_cast %242 : vector<32x1xi1> to vector<32x1xi1>
    %244 = vector.broadcast %243 : vector<32x1xi1> to vector<32x128xi1>
    %245 = vector.broadcast %cst_81 : f32 to vector<32x128xf32>
    %246 = arith.select %244, %223, %245 : vector<32x128xi1>, vector<32x128xf32>
    %247 = arith.truncf %246 : vector<32x128xf32> to vector<32x128xbf16>
    %248 = tpu.concatenate %57, %84, %111, %138, %139, %166, %193, %220, %247 in 1 : vector<32x128xbf16>, vector<32x128xbf16>, vector<32x128xbf16>, vector<32x128xbf16>, vector<32x128xbf16>, vector<32x128xbf16>, vector<32x128xbf16>, vector<32x128xbf16>, vector<32x128xbf16> -> vector<32x1152xbf16>
    %c0_82 = arith.constant 0 : index
    %c0_83 = arith.constant 0 : index
    %249 = vector.load %arg4[%c0_82, %c0_83] : memref<1152x64xbf16, #tpu.memory_space<vmem>>, vector<1152x64xbf16>
    %cst_84 = arith.constant dense<0.000000e+00> : vector<32x64xf32>
    %250 = tpu.matmul %248, %249, %cst_84 {dimension_numbers = #tpu.dot_dimension_numbers<[1], [0], [0], [1], [0, 0, 1, 1], [], []>} : vector<32x1152xbf16>, vector<1152x64xbf16>, vector<32x64xf32> -> vector<32x64xf32>
    %c0_85 = arith.constant 0 : index
    %c0_86 = arith.constant 0 : index
    %251 = vector.load %arg5[%c0_85, %c0_86] : memref<1x64xf32, #tpu.memory_space<vmem>>, vector<1x64xf32>
    %252 = vector.broadcast %251 : vector<1x64xf32> to vector<32x64xf32>
    %253 = arith.addf %250, %252 : vector<32x64xf32>
    %cst_87 = arith.constant 0.000000e+00 : f32
    %254 = vector.broadcast %cst_87 : f32 to vector<32x64xf32>
    %255 = arith.maximumf %253, %254 : vector<32x64xf32>
    %256 = vector.extract_strided_slice %255 {offsets = [2, 0], sizes = [30, 64], strides = [1, 1]} : vector<32x64xf32> to vector<30x64xf32>
    %cst_88 = arith.constant 0.000000e+00 : f32
    %257 = vector.broadcast %cst_88 : f32 to vector<2x64xf32>
    %258 = tpu.concatenate %256, %257 in 0 : vector<30x64xf32>, vector<2x64xf32> -> vector<32x64xf32>
    %c0_i32_89 = arith.constant 0 : i32
    %259 = vector.broadcast %c0_i32_89 : i32 to vector<32x1xi32>
    %260 = arith.addi %4, %259 : vector<32x1xi32>
    %c0_i32_90 = arith.constant 0 : i32
    %261 = vector.broadcast %c0_i32_90 : i32 to vector<32x1xi32>
    %262 = arith.cmpi sge, %260, %261 : vector<32x1xi32>
    %c0_i32_91 = arith.constant 0 : i32
    %263 = vector.broadcast %c0_i32_91 : i32 to vector<32x1xi32>
    %264 = arith.addi %4, %263 : vector<32x1xi32>
    %c4_i32_92 = arith.constant 4 : i32
    %265 = vector.broadcast %c4_i32_92 : i32 to vector<32x1xi32>
    %266 = arith.cmpi slt, %264, %265 : vector<32x1xi32>
    %267 = arith.andi %262, %266 : vector<32x1xi1>
    %c1_i32_93 = arith.constant 1 : i32
    %268 = vector.broadcast %c1_i32_93 : i32 to vector<32x1xi32>
    %269 = arith.addi %6, %268 : vector<32x1xi32>
    %c0_i32_94 = arith.constant 0 : i32
    %270 = vector.broadcast %c0_i32_94 : i32 to vector<32x1xi32>
    %271 = arith.cmpi sge, %269, %270 : vector<32x1xi32>
    %272 = arith.andi %267, %271 : vector<32x1xi1>
    %c1_i32_95 = arith.constant 1 : i32
    %273 = vector.broadcast %c1_i32_95 : i32 to vector<32x1xi32>
    %274 = arith.addi %6, %273 : vector<32x1xi32>
    %c4_i32_96 = arith.constant 4 : i32
    %275 = vector.broadcast %c4_i32_96 : i32 to vector<32x1xi32>
    %276 = arith.cmpi slt, %274, %275 : vector<32x1xi32>
    %277 = arith.andi %272, %276 : vector<32x1xi1>
    %cst_97 = arith.constant 0.000000e+00 : f32
    %278 = vector.shape_cast %277 : vector<32x1xi1> to vector<32x1xi1>
    %279 = vector.broadcast %278 : vector<32x1xi1> to vector<32x64xi1>
    %280 = vector.broadcast %cst_97 : f32 to vector<32x64xf32>
    %281 = arith.select %279, %258, %280 : vector<32x64xi1>, vector<32x64xf32>
    %282 = vector.extract_strided_slice %255 {offsets = [8, 0], sizes = [24, 64], strides = [1, 1]} : vector<32x64xf32> to vector<24x64xf32>
    %cst_98 = arith.constant 0.000000e+00 : f32
    %283 = vector.broadcast %cst_98 : f32 to vector<8x64xf32>
    %284 = tpu.concatenate %282, %283 in 0 : vector<24x64xf32>, vector<8x64xf32> -> vector<32x64xf32>
    %c1_i32_99 = arith.constant 1 : i32
    %285 = vector.broadcast %c1_i32_99 : i32 to vector<32x1xi32>
    %286 = arith.addi %4, %285 : vector<32x1xi32>
    %c0_i32_100 = arith.constant 0 : i32
    %287 = vector.broadcast %c0_i32_100 : i32 to vector<32x1xi32>
    %288 = arith.cmpi sge, %286, %287 : vector<32x1xi32>
    %c1_i32_101 = arith.constant 1 : i32
    %289 = vector.broadcast %c1_i32_101 : i32 to vector<32x1xi32>
    %290 = arith.addi %4, %289 : vector<32x1xi32>
    %c4_i32_102 = arith.constant 4 : i32
    %291 = vector.broadcast %c4_i32_102 : i32 to vector<32x1xi32>
    %292 = arith.cmpi slt, %290, %291 : vector<32x1xi32>
    %293 = arith.andi %288, %292 : vector<32x1xi1>
    %c0_i32_103 = arith.constant 0 : i32
    %294 = vector.broadcast %c0_i32_103 : i32 to vector<32x1xi32>
    %295 = arith.addi %6, %294 : vector<32x1xi32>
    %c0_i32_104 = arith.constant 0 : i32
    %296 = vector.broadcast %c0_i32_104 : i32 to vector<32x1xi32>
    %297 = arith.cmpi sge, %295, %296 : vector<32x1xi32>
    %298 = arith.andi %293, %297 : vector<32x1xi1>
    %c0_i32_105 = arith.constant 0 : i32
    %299 = vector.broadcast %c0_i32_105 : i32 to vector<32x1xi32>
    %300 = arith.addi %6, %299 : vector<32x1xi32>
    %c4_i32_106 = arith.constant 4 : i32
    %301 = vector.broadcast %c4_i32_106 : i32 to vector<32x1xi32>
    %302 = arith.cmpi slt, %300, %301 : vector<32x1xi32>
    %303 = arith.andi %298, %302 : vector<32x1xi1>
    %cst_107 = arith.constant 0.000000e+00 : f32
    %304 = vector.shape_cast %303 : vector<32x1xi1> to vector<32x1xi1>
    %305 = vector.broadcast %304 : vector<32x1xi1> to vector<32x64xi1>
    %306 = vector.broadcast %cst_107 : f32 to vector<32x64xf32>
    %307 = arith.select %305, %284, %306 : vector<32x64xi1>, vector<32x64xf32>
    %308 = vector.extract_strided_slice %255 {offsets = [10, 0], sizes = [22, 64], strides = [1, 1]} : vector<32x64xf32> to vector<22x64xf32>
    %cst_108 = arith.constant 0.000000e+00 : f32
    %309 = vector.broadcast %cst_108 : f32 to vector<10x64xf32>
    %310 = tpu.concatenate %308, %309 in 0 : vector<22x64xf32>, vector<10x64xf32> -> vector<32x64xf32>
    %c1_i32_109 = arith.constant 1 : i32
    %311 = vector.broadcast %c1_i32_109 : i32 to vector<32x1xi32>
    %312 = arith.addi %4, %311 : vector<32x1xi32>
    %c0_i32_110 = arith.constant 0 : i32
    %313 = vector.broadcast %c0_i32_110 : i32 to vector<32x1xi32>
    %314 = arith.cmpi sge, %312, %313 : vector<32x1xi32>
    %c1_i32_111 = arith.constant 1 : i32
    %315 = vector.broadcast %c1_i32_111 : i32 to vector<32x1xi32>
    %316 = arith.addi %4, %315 : vector<32x1xi32>
    %c4_i32_112 = arith.constant 4 : i32
    %317 = vector.broadcast %c4_i32_112 : i32 to vector<32x1xi32>
    %318 = arith.cmpi slt, %316, %317 : vector<32x1xi32>
    %319 = arith.andi %314, %318 : vector<32x1xi1>
    %c1_i32_113 = arith.constant 1 : i32
    %320 = vector.broadcast %c1_i32_113 : i32 to vector<32x1xi32>
    %321 = arith.addi %6, %320 : vector<32x1xi32>
    %c0_i32_114 = arith.constant 0 : i32
    %322 = vector.broadcast %c0_i32_114 : i32 to vector<32x1xi32>
    %323 = arith.cmpi sge, %321, %322 : vector<32x1xi32>
    %324 = arith.andi %319, %323 : vector<32x1xi1>
    %c1_i32_115 = arith.constant 1 : i32
    %325 = vector.broadcast %c1_i32_115 : i32 to vector<32x1xi32>
    %326 = arith.addi %6, %325 : vector<32x1xi32>
    %c4_i32_116 = arith.constant 4 : i32
    %327 = vector.broadcast %c4_i32_116 : i32 to vector<32x1xi32>
    %328 = arith.cmpi slt, %326, %327 : vector<32x1xi32>
    %329 = arith.andi %324, %328 : vector<32x1xi1>
    %cst_117 = arith.constant 0.000000e+00 : f32
    %330 = vector.shape_cast %329 : vector<32x1xi1> to vector<32x1xi1>
    %331 = vector.broadcast %330 : vector<32x1xi1> to vector<32x64xi1>
    %332 = vector.broadcast %cst_117 : f32 to vector<32x64xf32>
    %333 = arith.select %331, %310, %332 : vector<32x64xi1>, vector<32x64xf32>
    %334 = tpu.concatenate %255, %281, %307, %333 in 1 : vector<32x64xf32>, vector<32x64xf32>, vector<32x64xf32>, vector<32x64xf32> -> vector<32x256xf32>
    %335 = arith.truncf %334 : vector<32x256xf32> to vector<32x256xbf16>
    %c0_118 = arith.constant 0 : index
    %c0_119 = arith.constant 0 : index
    %336 = vector.load %arg6[%c0_118, %c0_119] : memref<256x128xbf16, #tpu.memory_space<vmem>>, vector<256x128xbf16>
    %cst_120 = arith.constant dense<0.000000e+00> : vector<32x128xf32>
    %337 = tpu.matmul %335, %336, %cst_120 {dimension_numbers = #tpu.dot_dimension_numbers<[1], [0], [0], [1], [0, 0, 1, 1], [], []>} : vector<32x256xbf16>, vector<256x128xbf16>, vector<32x128xf32> -> vector<32x128xf32>
    %c0_121 = arith.constant 0 : index
    %c0_122 = arith.constant 0 : index
    %338 = vector.load %arg7[%c0_121, %c0_122] : memref<1x128xf32, #tpu.memory_space<vmem>>, vector<1x128xf32>
    %339 = vector.broadcast %338 : vector<1x128xf32> to vector<32x128xf32>
    %340 = arith.addf %337, %339 : vector<32x128xf32>
    %cst_123 = arith.constant 0.000000e+00 : f32
    %341 = vector.broadcast %cst_123 : f32 to vector<32x128xf32>
    %342 = arith.maximumf %340, %341 : vector<32x128xf32>
    %343 = vector.extract_strided_slice %342 {offsets = [0, 0], sizes = [32, 32], strides = [1, 1]} : vector<32x128xf32> to vector<32x32xf32>
    %344 = vector.extract_strided_slice %342 {offsets = [0, 32], sizes = [32, 32], strides = [1, 1]} : vector<32x128xf32> to vector<32x32xf32>
    %345 = vector.extract_strided_slice %342 {offsets = [0, 64], sizes = [32, 32], strides = [1, 1]} : vector<32x128xf32> to vector<32x32xf32>
    %346 = vector.extract_strided_slice %342 {offsets = [0, 96], sizes = [32, 32], strides = [1, 1]} : vector<32x128xf32> to vector<32x32xf32>
    %347 = vector.extract_strided_slice %343 {offsets = [2, 0], sizes = [30, 32], strides = [1, 1]} : vector<32x32xf32> to vector<30x32xf32>
    %cst_124 = arith.constant 0.000000e+00 : f32
    %348 = vector.broadcast %cst_124 : f32 to vector<2x32xf32>
    %349 = tpu.concatenate %347, %348 in 0 : vector<30x32xf32>, vector<2x32xf32> -> vector<32x32xf32>
    %c0_i32_125 = arith.constant 0 : i32
    %350 = vector.broadcast %c0_i32_125 : i32 to vector<32x1xi32>
    %351 = arith.addi %4, %350 : vector<32x1xi32>
    %c0_i32_126 = arith.constant 0 : i32
    %352 = vector.broadcast %c0_i32_126 : i32 to vector<32x1xi32>
    %353 = arith.cmpi sge, %351, %352 : vector<32x1xi32>
    %c0_i32_127 = arith.constant 0 : i32
    %354 = vector.broadcast %c0_i32_127 : i32 to vector<32x1xi32>
    %355 = arith.addi %4, %354 : vector<32x1xi32>
    %c4_i32_128 = arith.constant 4 : i32
    %356 = vector.broadcast %c4_i32_128 : i32 to vector<32x1xi32>
    %357 = arith.cmpi slt, %355, %356 : vector<32x1xi32>
    %358 = arith.andi %353, %357 : vector<32x1xi1>
    %c1_i32_129 = arith.constant 1 : i32
    %359 = vector.broadcast %c1_i32_129 : i32 to vector<32x1xi32>
    %360 = arith.addi %6, %359 : vector<32x1xi32>
    %c0_i32_130 = arith.constant 0 : i32
    %361 = vector.broadcast %c0_i32_130 : i32 to vector<32x1xi32>
    %362 = arith.cmpi sge, %360, %361 : vector<32x1xi32>
    %363 = arith.andi %358, %362 : vector<32x1xi1>
    %c1_i32_131 = arith.constant 1 : i32
    %364 = vector.broadcast %c1_i32_131 : i32 to vector<32x1xi32>
    %365 = arith.addi %6, %364 : vector<32x1xi32>
    %c4_i32_132 = arith.constant 4 : i32
    %366 = vector.broadcast %c4_i32_132 : i32 to vector<32x1xi32>
    %367 = arith.cmpi slt, %365, %366 : vector<32x1xi32>
    %368 = arith.andi %363, %367 : vector<32x1xi1>
    %cst_133 = arith.constant 0.000000e+00 : f32
    %369 = vector.shape_cast %368 : vector<32x1xi1> to vector<32x1xi1>
    %370 = vector.broadcast %369 : vector<32x1xi1> to vector<32x32xi1>
    %371 = vector.broadcast %cst_133 : f32 to vector<32x32xf32>
    %372 = arith.select %370, %349, %371 : vector<32x32xi1>, vector<32x32xf32>
    %373 = vector.extract_strided_slice %345 {offsets = [2, 0], sizes = [30, 32], strides = [1, 1]} : vector<32x32xf32> to vector<30x32xf32>
    %cst_134 = arith.constant 0.000000e+00 : f32
    %374 = vector.broadcast %cst_134 : f32 to vector<2x32xf32>
    %375 = tpu.concatenate %373, %374 in 0 : vector<30x32xf32>, vector<2x32xf32> -> vector<32x32xf32>
    %c0_i32_135 = arith.constant 0 : i32
    %376 = vector.broadcast %c0_i32_135 : i32 to vector<32x1xi32>
    %377 = arith.addi %4, %376 : vector<32x1xi32>
    %c0_i32_136 = arith.constant 0 : i32
    %378 = vector.broadcast %c0_i32_136 : i32 to vector<32x1xi32>
    %379 = arith.cmpi sge, %377, %378 : vector<32x1xi32>
    %c0_i32_137 = arith.constant 0 : i32
    %380 = vector.broadcast %c0_i32_137 : i32 to vector<32x1xi32>
    %381 = arith.addi %4, %380 : vector<32x1xi32>
    %c4_i32_138 = arith.constant 4 : i32
    %382 = vector.broadcast %c4_i32_138 : i32 to vector<32x1xi32>
    %383 = arith.cmpi slt, %381, %382 : vector<32x1xi32>
    %384 = arith.andi %379, %383 : vector<32x1xi1>
    %c1_i32_139 = arith.constant 1 : i32
    %385 = vector.broadcast %c1_i32_139 : i32 to vector<32x1xi32>
    %386 = arith.addi %6, %385 : vector<32x1xi32>
    %c0_i32_140 = arith.constant 0 : i32
    %387 = vector.broadcast %c0_i32_140 : i32 to vector<32x1xi32>
    %388 = arith.cmpi sge, %386, %387 : vector<32x1xi32>
    %389 = arith.andi %384, %388 : vector<32x1xi1>
    %c1_i32_141 = arith.constant 1 : i32
    %390 = vector.broadcast %c1_i32_141 : i32 to vector<32x1xi32>
    %391 = arith.addi %6, %390 : vector<32x1xi32>
    %c4_i32_142 = arith.constant 4 : i32
    %392 = vector.broadcast %c4_i32_142 : i32 to vector<32x1xi32>
    %393 = arith.cmpi slt, %391, %392 : vector<32x1xi32>
    %394 = arith.andi %389, %393 : vector<32x1xi1>
    %cst_143 = arith.constant 0.000000e+00 : f32
    %395 = vector.shape_cast %394 : vector<32x1xi1> to vector<32x1xi1>
    %396 = vector.broadcast %395 : vector<32x1xi1> to vector<32x32xi1>
    %397 = vector.broadcast %cst_143 : f32 to vector<32x32xf32>
    %398 = arith.select %396, %375, %397 : vector<32x32xi1>, vector<32x32xf32>
    %399 = vector.extract_strided_slice %343 {offsets = [8, 0], sizes = [24, 32], strides = [1, 1]} : vector<32x32xf32> to vector<24x32xf32>
    %cst_144 = arith.constant 0.000000e+00 : f32
    %400 = vector.broadcast %cst_144 : f32 to vector<8x32xf32>
    %401 = tpu.concatenate %399, %400 in 0 : vector<24x32xf32>, vector<8x32xf32> -> vector<32x32xf32>
    %c1_i32_145 = arith.constant 1 : i32
    %402 = vector.broadcast %c1_i32_145 : i32 to vector<32x1xi32>
    %403 = arith.addi %4, %402 : vector<32x1xi32>
    %c0_i32_146 = arith.constant 0 : i32
    %404 = vector.broadcast %c0_i32_146 : i32 to vector<32x1xi32>
    %405 = arith.cmpi sge, %403, %404 : vector<32x1xi32>
    %c1_i32_147 = arith.constant 1 : i32
    %406 = vector.broadcast %c1_i32_147 : i32 to vector<32x1xi32>
    %407 = arith.addi %4, %406 : vector<32x1xi32>
    %c4_i32_148 = arith.constant 4 : i32
    %408 = vector.broadcast %c4_i32_148 : i32 to vector<32x1xi32>
    %409 = arith.cmpi slt, %407, %408 : vector<32x1xi32>
    %410 = arith.andi %405, %409 : vector<32x1xi1>
    %c0_i32_149 = arith.constant 0 : i32
    %411 = vector.broadcast %c0_i32_149 : i32 to vector<32x1xi32>
    %412 = arith.addi %6, %411 : vector<32x1xi32>
    %c0_i32_150 = arith.constant 0 : i32
    %413 = vector.broadcast %c0_i32_150 : i32 to vector<32x1xi32>
    %414 = arith.cmpi sge, %412, %413 : vector<32x1xi32>
    %415 = arith.andi %410, %414 : vector<32x1xi1>
    %c0_i32_151 = arith.constant 0 : i32
    %416 = vector.broadcast %c0_i32_151 : i32 to vector<32x1xi32>
    %417 = arith.addi %6, %416 : vector<32x1xi32>
    %c4_i32_152 = arith.constant 4 : i32
    %418 = vector.broadcast %c4_i32_152 : i32 to vector<32x1xi32>
    %419 = arith.cmpi slt, %417, %418 : vector<32x1xi32>
    %420 = arith.andi %415, %419 : vector<32x1xi1>
    %cst_153 = arith.constant 0.000000e+00 : f32
    %421 = vector.shape_cast %420 : vector<32x1xi1> to vector<32x1xi1>
    %422 = vector.broadcast %421 : vector<32x1xi1> to vector<32x32xi1>
    %423 = vector.broadcast %cst_153 : f32 to vector<32x32xf32>
    %424 = arith.select %422, %401, %423 : vector<32x32xi1>, vector<32x32xf32>
    %425 = vector.extract_strided_slice %344 {offsets = [8, 0], sizes = [24, 32], strides = [1, 1]} : vector<32x32xf32> to vector<24x32xf32>
    %cst_154 = arith.constant 0.000000e+00 : f32
    %426 = vector.broadcast %cst_154 : f32 to vector<8x32xf32>
    %427 = tpu.concatenate %425, %426 in 0 : vector<24x32xf32>, vector<8x32xf32> -> vector<32x32xf32>
    %c1_i32_155 = arith.constant 1 : i32
    %428 = vector.broadcast %c1_i32_155 : i32 to vector<32x1xi32>
    %429 = arith.addi %4, %428 : vector<32x1xi32>
    %c0_i32_156 = arith.constant 0 : i32
    %430 = vector.broadcast %c0_i32_156 : i32 to vector<32x1xi32>
    %431 = arith.cmpi sge, %429, %430 : vector<32x1xi32>
    %c1_i32_157 = arith.constant 1 : i32
    %432 = vector.broadcast %c1_i32_157 : i32 to vector<32x1xi32>
    %433 = arith.addi %4, %432 : vector<32x1xi32>
    %c4_i32_158 = arith.constant 4 : i32
    %434 = vector.broadcast %c4_i32_158 : i32 to vector<32x1xi32>
    %435 = arith.cmpi slt, %433, %434 : vector<32x1xi32>
    %436 = arith.andi %431, %435 : vector<32x1xi1>
    %c0_i32_159 = arith.constant 0 : i32
    %437 = vector.broadcast %c0_i32_159 : i32 to vector<32x1xi32>
    %438 = arith.addi %6, %437 : vector<32x1xi32>
    %c0_i32_160 = arith.constant 0 : i32
    %439 = vector.broadcast %c0_i32_160 : i32 to vector<32x1xi32>
    %440 = arith.cmpi sge, %438, %439 : vector<32x1xi32>
    %441 = arith.andi %436, %440 : vector<32x1xi1>
    %c0_i32_161 = arith.constant 0 : i32
    %442 = vector.broadcast %c0_i32_161 : i32 to vector<32x1xi32>
    %443 = arith.addi %6, %442 : vector<32x1xi32>
    %c4_i32_162 = arith.constant 4 : i32
    %444 = vector.broadcast %c4_i32_162 : i32 to vector<32x1xi32>
    %445 = arith.cmpi slt, %443, %444 : vector<32x1xi32>
    %446 = arith.andi %441, %445 : vector<32x1xi1>
    %cst_163 = arith.constant 0.000000e+00 : f32
    %447 = vector.shape_cast %446 : vector<32x1xi1> to vector<32x1xi1>
    %448 = vector.broadcast %447 : vector<32x1xi1> to vector<32x32xi1>
    %449 = vector.broadcast %cst_163 : f32 to vector<32x32xf32>
    %450 = arith.select %448, %427, %449 : vector<32x32xi1>, vector<32x32xf32>
    %451 = vector.extract_strided_slice %343 {offsets = [10, 0], sizes = [22, 32], strides = [1, 1]} : vector<32x32xf32> to vector<22x32xf32>
    %cst_164 = arith.constant 0.000000e+00 : f32
    %452 = vector.broadcast %cst_164 : f32 to vector<10x32xf32>
    %453 = tpu.concatenate %451, %452 in 0 : vector<22x32xf32>, vector<10x32xf32> -> vector<32x32xf32>
    %c1_i32_165 = arith.constant 1 : i32
    %454 = vector.broadcast %c1_i32_165 : i32 to vector<32x1xi32>
    %455 = arith.addi %4, %454 : vector<32x1xi32>
    %c0_i32_166 = arith.constant 0 : i32
    %456 = vector.broadcast %c0_i32_166 : i32 to vector<32x1xi32>
    %457 = arith.cmpi sge, %455, %456 : vector<32x1xi32>
    %c1_i32_167 = arith.constant 1 : i32
    %458 = vector.broadcast %c1_i32_167 : i32 to vector<32x1xi32>
    %459 = arith.addi %4, %458 : vector<32x1xi32>
    %c4_i32_168 = arith.constant 4 : i32
    %460 = vector.broadcast %c4_i32_168 : i32 to vector<32x1xi32>
    %461 = arith.cmpi slt, %459, %460 : vector<32x1xi32>
    %462 = arith.andi %457, %461 : vector<32x1xi1>
    %c1_i32_169 = arith.constant 1 : i32
    %463 = vector.broadcast %c1_i32_169 : i32 to vector<32x1xi32>
    %464 = arith.addi %6, %463 : vector<32x1xi32>
    %c0_i32_170 = arith.constant 0 : i32
    %465 = vector.broadcast %c0_i32_170 : i32 to vector<32x1xi32>
    %466 = arith.cmpi sge, %464, %465 : vector<32x1xi32>
    %467 = arith.andi %462, %466 : vector<32x1xi1>
    %c1_i32_171 = arith.constant 1 : i32
    %468 = vector.broadcast %c1_i32_171 : i32 to vector<32x1xi32>
    %469 = arith.addi %6, %468 : vector<32x1xi32>
    %c4_i32_172 = arith.constant 4 : i32
    %470 = vector.broadcast %c4_i32_172 : i32 to vector<32x1xi32>
    %471 = arith.cmpi slt, %469, %470 : vector<32x1xi32>
    %472 = arith.andi %467, %471 : vector<32x1xi1>
    %cst_173 = arith.constant 0.000000e+00 : f32
    %473 = vector.shape_cast %472 : vector<32x1xi1> to vector<32x1xi1>
    %474 = vector.broadcast %473 : vector<32x1xi1> to vector<32x32xi1>
    %475 = vector.broadcast %cst_173 : f32 to vector<32x32xf32>
    %476 = arith.select %474, %453, %475 : vector<32x32xi1>, vector<32x32xf32>
    %477 = tpu.concatenate %344, %372, %346, %398 in 1 : vector<32x32xf32>, vector<32x32xf32>, vector<32x32xf32>, vector<32x32xf32> -> vector<32x128xf32>
    %478 = tpu.concatenate %345, %346, %424, %450 in 1 : vector<32x32xf32>, vector<32x32xf32>, vector<32x32xf32>, vector<32x32xf32> -> vector<32x128xf32>
    %479 = tpu.concatenate %346, %398, %450, %476 in 1 : vector<32x32xf32>, vector<32x32xf32>, vector<32x32xf32>, vector<32x32xf32> -> vector<32x128xf32>
    %480 = arith.truncf %342 : vector<32x128xf32> to vector<32x128xbf16>
    %c0_174 = arith.constant 0 : index
    %c0_175 = arith.constant 0 : index
    %481 = vector.load %arg8[%c0_174, %c0_175] : memref<128x128xbf16, #tpu.memory_space<vmem>>, vector<128x128xbf16>
    %cst_176 = arith.constant dense<0.000000e+00> : vector<32x128xf32>
    %482 = tpu.matmul %480, %481, %cst_176 {dimension_numbers = #tpu.dot_dimension_numbers<[1], [0], [0], [1], [0, 0, 1, 1], [], []>} : vector<32x128xbf16>, vector<128x128xbf16>, vector<32x128xf32> -> vector<32x128xf32>
    %c0_177 = arith.constant 0 : index
    %c0_178 = arith.constant 0 : index
    %483 = vector.load %arg9[%c0_177, %c0_178] : memref<1x128xf32, #tpu.memory_space<vmem>>, vector<1x128xf32>
    %484 = vector.broadcast %483 : vector<1x128xf32> to vector<32x128xf32>
    %485 = arith.addf %482, %484 : vector<32x128xf32>
    %cst_179 = arith.constant 0.000000e+00 : f32
    %486 = vector.broadcast %cst_179 : f32 to vector<32x128xf32>
    %487 = arith.subf %486, %485 : vector<32x128xf32>
    %488 = math.exp %487 : vector<32x128xf32>
    %cst_180 = arith.constant 1.000000e+00 : f32
    %489 = vector.broadcast %cst_180 : f32 to vector<32x128xf32>
    %490 = arith.addf %489, %488 : vector<32x128xf32>
    %491 = tpu.reciprocal %490 {approx = true} : vector<32x128xf32> -> vector<32x128xf32>
    %492 = arith.truncf %491 : vector<32x128xf32> to vector<32x128xbf16>
    %c0_181 = arith.constant 0 : index
    %c0_182 = arith.constant 0 : index
    %c0_183 = arith.constant 0 : index
    %c0_184 = arith.constant 0 : index
    %493 = vector.load %arg10[%c0_181, %c0_182, %c0_183, %c0_184] : memref<1x4x32x128xbf16, #tpu.memory_space<vmem>>, vector<1x1x32x128xbf16>
    %494 = vector.shape_cast %493 : vector<1x1x32x128xbf16> to vector<32x128xbf16>
    %495 = vector.shape_cast %492 : vector<32x128xbf16> to vector<1x1x32x128xbf16>
    tpu.vector_store %arg10[%c0_181, %c0_182, %c0_183, %c0_184], %495 {strides = array<i32>} : memref<1x4x32x128xbf16, #tpu.memory_space<vmem>>, vector<1x1x32x128xbf16>,
    %496 = arith.truncf %477 : vector<32x128xf32> to vector<32x128xbf16>
    %c0_185 = arith.constant 0 : index
    %c0_186 = arith.constant 0 : index
    %497 = vector.load %arg8[%c0_185, %c0_186] : memref<128x128xbf16, #tpu.memory_space<vmem>>, vector<128x128xbf16>
    %cst_187 = arith.constant dense<0.000000e+00> : vector<32x128xf32>
    %498 = tpu.matmul %496, %497, %cst_187 {dimension_numbers = #tpu.dot_dimension_numbers<[1], [0], [0], [1], [0, 0, 1, 1], [], []>} : vector<32x128xbf16>, vector<128x128xbf16>, vector<32x128xf32> -> vector<32x128xf32>
    %c0_188 = arith.constant 0 : index
    %c0_189 = arith.constant 0 : index
    %499 = vector.load %arg9[%c0_188, %c0_189] : memref<1x128xf32, #tpu.memory_space<vmem>>, vector<1x128xf32>
    %500 = vector.broadcast %499 : vector<1x128xf32> to vector<32x128xf32>
    %501 = arith.addf %498, %500 : vector<32x128xf32>
    %cst_190 = arith.constant 0.000000e+00 : f32
    %502 = vector.broadcast %cst_190 : f32 to vector<32x128xf32>
    %503 = arith.subf %502, %501 : vector<32x128xf32>
    %504 = math.exp %503 : vector<32x128xf32>
    %cst_191 = arith.constant 1.000000e+00 : f32
    %505 = vector.broadcast %cst_191 : f32 to vector<32x128xf32>
    %506 = arith.addf %505, %504 : vector<32x128xf32>
    %507 = tpu.reciprocal %506 {approx = true} : vector<32x128xf32> -> vector<32x128xf32>
    %508 = arith.truncf %507 : vector<32x128xf32> to vector<32x128xbf16>
    %c0_192 = arith.constant 0 : index
    %c1 = arith.constant 1 : index
    %c0_193 = arith.constant 0 : index
    %c0_194 = arith.constant 0 : index
    %509 = vector.load %arg10[%c0_192, %c1, %c0_193, %c0_194] : memref<1x4x32x128xbf16, #tpu.memory_space<vmem>>, vector<1x1x32x128xbf16>
    %510 = vector.shape_cast %509 : vector<1x1x32x128xbf16> to vector<32x128xbf16>
    %511 = vector.shape_cast %508 : vector<32x128xbf16> to vector<1x1x32x128xbf16>
    tpu.vector_store %arg10[%c0_192, %c1, %c0_193, %c0_194], %511 {strides = array<i32>} : memref<1x4x32x128xbf16, #tpu.memory_space<vmem>>, vector<1x1x32x128xbf16>,
    %512 = arith.truncf %478 : vector<32x128xf32> to vector<32x128xbf16>
    %c0_195 = arith.constant 0 : index
    %c0_196 = arith.constant 0 : index
    %513 = vector.load %arg8[%c0_195, %c0_196] : memref<128x128xbf16, #tpu.memory_space<vmem>>, vector<128x128xbf16>
    %cst_197 = arith.constant dense<0.000000e+00> : vector<32x128xf32>
    %514 = tpu.matmul %512, %513, %cst_197 {dimension_numbers = #tpu.dot_dimension_numbers<[1], [0], [0], [1], [0, 0, 1, 1], [], []>} : vector<32x128xbf16>, vector<128x128xbf16>, vector<32x128xf32> -> vector<32x128xf32>
    %c0_198 = arith.constant 0 : index
    %c0_199 = arith.constant 0 : index
    %515 = vector.load %arg9[%c0_198, %c0_199] : memref<1x128xf32, #tpu.memory_space<vmem>>, vector<1x128xf32>
    %516 = vector.broadcast %515 : vector<1x128xf32> to vector<32x128xf32>
    %517 = arith.addf %514, %516 : vector<32x128xf32>
    %cst_200 = arith.constant 0.000000e+00 : f32
    %518 = vector.broadcast %cst_200 : f32 to vector<32x128xf32>
    %519 = arith.subf %518, %517 : vector<32x128xf32>
    %520 = math.exp %519 : vector<32x128xf32>
    %cst_201 = arith.constant 1.000000e+00 : f32
    %521 = vector.broadcast %cst_201 : f32 to vector<32x128xf32>
    %522 = arith.addf %521, %520 : vector<32x128xf32>
    %523 = tpu.reciprocal %522 {approx = true} : vector<32x128xf32> -> vector<32x128xf32>
    %524 = arith.truncf %523 : vector<32x128xf32> to vector<32x128xbf16>
    %c0_202 = arith.constant 0 : index
    %c2 = arith.constant 2 : index
    %c0_203 = arith.constant 0 : index
    %c0_204 = arith.constant 0 : index
    %525 = vector.load %arg10[%c0_202, %c2, %c0_203, %c0_204] : memref<1x4x32x128xbf16, #tpu.memory_space<vmem>>, vector<1x1x32x128xbf16>
    %526 = vector.shape_cast %525 : vector<1x1x32x128xbf16> to vector<32x128xbf16>
    %527 = vector.shape_cast %524 : vector<32x128xbf16> to vector<1x1x32x128xbf16>
    tpu.vector_store %arg10[%c0_202, %c2, %c0_203, %c0_204], %527 {strides = array<i32>} : memref<1x4x32x128xbf16, #tpu.memory_space<vmem>>, vector<1x1x32x128xbf16>,
    %528 = arith.truncf %479 : vector<32x128xf32> to vector<32x128xbf16>
    %c0_205 = arith.constant 0 : index
    %c0_206 = arith.constant 0 : index
    %529 = vector.load %arg8[%c0_205, %c0_206] : memref<128x128xbf16, #tpu.memory_space<vmem>>, vector<128x128xbf16>
    %cst_207 = arith.constant dense<0.000000e+00> : vector<32x128xf32>
    %530 = tpu.matmul %528, %529, %cst_207 {dimension_numbers = #tpu.dot_dimension_numbers<[1], [0], [0], [1], [0, 0, 1, 1], [], []>} : vector<32x128xbf16>, vector<128x128xbf16>, vector<32x128xf32> -> vector<32x128xf32>
    %c0_208 = arith.constant 0 : index
    %c0_209 = arith.constant 0 : index
    %531 = vector.load %arg9[%c0_208, %c0_209] : memref<1x128xf32, #tpu.memory_space<vmem>>, vector<1x128xf32>
    %532 = vector.broadcast %531 : vector<1x128xf32> to vector<32x128xf32>
    %533 = arith.addf %530, %532 : vector<32x128xf32>
    %cst_210 = arith.constant 0.000000e+00 : f32
    %534 = vector.broadcast %cst_210 : f32 to vector<32x128xf32>
    %535 = arith.subf %534, %533 : vector<32x128xf32>
    %536 = math.exp %535 : vector<32x128xf32>
    %cst_211 = arith.constant 1.000000e+00 : f32
    %537 = vector.broadcast %cst_211 : f32 to vector<32x128xf32>
    %538 = arith.addf %537, %536 : vector<32x128xf32>
    %539 = tpu.reciprocal %538 {approx = true} : vector<32x128xf32> -> vector<32x128xf32>
    %540 = arith.truncf %539 : vector<32x128xf32> to vector<32x128xbf16>
    %c0_212 = arith.constant 0 : index
    %c3 = arith.constant 3 : index
    %c0_213 = arith.constant 0 : index
    %c0_214 = arith.constant 0 : index
    %541 = vector.load %arg10[%c0_212, %c3, %c0_213, %c0_214] : memref<1x4x32x128xbf16, #tpu.memory_space<vmem>>, vector<1x1x32x128xbf16>
    %542 = vector.shape_cast %541 : vector<1x1x32x128xbf16> to vector<32x128xbf16>
    %543 = vector.shape_cast %540 : vector<32x128xbf16> to vector<1x1x32x128xbf16>
    tpu.vector_store %arg10[%c0_212, %c3, %c0_213, %c0_214], %543 {strides = array<i32>} : memref<1x4x32x128xbf16, #tpu.memory_space<vmem>>, vector<1x1x32x128xbf16>,
    return
  }
  func.func @transform_0(%arg0: i32) -> (i32, i32) {
    %c0_i32 = arith.constant 0 : i32
    %c0_i32_0 = arith.constant 0 : i32
    return %arg0, %c0_i32 : i32, i32
  }
  func.func @transform_1(%arg0: i32) -> (i32, i32) {
    %c0_i32 = arith.constant 0 : i32
    %c0_i32_0 = arith.constant 0 : i32
    %c0_i32_1 = arith.constant 0 : i32
    return %c0_i32, %c0_i32_0 : i32, i32
  }
  func.func @transform_2(%arg0: i32) -> (i32, i32) {
    %c0_i32 = arith.constant 0 : i32
    %c0_i32_0 = arith.constant 0 : i32
    %c0_i32_1 = arith.constant 0 : i32
    return %c0_i32, %c0_i32_0 : i32, i32
  }
  func.func @transform_3(%arg0: i32) -> (i32, i32) {
    %c0_i32 = arith.constant 0 : i32
    %c0_i32_0 = arith.constant 0 : i32
    %c0_i32_1 = arith.constant 0 : i32
    return %c0_i32, %c0_i32_0 : i32, i32
  }
  func.func @transform_4(%arg0: i32) -> (i32, i32) {
    %c0_i32 = arith.constant 0 : i32
    %c0_i32_0 = arith.constant 0 : i32
    %c0_i32_1 = arith.constant 0 : i32
    return %c0_i32, %c0_i32_0 : i32, i32
  }
  func.func @transform_5(%arg0: i32) -> (i32, i32) {
    %c0_i32 = arith.constant 0 : i32
    %c0_i32_0 = arith.constant 0 : i32
    %c0_i32_1 = arith.constant 0 : i32
    return %c0_i32, %c0_i32_0 : i32, i32
  }
  func.func @transform_6(%arg0: i32) -> (i32, i32) {
    %c0_i32 = arith.constant 0 : i32
    %c0_i32_0 = arith.constant 0 : i32
    %c0_i32_1 = arith.constant 0 : i32
    return %c0_i32, %c0_i32_0 : i32, i32
  }
  func.func @transform_7(%arg0: i32) -> (i32, i32) {
    %c0_i32 = arith.constant 0 : i32
    %c0_i32_0 = arith.constant 0 : i32
    %c0_i32_1 = arith.constant 0 : i32
    return %c0_i32, %c0_i32_0 : i32, i32
  }
  func.func @transform_8(%arg0: i32) -> (i32, i32) {
    %c0_i32 = arith.constant 0 : i32
    %c0_i32_0 = arith.constant 0 : i32
    %c0_i32_1 = arith.constant 0 : i32
    return %c0_i32, %c0_i32_0 : i32, i32
  }
  func.func @transform_9(%arg0: i32) -> (i32, i32, i32, i32) {
    %c0_i32 = arith.constant 0 : i32
    %c0_i32_0 = arith.constant 0 : i32
    %c0_i32_1 = arith.constant 0 : i32
    %c0_i32_2 = arith.constant 0 : i32
    return %arg0, %c0_i32, %c0_i32_0, %c0_i32_1 : i32, i32, i32, i32
  }
}

</mosaic_0001>

<bundles_post_ra>
// kernel: decoder_forward.1
= control target key start
LH: loop header
LB: loop body
LE: loop exit
PB: predicated region body
PF: predicated region fallthrough
CT: control target
= control target key end

     0   :  { %v3769_v3 = vmov 0   ;;  %vm5332_vm0 = vcmask 261120   ;;  %s3773_s28 = smov 96   ;;  %s3774_s12 = smov 32   ;;  %s5322_s1 = inlined_call_operand.vmem [shape: bf16[32,2048], index: 1, kind: input, shape index: {}]   ;;  %s5323_s0 = inlined_call_operand.vmem [shape: f32[2,32], index: 0, kind: input, shape index: {}]   ;;  %s5324_s3 = inlined_call_operand.vmem [shape: bf16[1152,64], index: 3, kind: input, shape index: {}]   ;;  %s5325_s2 = inlined_call_operand.vmem [shape: f32[1,2048], index: 2, kind: input, shape index: {}]   ;;  %s5326_s5 = inlined_call_operand.vmem [shape: bf16[256,128], index: 5, kind: input, shape index: {}]   ;;  %s5327_s4 = inlined_call_operand.vmem [shape: f32[1,64], index: 4, kind: input, shape index: {}]   ;;  %s5328_s7 = inlined_call_operand.vmem [shape: bf16[128,128], index: 7, kind: input, shape index: {}]   ;;  %s5329_s6 = inlined_call_operand.vmem [shape: f32[1,128], index: 6, kind: input, shape index: {}]   ;;  %s5330_s8 = inlined_call_operand.vmem [shape: f32[1,128], index: 8, kind: input, shape index: {}]   ;;  %s5331_s9 = inlined_call_operand.vmem [shape: bf16[1,4,32,128], index: 9, kind: output, shape index: {}]  }
   0x1   :  { %v52_v0 = vld [vmem:[%s5322_s1] sm:$0xff]  ;;  %v53_v2 = vld [vmem:[%s5322_s1 + $0x8] sm:$0xff]  ;;  %364 = vmatprep.mubr.bf16.mxu0 %v3769_v3  ;;  %405 = vmatprep.mubr.bf16.mxu1 %v3769_v3  ;;  %v54_v15 = vld [vmem:[%s5322_s1 + $0x10] sm:$0xff] }
   0x2   :  { %v60_v1 = vld [vmem:[%s5322_s1 + $0x40] sm:$0xff]  ;;  %v61_v5 = vld [vmem:[%s5322_s1 + $0x48] sm:$0xff]  ;;  %v62_v16 = vld [vmem:[%s5322_s1 + $0x50] sm:$0xff] }
   0x3   :  { %v2886_v4 = vcombine.high %v52_v0, %v60_v1  ;;  %v2885_v6 = vcombine.low %v52_v0, %v60_v1  ;;  %v68_v7 = vld [vmem:[%s5322_s1 + $0x80] sm:$0xff]  ;;  %v2888_v9 = vcombine.high %v53_v2, %v61_v5  ;;  %v2887_v10 = vcombine.low %v53_v2, %v61_v5  ;;  %v69_v12 = vld [vmem:[%s5322_s1 + $0x88] sm:$0xff]  ;;  %v55_v17 = vld [vmem:[%s5322_s1 + $0x18] sm:$0xff] }
   0x4   :  { %v76_v8 = vld [vmem:[%s5322_s1 + $0xc0] sm:$0xff]  ;;  %v77_v13 = vld [vmem:[%s5322_s1 + $0xc8] sm:$0xff]  ;;  %v63_v20 = vld [vmem:[%s5322_s1 + $0x58] sm:$0xff]  ;;  %v2890_v22 = vcombine.high %v54_v15, %v62_v16  ;;  %v2889_v29 = vcombine.low %v54_v15, %v62_v16 }
   0x5   :  { %v2902_v11 = vcombine.high %v68_v7, %v76_v8  ;;  %332 = vmatprep.subr.bf16.mxu0 %v2886_v4  ;;  %v2904_v14 = vcombine.high %v69_v12, %v77_v13  ;;  %373 = vmatprep.subr.bf16.mxu1 %v2888_v9  ;;  %v2901_v18 = vcombine.low %v68_v7, %v76_v8  ;;  %v50_v19 = vld [vmem:[%s5323_s0] sm:$0x3]  ;;  %v70_v24 = vld [vmem:[%s5322_s1 + $0x90] sm:$0xff]  ;;  %v71_v27 = vld [vmem:[%s5322_s1 + $0x98] sm:$0xff] }
   0x6   :  { %333 = vmatpush1.bf16.msra.mxu0 %v2885_v6  ;;  %374 = vmatpush1.bf16.msra.mxu1 %v2887_v10  ;;  %v2903_v21 = vcombine.low %v69_v12, %v77_v13  ;;  %v2892_v23 = vcombine.high %v55_v17, %v63_v20  ;;  %v78_v25 = vld [vmem:[%s5322_s1 + $0xd0] sm:$0xff]  ;;  %v3872_v26 = vpack.c.bf16 %v50_v19, %v50_v19  ;;  %v79_v28 = vld [vmem:[%s5322_s1 + $0xd8] sm:$0xff]  ;;  %v56_v33 = vld [vmem:[%s5322_s1 + $0x20] sm:$0xff] }
   0x7   :  { %334 = vmatprep.subr.bf16.mxu0 %v2902_v11  ;;  %375 = vmatprep.subr.bf16.mxu1 %v2904_v14  ;;  %v2891_v30 = vcombine.low %v55_v17, %v63_v20  ;;  %v2906_v31 = vcombine.high %v70_v24, %v78_v25  ;;  %v2908_v32 = vcombine.high %v71_v27, %v79_v28  ;;  %v64_v34 = vld [vmem:[%s5322_s1 + $0x60] sm:$0xff]  ;;  %v57_v35 = vld [vmem:[%s5322_s1 + $0x28] sm:$0xff]  ;;  %v58_v46 = vld [vmem:[%s5322_s1 + $0x30] sm:$0xff] }
   0x8   :  { %v65_v36 = vld [vmem:[%s5322_s1 + $0x68] sm:$0xff]  ;;  %v2905_v37 = vcombine.low %v70_v24, %v78_v25  ;;  %v72_v38 = vld [vmem:[%s5322_s1 + $0xa0] sm:$0xff]  ;;  %v2907_v39 = vcombine.low %v71_v27, %v79_v28  ;;  %v2894_v40 = vcombine.high %v56_v33, %v64_v34  ;;  %v2893_v45 = vcombine.low %v56_v33, %v64_v34  ;;  %v66_v49 = vld [vmem:[%s5322_s1 + $0x70] sm:$0xff] }
   0x9   :  { %v80_v41 = vld [vmem:[%s5322_s1 + $0xe0] sm:$0xff]  ;;  %v2896_v42 = vcombine.high %v57_v35, %v65_v36  ;;  %v73_v43 = vld [vmem:[%s5322_s1 + $0xa8] sm:$0xff]  ;;  %v2895_v47 = vcombine.low %v57_v35, %v65_v36  ;;  %v59_v51 = vld [vmem:[%s5322_s1 + $0x38] sm:$0xff]  ;;  %v2898_v56 = vcombine.high %v58_v46, %v66_v49  ;;  %v2897_v61 = vcombine.low %v58_v46, %v66_v49 }
   0xa   :  { %335 = vmatpush1.bf16.msra.mxu0 %v2901_v18  ;;  %376 = vmatpush1.bf16.msra.mxu1 %v2903_v21  ;;  %v81_v44 = vld [vmem:[%s5322_s1 + $0xe8] sm:$0xff]  ;;  %v2910_v48 = vcombine.high %v72_v38, %v80_v41  ;;  %v67_v52 = vld [vmem:[%s5322_s1 + $0x78] sm:$0xff]  ;;  %v2909_v53 = vcombine.low %v72_v38, %v80_v41  ;;  %v74_v54 = vld [vmem:[%s5322_s1 + $0xb0] sm:$0xff] }
   0xb   :  { %414 = vmatprep.subr.bf16.mxu0 %v2890_v22  ;;  %455 = vmatprep.subr.bf16.mxu1 %v2892_v23  ;;  %v2912_v50 = vcombine.high %v73_v43, %v81_v44  ;;  %v2911_v55 = vcombine.low %v73_v43, %v81_v44  ;;  %v82_v57 = vld [vmem:[%s5322_s1 + $0xf0] sm:$0xff]  ;;  %v2900_v58 = vcombine.high %v59_v51, %v67_v52  ;;  %v75_v59 = vld [vmem:[%s5322_s1 + $0xb8] sm:$0xff]  ;;  %v3585_v1 = vld [vmem:[%s5324_s3 + $0x40] sm:$0xff]  }
   0xc   :  { %v83_v60 = vld [vmem:[%s5322_s1 + $0xf8] sm:$0xff]  ;;  %v2899_v62 = vcombine.low %v59_v51, %v67_v52  ;;  %v2914_v63 = vcombine.high %v74_v54, %v82_v57  ;;  %v2913_v2 = vcombine.low %v74_v54, %v82_v57  ;;  %v3591_v4 = vld [vmem:[%s5324_s3 + $0xc0] sm:$0xff]   ;;  %v3587_v7 = vld [vmem:[%s5324_s3 + $0x48] sm:$0xff]  }
   0xd   :  { %2917 = vmatmul.mubr.msk.bf16.vlgmr.msra.gmra.mrb[0].mxu0 %vm5332_vm0, %v3872_v26  ;;  %2918 = vmatmul.mubr.msk.bf16.vlgmr.msra.gmra.mrb[0].mxu1 %vm5332_vm0, %v3872_v26  ;;  %v2916_v0 = vcombine.high %v75_v59, %v83_v60  ;;  %v2915_v5 = vcombine.low %v75_v59, %v83_v60  ;;  %v3586_v6 = vld [vmem:[%s5324_s3] sm:$0xff]   ;;  %v3595_v9 = vld [vmem:[%s5324_s3 + $0xc8] sm:$0xff]   ;;  %v3599_v12 = vld [vmem:[%s5324_s3 + $0xd0] sm:$0xff]  }
   0xe   :  { %415 = vmatpush1.bf16.msra.mxu0 %v2889_v29  ;;  %456 = vmatpush1.bf16.msra.mxu1 %v2891_v30  ;;  %v3592_v8 = vld [vmem:[%s5324_s3 + $0x80] sm:$0xff]   ;;  %v3588_v10 = vld [vmem:[%s5324_s3 + $0x8] sm:$0xff]   ;;  %v3590_v13 = vld [vmem:[%s5324_s3 + $0x10] sm:$0xff]  }
   0xf   :  { %416 = vmatprep.subr.bf16.mxu0 %v2906_v31  ;;  %457 = vmatprep.subr.bf16.mxu1 %v2908_v32  ;;  %v3596_v11 = vld [vmem:[%s5324_s3 + $0x88] sm:$0xff]   ;;  %v3593_v14 = vld [vmem:[%s5324_s3 + $0x58] sm:$0xff]   ;;  %v3600_v15 = vld [vmem:[%s5324_s3 + $0x90] sm:$0xff]  }
  0x10   :  { %446 = vmatprep.mubr.bf16.mxu0 %v3769_v3  ;;  %487 = vmatprep.mubr.bf16.mxu1 %v3769_v3  ;;  %v3594_v16 = vld [vmem:[%s5324_s3 + $0x18] sm:$0xff]   ;;  %v3597_v17 = vld [vmem:[%s5324_s3 + $0x60] sm:$0xff]   ;;  %v3601_v19 = vld [vmem:[%s5324_s3 + $0x68] sm:$0xff]  }
  0x11   :  { %v3598_v18 = vld [vmem:[%s5324_s3 + $0x20] sm:$0xff]   ;;  %v3602_v20 = vld [vmem:[%s5324_s3 + $0x28] sm:$0xff]   ;;  %v3603_v21 = vld [vmem:[%s5324_s3 + $0xd8] sm:$0xff]  }
  0x12   :  { %417 = vmatpush1.bf16.msra.mxu0 %v2905_v37  ;;  %458 = vmatpush1.bf16.msra.mxu1 %v2907_v39  ;;  %v3604_v22 = vld [vmem:[%s5324_s3 + $0x98] sm:$0xff]   ;;  %v3605_v23 = vld [vmem:[%s5324_s3 + $0x70] sm:$0xff]   ;;  %v3607_v25 = vld [vmem:[%s5324_s3 + $0xe0] sm:$0xff]   ;;  %v33_v37 = vlaneseq }
  0x13   :  { %496 = vmatprep.subr.bf16.mxu0 %v2894_v40  ;;  %537 = vmatprep.subr.bf16.mxu1 %v2896_v42  ;;  %v3606_v24 = vld [vmem:[%s5324_s3 + $0x30] sm:$0xff]   ;;  %v3609_v27 = vld [vmem:[%s5324_s3 + $0x78] sm:$0xff]   ;;  %v3611_v29 = vld [vmem:[%s5324_s3 + $0xe8] sm:$0xff]  }
  0x14   :  { %v3610_v28 = vld [vmem:[%s5324_s3 + $0x38] sm:$0xff]   ;;  %v3612_v30 = vld [vmem:[%s5324_s3 + $0xa8] sm:$0xff]   ;;  %v3613_v31 = vld [vmem:[%s5324_s3 + $0x140] sm:$0xff]   ;;  %v4052_v38 = vshrl.u32 %v33_v37, 7  ;;  %v5405_v37 = vmov 0 }
  0x15   :  { %2919 = vmatmul.mubr.msk.bf16.vlgmr.msra.gmra.mrb[4].mxu0 %vm5332_vm0, %v3872_v26  ;;  %2920 = vmatmul.mubr.msk.bf16.vlgmr.msra.gmra.mrb[4].mxu1 %vm5332_vm0, %v3872_v26  ;;  %v3614_v32 = vld [vmem:[%s5324_s3 + $0xf0] sm:$0xff]   ;;  %v3618_v34 = vld [vmem:[%s5324_s3 + $0xf8] sm:$0xff]   ;;  %v3623_v36 = vld [vmem:[%s5324_s3 + $0x1c0] sm:$0xff]  }
  0x16   :  { %497 = vmatpush1.bf16.msra.mxu0 %v2893_v45  ;;  %538 = vmatpush1.bf16.msra.mxu1 %v2895_v47  ;;  %v3616_v33 = vld [vmem:[%s5324_s3 + $0xb0] sm:$0xff]   ;;  %v3620_v35 = vld [vmem:[%s5324_s3 + $0xb8] sm:$0xff]   ;;  %v35_v39 = vadd.s32 8, %v4052_v38  ;;  %v38_v43 = vshra.s32 %v4052_v38, 1  ;;  %v36_v45 = vadd.s32 16, %v4052_v38  ;;  %v37_v49 = vadd.s32 24, %v4052_v38 }
  0x17   :  { %498 = vmatprep.subr.bf16.mxu0 %v2910_v48  ;;  %539 = vmatprep.subr.bf16.mxu1 %v2912_v50  ;;  %v90_v57 = vsub.s32 0, %v4052_v38  ;;  %v4107_v60 = vld [vmem:[%s5325_s2] sm:$0xff]  ;;  %v5411_v47 = vmov 0 }
  0x18   :  { %528 = vmatprep.mubr.bf16.mxu0 %v3769_v3  ;;  %569 = vmatprep.mubr.bf16.mxu1 %v3769_v3  ;;  %v39_v40 = vshra.s32 %v35_v39, 1  ;;  %v4062_v46 = vand.u32 3, %v38_v43  ;;  %v4069_v48 = vshra.s32 %v38_v43, 2  ;;  %v40_v51 = vshra.s32 %v36_v45, 1 }
  0x19   :  { %v5408_v39 = vmov 0 }
  0x1a   :  { %499 = vmatpush1.bf16.msra.mxu0 %v2909_v53  ;;  %540 = vmatpush1.bf16.msra.mxu1 %v2911_v55  ;;  %v4055_v41 = vshra.s32 %v39_v40, 2  ;;  %v4059_v44 = vand.u32 3, %v39_v40  ;;  %v4081_v52 = vadd.s32 4294967295, %v4062_v46  ;;  %vm843_vm7 = vcmp.ge.s32.totalorder %v4069_v48, 0 }
  0x1b   :  { %578 = vmatprep.subr.bf16.mxu0 %v2898_v56  ;;  %619 = vmatprep.subr.bf16.mxu1 %v2900_v58  ;;  %vm847_vm8 = vcmp.lt.s32.totalorder %v4069_v48, 4  ;;  %v41_v53 = vshra.s32 %v37_v49, 1  ;;  %v723_v54 = vadd.s32 4294967295, %v4069_v48  ;;  %v4095_v56 = vshra.s32 %v40_v51, 2 }
  0x1c   :  { %v724_v42 = vadd.s32 4294967295, %v4055_v41  ;;  %vm5334_vm4 = vcmp.ge.s32.totalorder %v4059_v44, 0  ;;  %v4073_v50 = vadd.s32 4294967295, %v4059_v44  ;;  %vm5333_vm6 = vcmp.lt.s32.totalorder %v4059_v44, 4  ;;  %vm4100_vm14 = vmand %vm843_vm7, %vm847_vm8 }
  0x1d   :  { %2921 = vmatmul.mubr.msk.bf16.vlgmr.msra.gmra.mrb[8].mxu0 %vm5332_vm0, %v3872_v26  ;;  %2922 = vmatmul.mubr.msk.bf16.vlgmr.msra.gmra.mrb[8].mxu1 %vm5332_vm0, %v3872_v26  ;;  %vm844_vm9 = vcmp.ge.s32.totalorder %v4055_v41, 0  ;;  %vm848_vm10 = vcmp.lt.s32.totalorder %v4055_v41, 4  ;;  %v94_v58 = vsub.s32 1, %v4052_v38  ;;  %vm5336_vm13 = vcmp.ge.s32.totalorder %v4081_v52, 0 }
  0x1e   :  { %579 = vmatpush1.bf16.msra.mxu0 %v2897_v61  ;;  %620 = vmatpush1.bf16.msra.mxu1 %v2899_v62  ;;  %vm728_vm1 = vcmp.ge.s32.totalorder %v724_v42, 0  ;;  %vm732_vm2 = vcmp.lt.s32.totalorder %v724_v42, 4  ;;  %vm5335_vm12 = vcmp.ge.s32.totalorder %v4073_v50, 0  ;;  %v98_v61 = vsub.s32 2, %v4052_v38  ;;  %vm4110_vm15 = vmand %vm844_vm9, %vm848_vm10 }
  0x1f   :  { %580 = vmatprep.subr.bf16.mxu0 %v2914_v63  ;;  %621 = vmatprep.subr.bf16.mxu1 %v2916_v0  ;;  %vm4064_vm3 = vmand %vm728_vm1, %vm732_vm2  ;;  %v5376_v62 = vmov 0  ;;  %v4115_v63 = vadd.s32 1, %v4062_v46  ;;  %v4117_v0 = vshra.s32 %v41_v53, 2  ;;  %vm727_vm2 = vcmp.ge.s32.totalorder %v723_v54, 0 }
  0x20   :  { %610 = vmatprep.mubr.bf16.mxu0 %v3769_v3  ;;  %651 = vmatprep.mubr.bf16.mxu1 %v3769_v3  ;;  %v3589_v3 = vld [vmem:[%s5324_s3 + $0x50] sm:$0xff]   ;;  %vm772_vm5 = vmand %vm4064_vm3, %vm5334_vm4  ;;  %v5377_v62 = vsel %vm4110_vm15, 4294967295, %v5376_v62  ;;  %vm5337_vm8 = vcmp.lt.s32.totalorder %v4073_v50, 4  ;;  %vm5338_vm4 = vmmov 1   ;;  %vm5393_vm10 = vcmp.lt.s32.totalorder %v4073_v50, 4 }
  0x21   :  { %vm4090_vm11 = vmand %vm772_vm5, %vm5333_vm6  ;;  %vm731_vm5 = vcmp.lt.s32.totalorder %v723_v54, 4 }
  0x22   :  { %581 = vmatpush1.bf16.msra.mxu0 %v2913_v2  ;;  %622 = vmatpush1.bf16.msra.mxu1 %v2915_v5  ;;  %vm4124_vm1 = vmand %vm4064_vm3, %vm5335_vm12 }
  0x23   :  { %3194 = vmatprep.subr.bf16.mxu0 %v3585_v1  ;;  %3222 = vmatprep.subr.bf16.mxu1 %v3591_v4  ;;  %v102_v1 = vsub.s32 3, %v4052_v38  ;;  %v4129_v4 = vadd.s32 1, %v4059_v44  ;;  %vm4135_vm7 = vmand %vm4100_vm14, %vm5336_vm13 }
  0x24   :  { %vm4151_vm9 = vmand %vm4110_vm15, %vm5335_vm12 }
  0x25   :  { %2923 = vmatmul.mubr.msk.bf16.vlgmr.msra.gmra.mrb[12].mxu0 %vm5332_vm0, %v3872_v26  ;;  %2924 = vmatmul.mubr.msk.bf16.vlgmr.msra.gmra.mrb[12].mxu1 %vm5332_vm0, %v3872_v26  ;;  %v3608_v26 = vld [vmem:[%s5324_s3 + $0xa0] sm:$0xff]   ;;  %vm4156_vm0 = vmand %vm727_vm2, %vm731_vm5 }
  0x26   :  { %3195 = vmatpush3.bf16.msra.mxu0 %v3586_v6  ;;  %3223 = vmatpush3.bf16.msra.mxu1 %v3592_v8  ;;  %v725_v6 = vadd.s32 4294967295, %v4095_v56  ;;  %v95_v8 = vrot.slane %v4107_v60, %v94_v58  ;;  %vm4175_vm5 = vmand %vm4124_vm1, %vm5337_vm8  ;;  %vm5390_vm1 = vcmp.lt.s32.totalorder %v4081_v52, 4 }
  0x27   :  { %3196 = vmatprep.subr.bf16.mxu0 %v3587_v7  ;;  %3224 = vmatprep.subr.bf16.mxu1 %v3595_v9  ;;  %v91_v7 = vrot.slane %v4107_v60, %v90_v57  ;;  %vm4185_vm2 = vmpackc.low %vm4090_vm11, %vm5338_vm4  ;;  %vm5396_vm11 = vcmp.ge.s32.totalorder %v4115_v63, 0 }
  0x28   :  { %vm729_vm12 = vcmp.ge.s32.totalorder %v725_v6, 0  ;;  %vm733_vm13 = vcmp.lt.s32.totalorder %v725_v6, 4  ;;  %vm4193_vm8 = vmand %vm4135_vm7, %vm5390_vm1 }
  0x29   :  { %vm4201_vm6 = vmand %vm4151_vm9, %vm5393_vm10  ;;  %vm5399_vm9 = vcmp.ge.s32.totalorder %v4129_v4, 0 }
  0x2a   :  { %3197 = vmatpush3.bf16.msra.mxu0 %v3588_v10  ;;  %3225 = vmatpush3.bf16.msra.mxu1 %v3596_v11  ;;  %v99_v11 = vrot.slane %v4107_v60, %v98_v61  ;;  %vm4209_vm4 = vmand %vm4156_vm0, %vm5396_vm11 }
  0x2b   :  { %3198 = vmatprep.subr.bf16.mxu0 %v3589_v3  ;;  %3226 = vmatprep.subr.bf16.mxu1 %v3599_v12  ;;  %v726_v3 = vadd.s32 4294967295, %v4117_v0  ;;  %v103_v12 = vrot.slane %v4107_v60, %v102_v1  ;;  %vm4220_vm10 = vmand %vm4064_vm3, %vm5399_vm9  ;;  %vm5404_vm3 = vmmov 1  }
  0x2c   :  { %vm4226_vm11 = vmand %vm729_vm12, %vm733_vm13  ;;  %vm5341_vm12 = vcmp.lt.s32.totalorder %v4129_v4, 4  ;;  %vm5407_vm13 = vcmp.lt.s32.totalorder %v4115_v63, 4 }
  0x2d   :  { %vm734_vm1 = vcmp.lt.s32.totalorder %v726_v3, 4  ;;  %vm4238_vm9 = vmpackc.low %vm4175_vm5, %vm5404_vm3  ;;  %vm5410_vm5 = vcmp.ge.s32.totalorder %v726_v3, 0  ;;  %v5422_v3 = vmov 0 }
  0x2e   :  { %3199 = vmatpush3.bf16.msra.mxu0 %v3590_v13  ;;  %3227 = vmatpush3.bf16.msra.mxu1 %v3600_v15  ;;  %v4169_v13 = vand.u32 3, %v40_v51  ;;  %v4179_v15 = vand.u32 3, %v41_v53  ;;  %v5406_v37 = vsel %vm4238_vm9, 4294967295, %v5405_v37  ;;  %vm4247_vm7 = vmand %vm4209_vm4, %vm5407_vm13  ;;  %vm5417_vm9 = vcmask 1043456  }
  0x2f   :  { %3200 = vmatprep.subr.bf16.mxu0 %v3593_v14  ;;  %3228 = vmatprep.subr.bf16.mxu1 %v3603_v21  ;;  %v5409_v39 = vsel %vm4247_vm7, 4294967295, %v5408_v39  ;;  %vm4254_vm3 = vmand %vm5410_vm5, %vm734_vm1  ;;  %vm5414_vm5 = vcmask 1041408   ;;  %v3771_v14 = vmov 0.0   ;;  %v4314_v21 = vld [vmem:[%s5325_s2 + $0x8] sm:$0xff] }
  0x30   :  { %v5412_v47 = vsel %vm4254_vm3, 4294967295, %v5411_v47  ;;  %v4259_v49 = vadd.s32 4294967295, %v4179_v15  ;;  %vm5413_vm4 = vcmp.ge.s32.totalorder %v4169_v13, 0  ;;  %vm5342_vm13 = vcmp.lt.s32.totalorder %v4169_v13, 4  ;;  %vm4280_vm0 = vmand %vm4220_vm10, %vm5341_vm12 }
  0x31   :  { %vm773_vm1 = vmand %vm4226_vm11, %vm5413_vm4  ;;  %vm5418_vm4 = vcmp.ge.s32.totalorder %v4179_v15, 0  ;;  %vm778_vm10 = vcmp.lt.s32.totalorder %v4179_v15, 4  ;;  %vm5421_vm12 = vcmask 1045504  }
  0x32   :  { %3201 = vmatpush3.bf16.msra.mxu0 %v3594_v16  ;;  %3229 = vmatpush3.bf16.msra.mxu1 %v3604_v22  ;;  %vm5343_vm15 = vcmp.ge.s32.totalorder %v4259_v49, 0 }
  0x33   :  { %3202 = vmatprep.subr.bf16.mxu0 %v3597_v17  ;;  %3230 = vmatprep.subr.bf16.mxu1 %v3607_v25  ;;  %v110_v17 = vsub.s32 5, %v4052_v38  ;;  %v114_v25 = vsub.s32 6, %v4052_v38 }
  0x35   :  { %v111_v53 = vrot.slane %v4107_v60, %v110_v17  ;;  %v115_v54 = vrot.slane %v4107_v60, %v114_v25 }
  0x36   :  { %3203 = vmatpush3.bf16.msra.mxu0 %v3598_v18  ;;  %3231 = vmatpush3.bf16.msra.mxu1 %v3608_v26 }
  0x37   :  { %3204 = vmatprep.subr.bf16.mxu0 %v3601_v19  ;;  %3232 = vmatprep.subr.bf16.mxu1 %v3611_v29  ;;  %v3633_v19 = vld [vmem:[%s5324_s3 + $0x168] sm:$0xff]  }
  0x3a   :  { %3205 = vmatpush3.bf16.msra.mxu0 %v3602_v20  ;;  %3233 = vmatpush3.bf16.msra.mxu1 %v3612_v30 }
  0x3b   :  { %3206 = vmatprep.subr.bf16.mxu0 %v3605_v23  ;;  %3234 = vmatprep.subr.bf16.mxu1 %v3614_v32  ;;  %v4232_v32 = vadd.s32 4294967295, %v4169_v13 }
  0x3e   :  { %3207 = vmatpush3.bf16.msra.mxu0 %v3606_v24  ;;  %3235 = vmatpush3.bf16.msra.mxu1 %v3616_v33  ;;  %v106_v24 = vsub.s32 4, %v4052_v38 }
  0x3f   :  { %3208 = vmatprep.subr.bf16.mxu0 %v3609_v27  ;;  %3236 = vmatprep.subr.bf16.mxu1 %v3618_v34 }
  0x40   :  { %v107_v2 = vrot.slane %v4107_v60, %v106_v24 }
  0x42   :  { %3209 = vmatpush3.bf16.msra.mxu0 %v3610_v28  ;;  %3237 = vmatpush3.bf16.msra.mxu1 %v3620_v35 }
  0x43   :  { %3250 = vmatprep.subr.bf16.mxu0 %v3613_v31  ;;  %3278 = vmatprep.subr.bf16.mxu1 %v3623_v36  ;;  %v5402_v31 = vmov 0  ;;  %v118_v36 = vsub.s32 7, %v4052_v38  ;;  %v3628_v38 = vld [vmem:[%s5324_s3 + $0x188] sm:$0xff]  }
  0x44   :  { %v5403_v31 = vsel %vm4226_vm11, 4294967295, %v5402_v31 }
  0xe0   :  { %v366_v16 = vpop.f32.mrb[0].mxu0  ;;  %v407_v22 = vpop.f32.mrb[0].mxu1 }
  0xe1   :  { %v368_v23 = vpop.f32.mrb[1].mxu0  ;;  %v408_v27 = vadd.f32 %v407_v22, %v99_v11  ;;  %v409_v29 = vpop.f32.mrb[1].mxu1  ;;  %v367_v40 = vadd.f32 %v366_v16, %v91_v7  ;;  %v119_v7 = vrot.slane %v4107_v60, %v118_v36  ;;  %v905_v22 = vadd.s32 1, %v4069_v48 }
  0xe2   :  { %v369_v28 = vadd.f32 %v368_v23, %v95_v8  ;;  %v370_v30 = vpop.f32.mrb[2].mxu0  ;;  %v410_v33 = vadd.f32 %v409_v29, %v103_v12  ;;  %v411_v34 = vpop.f32.mrb[2].mxu1  ;;  %v3621_v23 = vld [vmem:[%s5324_s3 + $0x150] sm:$0xff]  }
  0xe3   :  { %v371_v35 = vpop.f32.mrb[3].mxu0  ;;  %v664_v42 = vrot.slane %v408_v27, 4  ;;  %v412_v45 = vpop.f32.mrb[3].mxu1 }
  0xe4   :  { %v661_v43 = vrot.slane %v369_v28, 6  ;;  %v667_v51 = vrot.slane %v410_v33, 2  ;;  %v123_v33 = vrot.slane %v4314_v21, %v90_v57  ;;  %v3615_v57 = vld [vmem:[%s5324_s3 + $0x100] sm:$0xff]  }
  0xe6   :  { %v697_v55 = vsel %vm5414_vm5, %v367_v40, %v661_v43  ;;  %vm4293_vm5 = vmand %vm4254_vm3, %vm5418_vm4  ;;  %vm5344_vm4 = vcmp.lt.s32.totalorder %v4232_v32, 4  ;;  %v906_v43 = vadd.s32 1, %v4055_v41 }
  0xe7   :  { %v699_v6 = vsel %vm5417_vm9, %v697_v55, %v664_v42  ;;  %vm4303_vm9 = vmand %vm773_vm1, %vm5342_vm13  ;;  %v3617_v55 = vld [vmem:[%s5324_s3 + $0x148] sm:$0xff]  }
  0xe8   :  { %v4299_v9 = vsel %vm5421_vm12, %v699_v6, %v667_v51  ;;  %v448_v10 = vpop.f32.mrb[4].mxu0  ;;  %v5423_v3 = vsel %vm4303_vm9, 4294967295, %v5422_v3  ;;  %v489_v12 = vpop.f32.mrb[4].mxu1  ;;  %vm5424_vm12 = vcmp.ge.s32.totalorder %v4232_v32, 0  ;;  %vm4333_vm13 = vmand %vm4293_vm5, %vm778_vm10  ;;  %vm5447_vm5 = vcmask 1045504  }
  0xe9   :  { %v714_v60 = vrot.slane %v4299_v9, 6  ;;  %v450_v11 = vpop.f32.mrb[5].mxu0  ;;  %v2999_v16 = vpack.c.bf16 %v4299_v9, %v3771_v14  ;;  %vm4321_vm1 = vmand %vm4226_vm11, %vm5424_vm12  ;;  %v449_v26 = vadd.f32 %v448_v10, %v107_v2  ;;  %v490_v28 = vadd.f32 %v489_v12, %v115_v54  ;;  %v491_v29 = vpop.f32.mrb[5].mxu1 }
  0xea   :  { %v451_v27 = vadd.f32 %v450_v11, %v111_v53  ;;  %v452_v30 = vpop.f32.mrb[6].mxu0  ;;  %vm5429_vm12 = vcmask 1041408   ;;  %v492_v35 = vadd.f32 %v491_v29, %v119_v7  ;;  %v493_v42 = vpop.f32.mrb[6].mxu1  ;;  %vm4356_vm10 = vmand %vm4254_vm3, %vm5343_vm15  ;;  %v127_v54 = vrot.slane %v4314_v21, %v94_v58 }
  0xeb   :  { %v4340_v34 = vsel %vm5429_vm12, 0.0, %v714_v60  ;;  %3000 = vmatprep.mubr.msk.bf16.mxu0 %vm4185_vm2, %v2999_v16  ;;  %v453_v40 = vpop.f32.mrb[7].mxu0  ;;  %v673_v51 = vrot.slane %v490_v28, 4  ;;  %v494_v53 = vpop.f32.mrb[7].mxu1  ;;  %vm4377_vm15 = vmand %vm4321_vm1, %vm5344_vm4  ;;  %v5432_v2 = vmov 0  ;;  %v131_v58 = vrot.slane %v4314_v21, %v98_v61 }
  0xec   :  { %v670_v45 = vrot.slane %v451_v27, 6  ;;  %v3002_v41 = vpack.c.bf16 %v4340_v34, %v3771_v14  ;;  %v5433_v2 = vsel %vm4377_vm15, 4294967295, %v5432_v2  ;;  %v676_v6 = vrot.slane %v492_v35, 2 }
  0xed   :  { %v135_v7 = vrot.slane %v4314_v21, %v102_v1  ;;  %vm5434_vm12 = vcmp.ge.s32.totalorder %v4115_v63, 0  ;;  %vm5437_vm1 = vcmask 1041408   ;;  %vm5438_vm4 = vnez %v5406_v37  ;;  %v3619_v37 = vld [vmem:[%s5324_s3 + $0x108] sm:$0xff]  }
  0xee   :  { %vm4391_vm2 = vmand %vm4100_vm14, %vm5434_vm12  ;;  %v702_v10 = vsel %vm5437_vm1, %v449_v26, %v670_v45  ;;  %3003 = vmatmul.mubr.msk.bf16.vlgmr.msra.gmra.mrb[16].mxu0 %vm5438_vm4, %v3002_v41  ;;  %vm5439_vm11 = vcmp.lt.s32.totalorder %v4259_v49, 4  ;;  %v794_v59 = vrot.slane %v4299_v9, 2  ;;  %vm5442_vm12 = vcmask 1043456  }
  0xef   :  { %vm4402_vm7 = vmand %vm4356_vm10, %vm5439_vm11  ;;  %v703_v1 = vsel %vm5442_vm12, %v702_v10, %v673_v51  ;;  %3251 = vmatpush3.bf16.msra.mxu0 %v3615_v57  ;;  %vm5443_vm11 = vcmp.ge.s32.totalorder %v4129_v4, 0  ;;  %vm5444_vm10 = vnez %v5377_v62  ;;  %vm5448_vm4 = vcmp.lt.s32.totalorder %v4115_v63, 4 }
  0xf0   :  { %vm4417_vm3 = vmand %vm5444_vm10, %vm5443_vm11  ;;  %v4422_v12 = vsel %vm5447_vm5, %v703_v1, %v676_v6  ;;  %v530_v16 = vpop.f32.mrb[8].mxu0  ;;  %3252 = vmatprep.subr.bf16.mxu0 %v3617_v55  ;;  %v5449_v62 = vmov 0  ;;  %v571_v30 = vpop.f32.mrb[8].mxu1  ;;  %vm5451_vm12 = vcmp.lt.s32.totalorder %v905_v22, 4  ;;  %vm5452_vm1 = vcmp.ge.s32.totalorder %v905_v22, 0  ;;  %v3622_v6 = vld [vmem:[%s5324_s3 + $0x110] sm:$0xff]  }
  0xf1   :  { %vm4435_vm11 = vmand %vm4391_vm2, %vm5448_vm4  ;;  %v715_v26 = vrot.slane %v4422_v12, 6  ;;  %v795_v27 = vrot.slane %v4422_v12, 2  ;;  %v877_v28 = vpack.c.bf16 %v4422_v12, %v4299_v9  ;;  %v532_v29 = vpop.f32.mrb[9].mxu0  ;;  %v5453_v35 = vmov 0  ;;  %v573_v51 = vpop.f32.mrb[9].mxu1  ;;  %v3651_v9 = vld [vmem:[%s5324_s3 + $0x210] sm:$0xff]  }
  0xf2   :  { %v5450_v62 = vsel %vm4435_vm11, 4294967295, %v5449_v62  ;;  %vm4447_vm14 = vmand %vm5452_vm1, %vm5451_vm12  ;;  %vm5455_vm2 = vcmp.lt.s32.totalorder %v4095_v56, 4  ;;  %vm5456_vm4 = vcmp.ge.s32.totalorder %v4095_v56, 0  ;;  %v5457_v57 = vmov 0  ;;  %v534_v22 = vpop.f32.mrb[10].mxu0  ;;  %v575_v8 = vpop.f32.mrb[10].mxu1 }
  0xf3   :  { %v5454_v35 = vsel %vm4447_vm14, 4294967295, %v5453_v35  ;;  %vm4455_vm5 = vmand %vm5456_vm4, %vm5455_vm2  ;;  %v4460_v40 = vadd.s32 1, %v4169_v13  ;;  %v531_v42 = vadd.f32 %v530_v16, %v123_v33  ;;  %v533_v18 = vadd.f32 %v532_v29, %v127_v54  ;;  %3253 = vmatpush3.bf16.msra.mxu0 %v3619_v37  ;;  %v3624_v37 = vld [vmem:[%s5324_s3 + $0x180] sm:$0xff]   ;;  %v576_v11 = vpop.f32.mrb[11].mxu1  ;;  %v3625_v16 = vld [vmem:[%s5324_s3 + $0x158] sm:$0xff]  }
  0xf4   :  { %v5458_v57 = vsel %vm4455_vm5, 4294967295, %v5457_v57  ;;  %v572_v45 = vadd.f32 %v571_v30, %v131_v58  ;;  %vm5459_vm1 = vcmp.lt.s32.totalorder %v906_v43, 4  ;;  %vm5460_vm12 = vcmp.ge.s32.totalorder %v906_v43, 0  ;;  %v535_v58 = vpop.f32.mrb[11].mxu0  ;;  %3254 = vmatprep.subr.bf16.mxu0 %v3621_v23  ;;  %v3627_v29 = vld [vmem:[%s5324_s3 + $0x1c8] sm:$0xff]  }
  0xf5   :  { %vm4464_vm10 = vmand %vm5460_vm12, %vm5459_vm1  ;;  %v5461_v41 = vmov 0  ;;  %vm5463_vm9 = vcmp.lt.s32.totalorder %v4129_v4, 4  ;;  %v5464_v53 = vmov 0  ;;  %v4477_v33 = vadd.s32 1, %v4179_v15  ;;  %v3645_v58 = vld [vmem:[%s5324_s3 + $0x200] sm:$0xff]  }
  0xf6   :  { %v5462_v41 = vsel %vm4464_vm10, 4294967295, %v5461_v41  ;;  %vm4472_vm2 = vmand %vm4417_vm3, %vm5463_vm9  ;;  %vm5466_vm4 = vcmask 1045504   ;;  %v574_v55 = vadd.f32 %v573_v51, %v135_v7  ;;  %vm5467_vm1 = vcmask 1041408  }
  0xf7   :  { %v5465_v53 = vsel %vm4472_vm2, 4294967295, %v5464_v53  ;;  %v805_v54 = vsel %vm5466_vm4, 0.0, %v794_v59  ;;  %v4485_v43 = vsel %vm5467_vm1, %v714_v60, %v715_v26  ;;  %vm5468_vm3 = vmmov %vm5466_vm4  ;;  %vm5469_vm12 = vcmp.lt.s32.totalorder %v4117_v0, 4  ;;  %3255 = vmatpush3.bf16.msra.mxu0 %v3622_v6 }
  0xf8   :  { %v4493_v15 = vsel %vm5468_vm3, %v794_v59, %v795_v27  ;;  %vm5470_vm4 = vcmp.ge.s32.totalorder %v4117_v0, 0  ;;  %v5471_v60 = vmov 0  ;;  %v679_v7 = vrot.slane %v533_v18, 6  ;;  %v612_v5 = vpop.f32.mrb[12].mxu0  ;;  %3256 = vmatprep.subr.bf16.mxu0 %v3625_v16 }
  0xf9   :  { %vm4503_vm1 = vmand %vm5470_vm4, %vm5469_vm12  ;;  %v682_v10 = vrot.slane %v572_v45, 4  ;;  %v3011_v59 = vpack.c.bf16 %v4485_v43, %v4340_v34  ;;  %v3014_v1 = vpack.c.bf16 %v4493_v15, %v805_v54  ;;  %vm5473_vm3 = vcmp.ge.s32.totalorder %v4232_v32, 0  ;;  %v614_v54 = vpop.f32.mrb[13].mxu0 }
  0xfa   :  { %v5472_v60 = vsel %vm4503_vm1, 4294967295, %v5471_v60  ;;  %vm4520_vm12 = vmand %vm4455_vm5, %vm5473_vm3  ;;  %v685_v34 = vrot.slane %v574_v55, 2  ;;  %vm5476_vm15 = vcmask 1041408   ;;  %v139_v18 = vrot.slane %v4314_v21, %v106_v24  ;;  %v653_v55 = vpop.f32.mrb[12].mxu1  ;;  %v616_v11 = vpop.f32.mrb[14].mxu0 }
  0xfb   :  { %v705_v30 = vsel %vm5476_vm15, %v531_v42, %v679_v7  ;;  %vm5477_vm3 = vmpackc.low %vm4201_vm6, %vm4193_vm8  ;;  %v143_v45 = vrot.slane %v4314_v21, %v110_v17  ;;  %v147_v51 = vrot.slane %v4314_v21, %v114_v25  ;;  %vm5478_vm15 = vcmp.ge.s32.totalorder %v4259_v49, 0  ;;  %v3626_v17 = vld [vmem:[%s5324_s3 + $0x118] sm:$0xff]   ;;  %v3644_v25 = vld [vmem:[%s5324_s3 + $0x1a8] sm:$0xff]  }
  0xfc   :  { %3012 = vmatprep.mubr.msk.bf16.mxu1 %vm5477_vm3, %v3011_v59  ;;  %vm4551_vm4 = vmand %vm4503_vm1, %vm5478_vm15  ;;  %vm5481_vm6 = vcmask 1043456   ;;  %vm5482_vm8 = vnez %v5409_v39  ;;  %v151_v24 = vrot.slane %v4314_v21, %v118_v36  ;;  %vm5484_vm15 = vcmp.lt.s32.totalorder %v4232_v32, 4  ;;  %v3629_v36 = vld [vmem:[%s5324_s3 + $0x160] sm:$0xff]   ;;  %3257 = vmatpush3.bf16.msra.mxu0 %v3626_v17  ;;  %v3637_v21 = vld [vmem:[%s5324_s3 + $0x170] sm:$0xff]  }
  0xfd   :  { %v706_v20 = vsel %vm5481_vm6, %v705_v30, %v682_v10  ;;  %vm5483_vm3 = vmpackc.low %vm4280_vm0, %vm5482_vm8  ;;  %vm5487_vm0 = vcmask 1045504   ;;  %vm5489_vm8 = vnez %v5403_v31  ;;  %v3631_v31 = vld [vmem:[%s5324_s3 + $0x1d0] sm:$0xff]   ;;  %v5496_v8 = vmov 0  ;;  %3258 = vmatprep.subr.bf16.mxu0 %v3629_v36  ;;  %v3636_v36 = vld [vmem:[%s5324_s3 + $0x198] sm:$0xff]  }
  0xfe   :  { %3015 = vmatmul.mubr.msk.bf16.vlgmr.msra.gmra.mrb[16].mxu1 %vm5483_vm3, %v3014_v1  ;;  %vm4571_vm6 = vmand %vm4520_vm12, %vm5484_vm15  ;;  %v4577_v39 = vsel %vm5487_vm0, %v706_v20, %v685_v34  ;;  %vm5488_vm12 = vcmp.ge.s32.totalorder %v4460_v40, 0  ;;  %vm5492_vm0 = vcmp.lt.s32.totalorder %v4259_v49, 4  ;;  %vm5495_vm15 = vcmp.ge.s32.totalorder %v4081_v52, 0  ;;  %v655_v1 = vpop.f32.mrb[13].mxu1  ;;  %v3630_v34 = vld [vmem:[%s5324_s3 + $0x120] sm:$0xff]  }
  0xff   :  { %3279 = vmatpush3.bf16.msra.mxu1 %v3624_v37  ;;  %vm4589_vm3 = vmand %vm5489_vm8, %vm5488_vm12  ;;  %v717_v42 = vrot.slane %v4577_v39, 6  ;;  %v797_v22 = vrot.slane %v4577_v39, 2  ;;  %v4598_v6 = vpack.c.bf16 %v4577_v39, %v4422_v12  ;;  %v613_v7 = vadd.f32 %v612_v5, %v139_v18 }
 0x100   :  { %3280 = vmatprep.subr.bf16.mxu1 %v3627_v29  ;;  %vm4607_vm12 = vmand %vm4551_vm4, %vm5492_vm0  ;;  %v615_v10 = vadd.f32 %v614_v54, %v143_v45  ;;  %v654_v59 = vadd.f32 %v653_v55, %v147_v51  ;;  %vm5498_vm1 = vcmp.ge.s32.totalorder %v4477_v33, 0  ;;  %vm5499_vm4 = vnez %v5412_v47  ;;  %v657_v29 = vpop.f32.mrb[14].mxu1  ;;  %v3632_v51 = vld [vmem:[%s5324_s3 + $0x190] sm:$0xff]   ;;  %3259 = vmatpush3.bf16.msra.mxu0 %v3630_v34 }
 0x101   :  { %vm4616_vm9 = vmand %vm4447_vm14, %vm5495_vm15  ;;  %vm5502_vm15 = vcmp.ge.s32.totalorder %v4073_v50, 0  ;;  %v5503_v16 = vmov 0  ;;  %v656_v23 = vadd.f32 %v655_v1, %v151_v24  ;;  %vm5507_vm8 = vcmask 1041408   ;;  %v658_v20 = vpop.f32.mrb[15].mxu1  ;;  %3260 = vmatprep.subr.bf16.mxu0 %v3633_v19  ;;  %v3649_v29 = vld [vmem:[%s5324_s3 + $0x1f8] sm:$0xff]   ;;  %v3661_v19 = vld [vmem:[%s5326_s5 + $0x50] sm:$0xff]  }
 0x102   :  { %v5497_v8 = vsel %vm4616_vm9, 4294967295, %v5496_v8  ;;  %vm4624_vm0 = vmand %vm5499_vm4, %vm5498_vm1  ;;  %vm5505_vm1 = vnez %v5423_v3  ;;  %v4648_v47 = vsel %vm5507_vm8, %v715_v26, %v717_v42  ;;  %v5510_v3 = vmov 0  ;;  %v617_v26 = vpop.f32.mrb[15].mxu0  ;;  %v3662_v20 = vld [vmem:[%s5326_s5 + $0x10] sm:$0xff]   ;;  %v3666_v24 = vld [vmem:[%s5326_s5 + $0x20] sm:$0xff]  }
 0x103   :  { %vm4633_vm9 = vmand %vm4464_vm10, %vm5502_vm15  ;;  %vm5508_vm15 = vcmask 1045504   ;;  %v688_v30 = vrot.slane %v615_v10, 6  ;;  %v691_v18 = vrot.slane %v654_v59, 4  ;;  %3281 = vmatpush3.bf16.msra.mxu1 %v3628_v38  ;;  %v4669_v45 = vpack.c.bf16 %v4648_v47, %v4485_v43  ;;  %v3635_v43 = vld [vmem:[%s5324_s3 + $0x1d8] sm:$0xff]   ;;  %v3638_v59 = vld [vmem:[%s5324_s3 + $0x130] sm:$0xff]  }
 0x104   :  { %v5504_v16 = vsel %vm4633_vm9, 4294967295, %v5503_v16  ;;  %vm5506_vm4 = vmpackc.low %vm4333_vm13, %vm5505_vm1  ;;  %v798_v48 = vsel %vm5508_vm15, %v795_v27, %v797_v22  ;;  %vm5509_vm13 = vcmp.lt.s32.totalorder %v4460_v40, 4  ;;  %v694_v17 = vrot.slane %v656_v23, 2  ;;  %3282 = vmatprep.subr.bf16.mxu1 %v3631_v31  ;;  %v3639_v31 = vld [vmem:[%s5324_s3 + $0x1e0] sm:$0xff]   ;;  %v3648_v26 = vld [vmem:[%s5324_s3 + $0x208] sm:$0xff]  }
 0x105   :  { %3006 = vmatprep.mubr.msk.bf16.mxu0 %vm5506_vm4, %v4598_v6  ;;  %vm4662_vm1 = vmand %vm4589_vm3, %vm5509_vm13  ;;  %v3023_v27 = vpack.c.bf16 %v798_v48, %v4493_v15  ;;  %vm5512_vm3 = vcmp.ge.s32.totalorder %v4062_v46, 0  ;;  %vm5513_vm15 = vcmp.ge.s32.totalorder %v4059_v44, 0  ;;  %v708_v15 = vsel %vm5507_vm8, %v613_v7, %v688_v30  ;;  %v3691_v30 = vld [vmem:[%s5328_s7 + $0x18] sm:$0xff]  }
 0x106   :  { %v5511_v3 = vsel %vm4662_vm1, 4294967295, %v5510_v3  ;;  %vm943_vm4 = vmand %vm4447_vm14, %vm5512_vm3  ;;  %vm5514_vm9 = vnez %v5433_v2  ;;  %vm5516_vm14 = vcmp.lt.s32.totalorder %v4477_v33, 4  ;;  %vm5519_vm1 = vcmask 1043456   ;;  %v3634_v2 = vld [vmem:[%s5324_s3 + $0x128] sm:$0xff]  }
 0x107   :  { %vm944_vm13 = vmand %vm4464_vm10, %vm5513_vm15  ;;  %v709_v5 = vsel %vm5519_vm1, %v708_v15, %v691_v18  ;;  %v5522_v61 = vmov 0  ;;  %3283 = vmatpush3.bf16.msra.mxu1 %v3632_v51  ;;  %v907_v7 = vadd.s32 1, %v4095_v56  ;;  %vm5528_vm15 = vnez %v5511_v3  ;;  %3261 = vmatpush3.bf16.msra.mxu0 %v3634_v2  ;;  %v3660_v51 = vld [vmem:[%s5326_s5 + $0x8] sm:$0xff]   ;;  %v3665_v15 = vld [vmem:[%s5326_s5 + $0x60] sm:$0xff]  }
 0x108   :  { %vm5515_vm3 = vmpackc.low %vm4402_vm7, %vm5514_vm9  ;;  %vm5521_vm7 = vcmp.lt.s32.totalorder %v4062_v46, 4  ;;  %v5526_v46 = vmov 0  ;;  %3284 = vmatprep.subr.bf16.mxu1 %v3635_v43  ;;  %3262 = vmatprep.subr.bf16.mxu0 %v3637_v21  ;;  %v3664_v43 = vld [vmem:[%s5326_s5 + $0x18] sm:$0xff]   ;;  %v3668_v2 = vld [vmem:[%s5326_s5 + $0x28] sm:$0xff]  }
 0x109   :  { %3009 = vmatmul.mubr.msk.bf16.gmra.mrb[20].mxu0 %vm5515_vm3, %v4669_v45  ;;  %vm4700_vm5 = vmand %vm4624_vm0, %vm5516_vm14  ;;  %vm5524_vm14 = vcmask 1045504   ;;  %vm5525_vm0 = vcmp.lt.s32.totalorder %v4059_v44, 4  ;;  %vm5529_vm3 = vcmask 1041408   ;;  %vm915_vm10 = vcmp.lt.s32.totalorder %v907_v7, 4 }
 0x10a   :  { %vm5520_vm8 = vmpackc.low %vm4472_vm2, %vm4435_vm11  ;;  %v4720_v38 = vsel %vm5524_vm14, %v709_v5, %v694_v17  ;;  %v3663_v17 = vld [vmem:[%s5326_s5 + $0x58] sm:$0xff]   ;;  %v3667_v5 = vld [vmem:[%s5326_s5 + $0x68] sm:$0xff]  }
 0x10b   :  { %3024 = vmatprep.mubr.msk.bf16.mxu0 %vm5520_vm8, %v3023_v27  ;;  %vm4715_vm9 = vmand %vm943_vm4, %vm5521_vm7  ;;  %v799_v54 = vrot.slane %v4720_v38, 2  ;;  %v840_v55 = vrot.slane %v4720_v38, 6  ;;  %v878_v44 = vpack.c.bf16 %v4720_v38, %v4577_v39  ;;  %3285 = vmatpush3.bf16.msra.mxu1 %v3636_v36  ;;  %vm5538_vm7 = vnez %v5497_v8  ;;  %v3659_v27 = vld [vmem:[%s5326_s5 + $0x48] sm:$0xff]  }
 0x10c   :  { %v5523_v61 = vsel %vm4715_vm9, 4294967295, %v5522_v61  ;;  %vm4730_vm1 = vmand %vm944_vm13, %vm5525_vm0  ;;  %3286 = vmatprep.subr.bf16.mxu1 %v3639_v31  ;;  %3263 = vmatpush3.bf16.msra.mxu0 %v3638_v59  ;;  %v3035_v12 = vpack.c.bf16 %v3771_v14, %v4720_v38 }
 0x10d   :  { %v5527_v46 = vsel %vm4730_vm1, 4294967295, %v5526_v46  ;;  %v4753_v10 = vsel %vm5529_vm3, %v717_v42, %v840_v55  ;;  %vm5530_vm8 = vmmov %vm5524_vm14 }
 0x10e   :  { %v800_v1 = vsel %vm5530_vm8, %v797_v22, %v799_v54  ;;  %vm5531_vm14 = vmmov %vm5530_vm8  ;;  %v3017_v42 = vpack.c.bf16 %v4753_v10, %v4648_v47  ;;  %v3640_v22 = vld [vmem:[%s5324_s3 + $0x1a0] sm:$0xff]   ;;  %vm5534_vm8 = vnez %v5458_v57  ;;  %v5539_v47 = vmov 0  ;;  %v3643_v57 = vld [vmem:[%s5324_s3 + $0x1e8] sm:$0xff]  }
 0x10f   :  { %v4766_v56 = vsel %vm5531_vm14, %v799_v54, 0.0  ;;  %vm5532_vm0 = vmmov %vm5529_vm3  ;;  %v4773_v11 = vpack.c.bf16 %v800_v1, %v798_v48  ;;  %vm5533_vm3 = vcmp.ge.s32.totalorder %v4460_v40, 0  ;;  %v3641_v48 = vld [vmem:[%s5324_s3 + $0x178] sm:$0xff]   ;;  %3287 = vmatpush3.bf16.msra.mxu1 %v3640_v22 }
 0x110   :  { %v4769_v37 = vsel %vm5532_vm0, %v840_v55, 0.0  ;;  %vm4782_vm14 = vmand %vm5534_vm8, %vm5533_vm3  ;;  %v3026_v34 = vpack.c.bf16 %v4766_v56, %v800_v1  ;;  %vm5537_vm0 = vcmp.lt.s32.totalorder %v4081_v52, 4  ;;  %vm5541_vm3 = vcmp.ge.s32.totalorder %v4477_v33, 0  ;;  %3264 = vmatprep.subr.bf16.mxu0 %v3641_v48  ;;  %3288 = vmatprep.subr.bf16.mxu1 %v3643_v57 }
 0x111   :  { %vm4791_vm13 = vmand %vm5538_vm7, %vm5537_vm0  ;;  %vm5542_vm8 = vnez %v5472_v60  ;;  %v3038_v52 = vpack.c.bf16 %v4769_v37, %v4753_v10  ;;  %vm5543_vm7 = vcmp.lt.s32.totalorder %v4073_v50, 4  ;;  %vm5544_vm0 = vnez %v5504_v16  ;;  %v3642_v50 = vld [vmem:[%s5324_s3 + $0x138] sm:$0xff]   ;;  %v3689_v60 = vld [vmem:[%s5328_s7 + $0x10] sm:$0xff]  }
 0x112   :  { %v5540_v47 = vsel %vm4791_vm13, 4294967295, %v5539_v47  ;;  %vm884_vm4 = vmand %vm5542_vm8, %vm5541_vm3  ;;  %vm911_vm13 = vcmp.ge.s32.totalorder %v907_v7, 0  ;;  %vm5549_vm8 = vcmp.lt.s32.totalorder %v4460_v40, 4  ;;  %v5554_v16 = vmov 0  ;;  %3265 = vmatpush3.bf16.msra.mxu0 %v3642_v50 }
 0x113   :  { %vm4811_vm11 = vmand %vm5544_vm0, %vm5543_vm7  ;;  %vm5559_vm7 = vnez %v5454_v35  ;;  %3289 = vmatpush3.bf16.msra.mxu1 %v3644_v25  ;;  %3384 = vmatprep.subr.bf16.mxu0 %v3645_v58  ;;  %v908_v35 = vadd.s32 1, %v4117_v0  ;;  %v5567_v0 = vmov 0  ;;  %v3044_v18 = vpack.c.bf16 %v3771_v14, %v4766_v56 }
 0x114   :  { %vm5547_vm2 = vmpackc.low %vm4607_vm12, %vm4571_vm6 }
 0x115   :  { %3018 = vmatprep.mubr.msk.bf16.mxu1 %vm5547_vm2, %v3017_v42  ;;  %vm5548_vm3 = vmpackc.low %vm4700_vm5, %vm5528_vm15  ;;  %vm5553_vm2 = vcmp.lt.s32.totalorder %v4477_v33, 4  ;;  %v3647_v33 = vld [vmem:[%s5324_s3 + $0x1b0] sm:$0xff]   ;;  %1691 = vmatmul.mubr.bf16.vlgmr.msra.gmra.mrb[24].mxu0 %v877_v28  ;;  %v3653_v28 = vld [vmem:[%s5324_s3 + $0x220] sm:$0xff]  }
 0x116   :  { %3021 = vmatmul.mubr.msk.bf16.gmra.mrb[20].mxu1 %vm5548_vm3, %v4773_v11  ;;  %vm4833_vm6 = vmand %vm4782_vm14, %vm5549_vm8  ;;  %vm5558_vm14 = vcmp.ge.s32.totalorder %v4115_v63, 0  ;;  %vm5562_vm8 = vcmp.lt.s32.totalorder %v4115_v63, 4  ;;  %3385 = vmatpush3.bf16.msra.mxu0 %v3645_v58  ;;  %v3650_v63 = vld [vmem:[%s5324_s3 + $0x1b8] sm:$0xff]  }
 0x117   :  { %vm5552_vm5 = vmpackc.low %vm4730_vm1, %vm4715_vm9  ;;  %3386 = vmatprep.subr.bf16.mxu0 %v3648_v26  ;;  %vm5573_vm9 = vmmov 1  }
 0x118   :  { %3030 = vmatprep.mubr.msk.bf16.mxu1 %vm5552_vm5, %v4598_v6  ;;  %vm4851_vm12 = vmand %vm884_vm4, %vm5553_vm2  ;;  %v3646_v6 = vld [vmem:[%s5324_s3 + $0x1f0] sm:$0xff]   ;;  %vm5560_vm4 = vcmp.ge.s32.totalorder %v4129_v4, 0  ;;  %vm5565_vm2 = vcmp.ge.s32.totalorder %v4169_v13, 0 }
 0x119   :  { %v5555_v16 = vsel %vm4851_vm12, 4294967295, %v5554_v16  ;;  %vm4855_vm15 = vmand %vm911_vm13, %vm915_vm10  ;;  %vm5561_vm13 = vnez %v5462_v41  ;;  %3290 = vmatprep.subr.bf16.mxu1 %v3646_v6  ;;  %v3654_v41 = vld [vmem:[%s5324_s3 + $0x228] sm:$0xff]  }
 0x11a   :  { %vm960_vm0 = vmand %vm5559_vm7, %vm5558_vm14  ;;  %vm5566_vm7 = vcmp.lt.s32.totalorder %v4129_v4, 4  ;;  %3291 = vmatpush3.bf16.msra.mxu1 %v3647_v33  ;;  %v5571_v4 = vmov 0  ;;  %3387 = vmatpush3.bf16.msra.mxu0 %v3648_v26 }
 0x11b   :  { %vm3025_vm10 = vmpackc.low %vm4851_vm12, %vm4833_vm6  ;;  %3292 = vmatprep.subr.bf16.mxu1 %v3649_v29  ;;  %3388 = vmatprep.subr.bf16.mxu0 %v3651_v9 }
 0x11c   :  { %vm961_vm3 = vmand %vm5561_vm13, %vm5560_vm4  ;;  %3027 = vmatprep.mubr.msk.bf16.mxu0 %vm3025_vm10, %v3026_v34  ;;  %vm912_vm10 = vcmp.ge.s32.totalorder %v908_v35, 0 }
 0x11d   :  { %vm4886_vm5 = vmand %vm960_vm0, %vm5562_vm8  ;;  %vm5569_vm0 = vnez %v5540_v47  ;;  %vm5570_vm8 = vcmp.lt.s32.totalorder %v4169_v13, 4  ;;  %v3652_v13 = vld [vmem:[%s5324_s3 + $0x218] sm:$0xff]   ;;  %1699 = vmatmul.mubr.bf16.gmra.mrb[28].mxu0 %v878_v44  ;;  %v2925_v44 = vld [vmem:[%s5327_s4] ss:$0 sm:$0xff] }
 0x11e   :  { %vm945_vm14 = vmand %vm4855_vm15, %vm5565_vm2  ;;  %3293 = vmatpush3.bf16.msra.mxu1 %v3650_v63  ;;  %3389 = vmatpush3.bf16.msra.mxu0 %v3651_v9 }
 0x11f   :  { %vm4899_vm4 = vmand %vm961_vm3, %vm5566_vm7  ;;  %vm916_vm3 = vcmp.lt.s32.totalorder %v908_v35, 4  ;;  %3390 = vmatprep.subr.bf16.mxu0 %v3652_v13 }
 0x120   :  { %v5568_v0 = vsel %vm4899_vm4, 4294967295, %v5567_v0  ;;  %vm4915_vm2 = vmand %vm945_vm14, %vm5570_vm8  ;;  %vm5574_vm14 = vcmp.ge.s32.totalorder %v4232_v32, 0 }
 0x121   :  { %v5572_v4 = vsel %vm4915_vm2, 4294967295, %v5571_v4  ;;  %vm3040_vm7 = vmpackc.low %vm4899_vm4, %vm4886_vm5 }
 0x122   :  { %vm920_vm13 = vmand %vm912_vm10, %vm916_vm3  ;;  %vm5575_vm10 = vcmp.ge.s32.totalorder %v4259_v49, 0  ;;  %3400 = vmatprep.mubr.msk.bf16.mxu0 %vm3040_vm7, %v4773_v11  ;;  %3391 = vmatpush3.bf16.msra.mxu0 %v3652_v13 }
 0x123   :  { %vm3034_vm1 = vmpackc.low %vm5573_vm9, %vm4915_vm2  ;;  %3392 = vmatprep.subr.bf16.mxu0 %v3653_v28 }
 0x124   :  { %vm923_vm8 = vmand %vm4855_vm15, %vm5574_vm14  ;;  %vm5577_vm14 = vcmp.lt.s32.totalorder %v4232_v32, 4  ;;  %v3655_v32 = vld [vmem:[%s5324_s3 + $0x230] sm:$0xff]  }
 0x125   :  { %vm924_vm3 = vmand %vm920_vm13, %vm5575_vm10  ;;  %vm5578_vm13 = vcmp.lt.s32.totalorder %v4259_v49, 4  ;;  %v3656_v49 = vld [vmem:[%s5324_s3 + $0x238] sm:$0xff]  }
 0x126   :  { %vm5576_vm2 = vmpackc.low %vm4811_vm11, %vm5569_vm0  ;;  %3393 = vmatpush3.bf16.msra.mxu0 %v3653_v28  ;;  %vm5579_vm11 = vcmp.ge.s32.totalorder %v4460_v40, 0 }
 0x127   :  { %3033 = vmatmul.mubr.msk.bf16.vlgmr.msra.gmra.mrb[24].mxu1 %vm5576_vm2, %v4669_v45  ;;  %vm927_vm12 = vmand %vm923_vm8, %vm5577_vm14  ;;  %3394 = vmatprep.subr.bf16.mxu0 %v3654_v41  ;;  %v3657_v45 = vld [vmem:[%s5326_s5 + $0x40] sm:$0xff]   ;;  %vm5586_vm8 = vnez %v5568_v0 }
 0x128   :  { %3036 = vmatprep.mubr.msk.bf16.mxu1 %vm3034_vm1, %v3035_v12  ;;  %vm928_vm10 = vmand %vm924_vm3, %vm5578_vm13  ;;  %3316 = vmatprep.subr.bf16.mxu1 %v3657_v45  ;;  %vm5587_vm3 = vnez %v5555_v16  ;;  %vm5589_vm13 = vnez %v5465_v53  ;;  %v3693_v0 = vld [vmem:[%s5328_s7 + $0x20] sm:$0xff]  }
 0x129   :  { %vm3037_vm4 = vmpackc.low %vm928_vm10, %vm927_vm12  ;;  %vm5580_vm12 = vcmp.lt.s32.totalorder %v4460_v40, 4  ;;  %v3658_v40 = vld [vmem:[%s5326_s5] sm:$0xff]   ;;  %vm5590_vm10 = vnez %v5450_v62 }
 0x12a   :  { %3395 = vmatpush3.bf16.msra.mxu0 %v3654_v41  ;;  %vm962_vm1 = vmand %vm4855_vm15, %vm5579_vm11  ;;  %3317 = vmatpush3.bf16.msra.mxu1 %v3658_v40  ;;  %vm5583_vm15 = vcmask 1045504   ;;  %vm1867_vm11 = vcmask 523264  }
 0x12b   :  { %3396 = vmatprep.subr.bf16.mxu0 %v3655_v32  ;;  %3318 = vmatprep.subr.bf16.mxu1 %v3659_v27  ;;  %vm5584_vm2 = vmmov %vm5583_vm15 }
 0x12c   :  { %vm5585_vm7 = vmmov %vm5584_vm2 }
 0x12d   :  { %vm5588_vm14 = vmmov %vm5584_vm2 }
 0x12e   :  { %3397 = vmatpush3.bf16.msra.mxu0 %v3655_v32  ;;  %3319 = vmatpush3.bf16.msra.mxu1 %v3660_v51 }
 0x12f   :  { %3039 = vmatmul.mubr.msk.bf16.gmra.mrb[28].mxu1 %vm3037_vm4, %v3038_v52  ;;  %vm4972_vm4 = vmand %vm962_vm1, %vm5580_vm12  ;;  %3398 = vmatprep.subr.bf16.mxu0 %v3656_v49  ;;  %vm5591_vm1 = vnez %v5527_v46  ;;  %vm5592_vm12 = vnez %v5523_v61  ;;  %v5160_v46 = vld [vmem:[%s5328_s7] sm:$0xff]  }
 0x130   :  { %vm3043_vm0 = vmpackc.low %vm5573_vm9, %vm4972_vm4  ;;  %3320 = vmatprep.subr.bf16.mxu1 %v3661_v19 }
 0x132   :  { %3399 = vmatpush3.bf16.msra.mxu0 %v3656_v49  ;;  %3321 = vmatpush3.bf16.msra.mxu1 %v3662_v20 }
 0x133   :  { %3322 = vmatprep.subr.bf16.mxu1 %v3663_v17 }
 0x135   :  { %3401 = vmatmul.mubr.msk.bf16.vlgmr.msra.gmra.mrb[32].mxu0 %vm3043_vm0, %v3044_v18  ;;  %vm3063_vm0 = vmneg %vm1867_vm11 }
 0x136   :  { %3323 = vmatpush3.bf16.msra.mxu1 %v3664_v43 }
 0x137   :  { %3324 = vmatprep.subr.bf16.mxu1 %v3665_v15 }
 0x13a   :  { %3325 = vmatpush3.bf16.msra.mxu1 %v3666_v24 }
 0x13b   :  { %3326 = vmatprep.subr.bf16.mxu1 %v3667_v5 }
 0x13e   :  { %3327 = vmatpush3.bf16.msra.mxu1 %v3668_v2 }
 0x1c1   :  { %v3210_v38 = vpop.f32.mrb[16].mxu0 }
 0x1c2   :  { %v3211_v36 = vpop.f32.mrb[17].mxu0 }
 0x1c3   :  { %v3212_v21 = vadd.f32 %v3211_v36, %v3210_v38  ;;  %v3213_v54 = vpop.f32.mrb[18].mxu0 }
 0x1c4   :  { %v3214_v55 = vpop.f32.mrb[19].mxu0 }
 0x1c5   :  { %v3215_v31 = vadd.f32 %v3214_v55, %v3213_v54  ;;  %v1595_v59 = vadd.f32 %v3212_v21, %v2925_v44 }
 0x1c7   :  { %v1598_v42 = vadd.f32 %v3215_v31, %v2925_v44 }
 0x1d1   :  { %v3238_v7 = vpop.f32.mrb[16].mxu1 }
 0x1d2   :  { %v3239_v10 = vpop.f32.mrb[17].mxu1 }
 0x1d3   :  { %v3240_v1 = vadd.f32 %v3239_v10, %v3238_v7  ;;  %v3241_v56 = vpop.f32.mrb[18].mxu1 }
 0x1d4   :  { %v3242_v37 = vpop.f32.mrb[19].mxu1 }
 0x1d5   :  { %v1644_v11 = vadd.f32 %v3240_v1, %v1595_v59  ;;  %v3243_v22 = vadd.f32 %v3242_v37, %v3241_v56 }
 0x1d7   :  { %v1647_v23 = vadd.f32 %v3243_v22, %v1598_v42 }
 0x1dc   :  { %v3216_v34 = vpop.f32.mrb[20].mxu0 }
 0x1dd   :  { %v3217_v47 = vpop.f32.mrb[21].mxu0 }
 0x1de   :  { %v3218_v48 = vadd.f32 %v3217_v47, %v3216_v34  ;;  %v3219_v57 = vpop.f32.mrb[22].mxu0  ;;  %v3669_v34 = vld [vmem:[%s5326_s5 + $0x70] sm:$0xff]  }
 0x1df   :  { %v3220_v52 = vpop.f32.mrb[23].mxu0  ;;  %v3670_v47 = vld [vmem:[%s5326_s5 + $0x30] sm:$0xff]   ;;  %3328 = vmatprep.subr.bf16.mxu1 %v3669_v34 }
 0x1e0   :  { %v3221_v8 = vadd.f32 %v3220_v52, %v3219_v57  ;;  %v1603_v58 = vadd.f32 %v3218_v48, %v2925_v44  ;;  %3329 = vmatpush3.bf16.msra.mxu1 %v3670_v47 }
 0x1e2   :  { %v1606_v26 = vadd.f32 %v3221_v8, %v2925_v44 }
 0x1e8   :  { %v3266_v9 = vpop.f32.mrb[24].mxu0 }
 0x1e9   :  { %v3244_v50 = vpop.f32.mrb[20].mxu1  ;;  %v3267_v13 = vpop.f32.mrb[25].mxu0 }
 0x1ea   :  { %v3245_v25 = vpop.f32.mrb[21].mxu1  ;;  %v3268_v12 = vadd.f32 %v3267_v13, %v3266_v9  ;;  %v3269_v28 = vpop.f32.mrb[26].mxu0 }
 0x1eb   :  { %v3246_v3 = vadd.f32 %v3245_v25, %v3244_v50  ;;  %v3247_v6 = vpop.f32.mrb[22].mxu1  ;;  %v3270_v41 = vpop.f32.mrb[27].mxu0 }
 0x1ec   :  { %v3248_v33 = vpop.f32.mrb[23].mxu1  ;;  %v1693_v32 = vadd.f32 %v3268_v12, %v1644_v11  ;;  %v3271_v49 = vadd.f32 %v3270_v41, %v3269_v28 }
 0x1ed   :  { %v1652_v35 = vadd.f32 %v3246_v3, %v1603_v58  ;;  %v3249_v29 = vadd.f32 %v3248_v33, %v3247_v6  ;;  %v3671_v3 = vld [vmem:[%s5326_s5 + $0x78] sm:$0xff]  }
 0x1ee   :  { %v1696_v18 = vadd.f32 %v3271_v49, %v1647_v23  ;;  %3330 = vmatprep.subr.bf16.mxu1 %v3671_v3  ;;  %v3677_v3 = vld [vmem:[%s5328_s7 + $0x20] sm:$0xff]  }
 0x1ef   :  { %v1655_v63 = vadd.f32 %v3249_v29, %v1606_v26  ;;  %v3672_v26 = vld [vmem:[%s5326_s5 + $0x38] sm:$0xff]   ;;  %s3772_s5 = smov 64  }
 0x1f0   :  { %v3272_v45 = vpop.f32.mrb[28].mxu0  ;;  %3331 = vmatpush3.bf16.msra.mxu1 %v3672_v26  ;;  %v3682_v26 = vld [vmem:[%s5328_s7 + $0x8] sm:$0xff]  }
 0x1f1   :  { %v3273_v40 = vpop.f32.mrb[29].mxu0 }
 0x1f2   :  { %v3274_v51 = vadd.f32 %v3273_v40, %v3272_v45  ;;  %v3275_v19 = vpop.f32.mrb[30].mxu0 }
 0x1f3   :  { %v3276_v43 = vpop.f32.mrb[31].mxu0 }
 0x1f4   :  { %v1701_v24 = vadd.f32 %v3274_v51, %v1652_v35  ;;  %v3277_v5 = vadd.f32 %v3276_v43, %v3275_v19  ;;  %v3674_v43 = vld [vmem:[%s5328_s7 + $0x8] sm:$0xff]  }
 0x1f6   :  { %v1704_v21 = vadd.f32 %v3277_v5, %v1655_v63 }
 0x1fa   :  { %v3294_v27 = vpop.f32.mrb[24].mxu1 }
 0x1fb   :  { %v3295_v20 = vpop.f32.mrb[25].mxu1 }
 0x1fc   :  { %v3296_v17 = vadd.f32 %v3295_v20, %v3294_v27  ;;  %v3297_v15 = vpop.f32.mrb[26].mxu1 }
 0x1fd   :  { %v3298_v2 = vpop.f32.mrb[27].mxu1 }
 0x1fe   :  { %v3299_v38 = vadd.f32 %v3298_v2, %v3297_v15  ;;  %v1742_v36 = vadd.f32 %v3296_v17, %v1693_v32  ;;  %v3673_v17 = vld [vmem:[%s5328_s7] sm:$0xff]   ;;  %v3675_v15 = vld [vmem:[%s5328_s7 + $0x10] sm:$0xff]  }
 0x1ff   :  { %3404 = vmatprep.subr.bf16.mxu0 %v3673_v17 }
 0x200   :  { %v1745_v54 = vadd.f32 %v3299_v38, %v1696_v18  ;;  %3405 = vmatpush3.bf16.msra.mxu0 %v3673_v17 }
 0x201   :  { %3406 = vmatprep.subr.bf16.mxu0 %v3674_v43 }
 0x202   :  { %v3300_v55 = vpop.f32.mrb[28].mxu1 }
 0x203   :  { %v3301_v31 = vpop.f32.mrb[29].mxu1 }
 0x204   :  { %v3302_v44 = vadd.f32 %v3301_v31, %v3300_v55  ;;  %v3303_v7 = vpop.f32.mrb[30].mxu1  ;;  %3407 = vmatpush3.bf16.msra.mxu0 %v3674_v43 }
 0x205   :  { %v3304_v10 = vpop.f32.mrb[31].mxu1  ;;  %3408 = vmatprep.subr.bf16.mxu0 %v3675_v15 }
 0x206   :  { %v3305_v59 = vadd.f32 %v3304_v10, %v3303_v7  ;;  %v1750_v1 = vadd.f32 %v3302_v44, %v1701_v24 }
 0x208   :  { %v1753_v56 = vadd.f32 %v3305_v59, %v1704_v21  ;;  %v3402_v37 = vpop.f32.mrb[32].mxu0  ;;  %3409 = vmatpush3.bf16.msra.mxu0 %v3675_v15 }
 0x209   :  { %v1799_v42 = vadd.f32 %v3402_v37, %v1750_v1  ;;  %v1790_v11 = vpop.f32.mrb[33].mxu0 }
 0x20a   :  { %v5020_v22 = vadd.f32 %v1790_v11, %v1742_v36  ;;  %v3403_v23 = vpop.f32.mrb[34].mxu0 }
 0x20b   :  { %v5028_v48 = vmax.f32 %v1799_v42, 0.0  ;;  %v1802_v57 = vadd.f32 %v3403_v23, %v1753_v56  ;;  %v1793_v52 = vpop.f32.mrb[35].mxu0 }
 0x20c   :  { %v1794_v8 = vadd.f32 %v1793_v52, %v1745_v54  ;;  %v1805_v25 = vmax.f32 %v5020_v22, 0.0 }
 0x20d   :  { %v5030_v50 = vmax.f32 %v1802_v57, 0.0  ;;  %v1816_v6 = vrot.slane %v5028_v48, 2  ;;  %v1830_v36 = vsel %vm5591_vm1, %v5028_v48, 0.0 }
 0x20e   :  { %v1806_v58 = vmax.f32 %v1794_v8, 0.0  ;;  %v1813_v9 = vrot.slane %v1805_v25, 2 }
 0x20f   :  { %v1818_v33 = vrot.slane %v5030_v50, 2 }
 0x210   :  { %v1814_v35 = vrot.slane %v1806_v58, 2  ;;  %v1829_v21 = vsel %vm5592_vm12, %v1806_v58, 0.0 }
 0x211   :  { %v1819_v29 = vsel %vm5583_vm15, %v1816_v6, %v1818_v33  ;;  %v1824_v63 = vsel %vm5584_vm2, %v1818_v33, 0.0  ;;  %vm5593_vm15 = vnez %v5572_v4  ;;  %vm3064_vm2 = vmpackc.low %vm3063_vm0, %vm5573_vm9  ;;  %v3681_v33 = vld [vmem:[%s5328_s7] sm:$0xff]   ;;  %v3698_v4 = vld [vmem:[%s5328_s7 + $0x38] sm:$0xff]  }
 0x212   :  { %v1827_v13 = vsel %vm4833_vm6, %v1819_v29, 0.0  ;;  %v1834_v12 = vsel %vm4972_vm4, %v1824_v63, 0.0  ;;  %v1817_v28 = vsel %vm5585_vm7, %v1814_v35, %v1816_v6  ;;  %v1833_v49 = vsel %vm5586_vm8, %v1819_v29, 0.0  ;;  %v3680_v6 = vld [vmem:[%s5328_s7 + $0x38] sm:$0xff]   ;;  %3424 = vmatprep.subr.bf16.mxu1 %v3681_v33  ;;  %vm5594_vm9 = vmmov %vm5585_vm7 }
 0x213   :  { %v3500_v41 = vpack.i.bf16 %v1827_v13, %v1834_v12  ;;  %v1832_v32 = vsel %vm4886_vm5, %v1817_v28, 0.0  ;;  %v1828_v18 = vsel %vm5587_vm3, %v1824_v63, 0.0  ;;  %v1815_v40 = vsel %vm5588_vm14, %v1813_v9, %v1814_v35  ;;  %v3683_v35 = vld [vmem:[%s5328_s7 + $0x10] sm:$0xff]   ;;  %v3684_v29 = vld [vmem:[%s5328_s7 + $0x18] sm:$0xff]   ;;  %v5125_v63 = vld [vmem:[%s5328_s7] sm:$0xff]  }
 0x214   :  { %v3490_v45 = vpack.i.bf16 %v1833_v49, %v1832_v32  ;;  %v1826_v27 = vsel %vm5589_vm13, %v1817_v28, 0.0  ;;  %v1825_v51 = vsel %vm5590_vm10, %v1815_v40, 0.0  ;;  %v3505_v19 = vpack.i.bf16 %v3771_v14, %v1828_v18  ;;  %v3686_v9 = vld [vmem:[%s5328_s7 + $0x20] sm:$0xff]   ;;  %vm5595_vm14 = vmmov %vm5585_vm7 }
 0x215   :  { %3501 = vrot.lane.b32.xlu1 %v3500_v41, %s3772_s5  ;;  %v3495_v20 = vpack.i.bf16 %v1826_v27, %v1825_v51  ;;  %v1831_v37 = vsel %vm5593_vm15, %v5030_v50, 0.0  ;;  %v3046_v12 = vld [vmem:[%s5329_s6] ss:$0 sm:$0xff]  ;;  %v3688_v51 = vld [vmem:[%s5328_s7 + $0x28] sm:$0xff]  }
 0x216   :  { %3491 = vrot.lane.b32.xlu0 %v3490_v45, %s3772_s5 }
 0x219   :  { %3506 = vrot.lane.b32.xlu1 %v3505_v19, %s3772_s5 }
 0x21a   :  { %3496 = vrot.lane.b32.xlu0 %v3495_v20, %s3772_s5 }
 0x287   :  { %v3502_v24 = vpop.permute.xlu1 %3501 }
 0x288   :  { %v3492_v5 = vpop.permute.xlu0 %3491  ;;  %v3503_v44 = vunpack.i.l.bf16 %v3502_v24  ;;  %v3504_v57 = vunpack.i.h.bf16 %v3502_v24 }
 0x289   :  { %v3494_v2 = vunpack.i.h.bf16 %v3492_v5  ;;  %v3493_v38 = vunpack.i.l.bf16 %v3492_v5 }
 0x28a   :  { %v1874_v22 = vsel %vm1867_vm11, %v1831_v37, %v3503_v44  ;;  %v1870_v8 = vsel %vm1867_vm11, %v5028_v48, %v3504_v57  ;;  %v3679_v48 = vld [vmem:[%s5328_s7 + $0x30] sm:$0xff]   ;;  %v3687_v57 = vld [vmem:[%s5328_s7 + $0x8] sm:$0xff]  }
 0x28b   :  { %v3507_v54 = vpop.permute.xlu1 %3506  ;;  %v1872_v55 = vsel %vm1867_vm11, %v1829_v21, %v3493_v38  ;;  %v1873_v31 = vsel %vm1867_vm11, %v1830_v36, %v3494_v2  ;;  %v3690_v21 = vld [vmem:[%s5328_s7 + $0x30] sm:$0xff]  }
 0x28c   :  { %v3497_v7 = vpop.permute.xlu0 %3496  ;;  %v1877_v10 = vpack.c.bf16 %v1873_v31, %v1872_v55  ;;  %v5080_v59 = vunpack.i.h.bf16 %v3507_v54  ;;  %v3508_v34 = vunpack.i.l.bf16 %v3507_v54 }
 0x28d   :  { %v3499_v1 = vunpack.i.h.bf16 %v3497_v7  ;;  %v3498_v56 = vunpack.i.l.bf16 %v3497_v7 }
 0x28e   :  { %2047 = vmatprep.mubr.bf16.mxu1 %v1877_v10  ;;  %v3065_v47 = vpack.c.bf16 %v5080_v59, %v1874_v22  ;;  %v1871_v52 = vsel %vm1867_vm11, %v5030_v50, %v3508_v34  ;;  %v3678_v50 = vld [vmem:[%s5328_s7 + $0x28] sm:$0xff]   ;;  %v3692_v10 = vld [vmem:[%s5328_s7 + $0x38] sm:$0xff]  }
 0x28f   :  { %v1869_v42 = vsel %vm1867_vm11, %v1806_v58, %v3499_v1  ;;  %v1868_v11 = vsel %vm1867_vm11, %v1805_v25, %v3498_v56  ;;  %v1878_v58 = vpack.c.bf16 %v1871_v52, %v1870_v8  ;;  %v3676_v25 = vld [vmem:[%s5328_s7 + $0x18] sm:$0xff]  }
 0x290   :  { %v1876_v23 = vpack.c.bf16 %v1869_v42, %v1868_v11  ;;  %3410 = vmatprep.subr.bf16.mxu0 %v3676_v25 }
 0x291   :  { %3411 = vmatpush3.bf16.msra.mxu0 %v3676_v25 }
 0x292   :  { %2048 = vmatmul.mubr.bf16.vlgmr.msra.gmra.mrb[32].mxu1 %v1876_v23  ;;  %3412 = vmatprep.subr.bf16.mxu0 %v3677_v3 }
 0x293   :  { %3066 = vmatprep.mubr.msk.bf16.mxu1 %vm3064_vm2, %v3065_v47  ;;  %3425 = vmatpush3.bf16.msra.mxu1 %v3681_v33 }
 0x294   :  { %3426 = vmatprep.subr.bf16.mxu1 %v3682_v26 }
 0x295   :  { %3413 = vmatpush3.bf16.msra.mxu0 %v3677_v3 }
 0x296   :  { %3414 = vmatprep.subr.bf16.mxu0 %v3678_v50 }
 0x297   :  { %3427 = vmatpush3.bf16.msra.mxu1 %v3682_v26  ;;  %v3696_v26 = vld [vmem:[%s5328_s7 + $0x30] sm:$0xff]  }
 0x298   :  { %3428 = vmatprep.subr.bf16.mxu1 %v3683_v35 }
 0x299   :  { %3415 = vmatpush3.bf16.msra.mxu0 %v3678_v50 }
 0x29a   :  { %2056 = vmatmul.mubr.bf16.gmra.mrb[36].mxu1 %v1878_v58  ;;  %3416 = vmatprep.subr.bf16.mxu0 %v3679_v48 }
 0x29b   :  { %3429 = vmatpush3.bf16.msra.mxu1 %v3683_v35 }
 0x29c   :  { %3430 = vmatprep.subr.bf16.mxu1 %v3684_v29 }
 0x29d   :  { %3417 = vmatpush3.bf16.msra.mxu0 %v3679_v48 }
 0x29e   :  { %3418 = vmatprep.subr.bf16.mxu0 %v3680_v6 }
 0x29f   :  { %3431 = vmatpush3.bf16.msra.mxu1 %v3684_v29 }
 0x2a0   :  { %3432 = vmatprep.subr.bf16.mxu1 %v3686_v9 }
 0x2a1   :  { %3419 = vmatpush3.bf16.msra.mxu0 %v3680_v6  ;;  %v3694_v6 = vld [vmem:[%s5328_s7 + $0x28] sm:$0xff]  }
 0x2a2   :  { %3444 = vmatprep.subr.bf16.mxu0 %v5125_v63 }
 0x2a3   :  { %3433 = vmatpush3.bf16.msra.mxu1 %v3686_v9 }
 0x2a4   :  { %3434 = vmatprep.subr.bf16.mxu1 %v3688_v51 }
 0x2a7   :  { %3435 = vmatpush3.bf16.msra.mxu1 %v3688_v51 }
 0x2a8   :  { %3436 = vmatprep.subr.bf16.mxu1 %v3690_v21 }
 0x2ab   :  { %3437 = vmatpush3.bf16.msra.mxu1 %v3690_v21 }
 0x2ac   :  { %3438 = vmatprep.subr.bf16.mxu1 %v3692_v10 }
 0x2af   :  { %3439 = vmatpush3.bf16.msra.mxu1 %v3692_v10  ;;  %v3697_v10 = vld [vmem:[%s5328_s7 + $0x8] sm:$0xff]  }
 0x2b0   :  { %3464 = vmatprep.subr.bf16.mxu1 %v5160_v46 }
 0x365   :  { %v3332_v13 = vpop.f32.mrb[32].mxu1 }
 0x366   :  { %v3333_v28 = vpop.f32.mrb[33].mxu1 }
 0x367   :  { %v3334_v41 = vadd.f32 %v3333_v28, %v3332_v13  ;;  %v3335_v32 = vpop.f32.mrb[34].mxu1 }
 0x368   :  { %v3336_v49 = vpop.f32.mrb[35].mxu1 }
 0x369   :  { %v2050_v18 = vadd.f32 %v3334_v41, %v3046_v12  ;;  %v3337_v45 = vadd.f32 %v3336_v49, %v3335_v32 }
 0x36b   :  { %v2064_v40 = vmax.f32 %v2050_v18, 0.0  ;;  %v2053_v27 = vadd.f32 %v3337_v45, %v3046_v12 }
 0x36d   :  { %v2065_v19 = vmax.f32 %v2053_v27, 0.0  ;;  %v3338_v20 = vpop.f32.mrb[36].mxu1  ;;  %v2072_v43 = vrot.slane %v2064_v40, 2 }
 0x36e   :  { %v3339_v17 = vpop.f32.mrb[37].mxu1 }
 0x36f   :  { %v3340_v15 = vadd.f32 %v3339_v17, %v3338_v20  ;;  %v3341_v24 = vpop.f32.mrb[38].mxu1  ;;  %v3510_v5 = vpack.i.bf16 %v2065_v19, %v2064_v40  ;;  %v2230_v2 = vpack.c.bf16 %v2065_v19, %v2064_v40  ;;  %v2073_v38 = vrot.slane %v2065_v19, 2 }
 0x370   :  { %v3342_v36 = vpop.f32.mrb[39].mxu1  ;;  %v2088_v37 = vsel %vm5592_vm12, %v2065_v19, 0.0 }
 0x371   :  { %v2058_v54 = vadd.f32 %v3340_v15, %v3046_v12  ;;  %v3343_v55 = vadd.f32 %v3342_v36, %v3341_v24  ;;  %3511 = vrot.lane.b32.xlu0 %v3510_v5, %s3773_s28  ;;  %3420 = vmatprep.mubr.bf16.mxu0 %v2230_v2  ;;  %v2074_v31 = vsel %vm5594_vm9, %v2072_v43, %v2073_v38 }
 0x372   :  { %v2084_v52 = vsel %vm5590_vm10, %v2074_v31, 0.0 }
 0x373   :  { %v2066_v44 = vmax.f32 %v2058_v54, 0.0  ;;  %v2061_v7 = vadd.f32 %v3343_v55, %v3046_v12 }
 0x375   :  { %v2067_v1 = vmax.f32 %v2061_v7, 0.0  ;;  %v2075_v56 = vrot.slane %v2066_v44, 2  ;;  %v2089_v42 = vsel %vm5591_vm1, %v2066_v44, 0.0  ;;  %vm5596_vm1 = vmmov %vm5585_vm7 }
 0x376   :  { %v3545_v11 = vpack.i.bf16 %v2089_v42, %v2088_v37 }
 0x377   :  { %v3515_v22 = vpack.i.bf16 %v2067_v1, %v2066_v44  ;;  %v2231_v23 = vpack.c.bf16 %v2067_v1, %v2066_v44  ;;  %v2076_v34 = vsel %vm5585_vm7, %v2073_v38, %v2075_v56  ;;  %v2077_v47 = vrot.slane %v2067_v1, 2 }
 0x378   :  { %v2085_v61 = vsel %vm5589_vm13, %v2076_v34, 0.0  ;;  %v2091_v50 = vsel %vm4886_vm5, %v2076_v34, 0.0  ;;  %v2090_v33 = vsel %vm5593_vm15, %v2067_v1, 0.0  ;;  %vm5597_vm5 = vcmask 261120  }
 0x379   :  { %3516 = vrot.lane.b32.xlu0 %v3515_v22, %s3773_s28  ;;  %3421 = vmatmul.mubr.bf16.vlgmr.msra.gmra.mrb[36].mxu0 %v2231_v23  ;;  %v3520_v8 = vpack.i.bf16 %v2085_v61, %v2084_v52  ;;  %v2078_v58 = vsel %vm5595_vm14, %v2075_v56, %v2077_v47  ;;  %v2083_v25 = vsel %vm5596_vm1, %v2077_v47, 0.0  ;;  %v3565_v35 = vpack.i.bf16 %v3771_v14, %v2090_v33  ;;  %v3699_v23 = vld [vmem:[%s5328_s7 + $0x10] sm:$0xff]  }
 0x37a   :  { %v2086_v62 = vsel %vm4833_vm6, %v2078_v58, 0.0  ;;  %v2087_v53 = vsel %vm5587_vm3, %v2083_v25, 0.0  ;;  %3445 = vmatpush3.bf16.msra.mxu0 %v5125_v63  ;;  %v2092_v48 = vsel %vm5586_vm8, %v2078_v58, 0.0  ;;  %v2093_v29 = vsel %vm4972_vm4, %v2083_v25, 0.0  ;;  %vm5598_vm4 = vmmov %vm5597_vm5 }
 0x37b   :  { %3521 = vrot.lane.b32.xlu1 %v3520_v8, %s3774_s12  ;;  %v3525_v3 = vpack.i.bf16 %v2087_v53, %v2086_v62  ;;  %3446 = vmatprep.subr.bf16.mxu0 %v3687_v57  ;;  %v3575_v16 = vpack.i.bf16 %v2092_v48, %v2091_v50  ;;  %v3580_v63 = vpack.i.bf16 %v3771_v14, %v2093_v29  ;;  %vm2130_vm6 = vcmask 785408   ;;  %vm5599_vm8 = vmmov %vm5598_vm4  ;;  %v3700_v62 = vld [vmem:[%s5328_s7 + $0x18] sm:$0xff]   ;;  %v3701_v29 = vld [vmem:[%s5328_s7 + $0x20] sm:$0xff]  }
 0x37c   :  { %vm5600_vm3 = vmmov %vm5598_vm4 }
 0x37d   :  { %3531 = vrot.lane.b32.xlu0 %v3510_v5, %s3774_s12  ;;  %vm5601_vm13 = vmmov %vm5600_vm3 }
 0x37e   :  { %3447 = vmatpush3.bf16.msra.mxu0 %v3687_v57  ;;  %vm5602_vm10 = vmmov %vm5600_vm3 }
 0x37f   :  { %3526 = vrot.lane.b32.xlu1 %v3525_v3, %s3774_s12  ;;  %3448 = vmatprep.subr.bf16.mxu0 %v3689_v60  ;;  %vm5603_vm12 = vmmov %vm5600_vm3 }
 0x380   :  { %vm5604_vm0 = vmmov %vm5600_vm3 }
 0x381   :  { %3541 = vrot.lane.b32.xlu0 %v3510_v5, %s3772_s5 }
 0x382   :  { %3449 = vmatpush3.bf16.msra.mxu0 %v3689_v60 }
 0x383   :  { %3536 = vrot.lane.b32.xlu1 %v3520_v8, %s3773_s28  ;;  %3450 = vmatprep.subr.bf16.mxu0 %v3691_v30 }
 0x385   :  { %3551 = vrot.lane.b32.xlu0 %v3515_v22, %s3774_s12 }
 0x386   :  { %3451 = vmatpush3.bf16.msra.mxu0 %v3691_v30 }
 0x387   :  { %3546 = vrot.lane.b32.xlu1 %v3545_v11, %s3772_s5  ;;  %3452 = vmatprep.subr.bf16.mxu0 %v3693_v0 }
 0x389   :  { %3556 = vrot.lane.b32.xlu0 %v3545_v11, %s3774_s12 }
 0x38a   :  { %3453 = vmatpush3.bf16.msra.mxu0 %v3693_v0 }
 0x38b   :  { %3561 = vrot.lane.b32.xlu1 %v3515_v22, %s3772_s5  ;;  %3454 = vmatprep.subr.bf16.mxu0 %v3694_v6 }
 0x38d   :  { %2154 = vrot.lane.b32.xlu0 %v2090_v33, %s3772_s5 }
 0x38e   :  { %3455 = vmatpush3.bf16.msra.mxu0 %v3694_v6 }
 0x38f   :  { %3566 = vrot.lane.b32.xlu1 %v3565_v35, %s3774_s12  ;;  %3456 = vmatprep.subr.bf16.mxu0 %v3696_v26 }
 0x391   :  { %3576 = vrot.lane.b32.xlu0 %v3575_v16, %s3773_s28 }
 0x392   :  { %3457 = vmatpush3.bf16.msra.mxu0 %v3696_v26 }
 0x393   :  { %3571 = vrot.lane.b32.xlu1 %v3525_v3, %s3773_s28  ;;  %3458 = vmatprep.subr.bf16.mxu0 %v3698_v4 }
 0x396   :  { %3459 = vmatpush3.bf16.msra.mxu0 %v3698_v4 }
 0x397   :  { %3581 = vrot.lane.b32.xlu1 %v3580_v63, %s3773_s28 }
 0x3e3   :  { %v3512_v9 = vpop.permute.xlu0 %3511 }
 0x3e4   :  { %v3514_v28 = vunpack.i.h.bf16 %v3512_v9  ;;  %v3513_v41 = vunpack.i.l.bf16 %v3512_v9 }
 0x3eb   :  { %v3517_v13 = vpop.permute.xlu0 %3516 }
 0x3ec   :  { %v3519_v40 = vunpack.i.h.bf16 %v3517_v13  ;;  %v3518_v27 = vunpack.i.l.bf16 %v3517_v13 }
 0x3ed   :  { %v3522_v12 = vpop.permute.xlu1 %3521 }
 0x3ee   :  { %v3524_v32 = vunpack.i.h.bf16 %v3522_v12  ;;  %v3523_v49 = vunpack.i.l.bf16 %v3522_v12 }
 0x3ef   :  { %v5213_v18 = vpop.permute.xlu0 %3531 }
 0x3f0   :  { %v2123_v39 = vsel %vm5597_vm5, %v3514_v28, %v3524_v32  ;;  %v2122_v45 = vsel %vm5598_vm4, %v3513_v41, %v3523_v49  ;;  %v3534_v33 = vunpack.i.h.bf16 %v5213_v18  ;;  %v3533_v26 = vunpack.i.l.bf16 %v5213_v18 }
 0x3f1   :  { %v3527_v14 = vpop.permute.xlu1 %3526  ;;  %v2126_v51 = vsel %vm1867_vm11, %v2122_v45, %v3513_v41  ;;  %v2127_v19 = vsel %vm1867_vm11, %v2123_v39, %v3514_v28  ;;  %v3702_v39 = vld [vmem:[%s5328_s7 + $0x28] sm:$0xff]   ;;  %v3703_v45 = vld [vmem:[%s5328_s7 + $0x30] sm:$0xff]  }
 0x3f2   :  { %v3529_v20 = vunpack.i.h.bf16 %v3527_v14  ;;  %v3528_v17 = vunpack.i.l.bf16 %v3527_v14  ;;  %v2131_v43 = vsel %vm2130_vm6, %v2126_v51, %v3523_v49  ;;  %v2132_v15 = vsel %vm2130_vm6, %v2127_v19, %v3524_v32 }
 0x3f3   :  { %v3542_v24 = vpop.permute.xlu0 %3541  ;;  %v2392_v5 = vpack.c.bf16 %v2132_v15, %v2131_v43 }
 0x3f4   :  { %v2125_v2 = vsel %vm5599_vm8, %v3519_v40, %v3529_v20  ;;  %v2124_v38 = vsel %vm5600_vm3, %v3518_v27, %v3528_v17  ;;  %v3544_v56 = vunpack.i.h.bf16 %v3542_v24  ;;  %v3543_v37 = vunpack.i.l.bf16 %v3542_v24 }
 0x3f5   :  { %v2129_v36 = vsel %vm1867_vm11, %v2125_v2, %v3519_v40  ;;  %v2128_v21 = vsel %vm1867_vm11, %v2124_v38, %v3518_v27  ;;  %v3537_v54 = vpop.permute.xlu1 %3536  ;;  %3440 = vmatprep.mubr.bf16.mxu1 %v2392_v5 }
 0x3f6   :  { %v2134_v55 = vsel %vm2130_vm6, %v2129_v36, %v3529_v20  ;;  %v2133_v31 = vsel %vm2130_vm6, %v2128_v21, %v3528_v17  ;;  %v3539_v53 = vunpack.i.h.bf16 %v3537_v54  ;;  %v3538_v3 = vunpack.i.l.bf16 %v3537_v54  ;;  %v3704_v20 = vld [vmem:[%s5328_s7 + $0x38] sm:$0xff]  }
 0x3f7   :  { %v2393_v44 = vpack.c.bf16 %v2134_v55, %v2133_v31  ;;  %v5227_v7 = vpop.permute.xlu0 %3551  ;;  %v5280_v31 = vld [vmem:[%s5330_s8] ss:$0 sm:$0xff] }
 0x3f8   :  { %v2219_v63 = vsel %vm5601_vm13, %v3534_v33, %v3539_v53  ;;  %v2218_v9 = vsel %vm5602_vm10, %v3533_v26, %v3538_v3  ;;  %v3554_v51 = vunpack.i.h.bf16 %v5227_v7  ;;  %v3553_v19 = vunpack.i.l.bf16 %v5227_v7 }
 0x3f9   :  { %v3547_v1 = vpop.permute.xlu1 %3546  ;;  %3441 = vmatmul.mubr.bf16.vlgmr.msra.gmra.mrb[40].mxu1 %v2393_v44 }
 0x3fa   :  { %v3549_v42 = vunpack.i.h.bf16 %v3547_v1  ;;  %v3548_v11 = vunpack.i.l.bf16 %v3547_v1  ;;  %3465 = vmatpush3.bf16.msra.mxu1 %v5160_v46 }
 0x3fb   :  { %v3557_v22 = vpop.permute.xlu0 %3556  ;;  %3466 = vmatprep.subr.bf16.mxu1 %v3697_v10 }
 0x3fc   :  { %v2160_v34 = vsel %vm1867_vm11, %v3544_v56, %v3549_v42  ;;  %v2159_v47 = vsel %vm1867_vm11, %v3543_v37, %v3548_v11  ;;  %v3559_v60 = vunpack.i.h.bf16 %v3557_v22  ;;  %v3558_v16 = vunpack.i.l.bf16 %v3557_v22 }
 0x3fd   :  { %v3562_v57 = vpop.permute.xlu1 %3561  ;;  %v2163_v52 = vsel %vm2130_vm6, %v2159_v47, %v3548_v11  ;;  %v2164_v61 = vsel %vm2130_vm6, %v2160_v34, %v3549_v42 }
 0x3fe   :  { %v3564_v8 = vunpack.i.h.bf16 %v3562_v57  ;;  %v3563_v58 = vunpack.i.l.bf16 %v3562_v57  ;;  %3467 = vmatpush3.bf16.msra.mxu1 %v3697_v10  ;;  %v2555_v46 = vpack.c.bf16 %v2164_v61, %v2163_v52  ;;  %v2222_v12 = vsel %vm1867_vm11, %v2218_v9, %v3558_v16 }
 0x3ff   :  { %v2155_v25 = vpop.permute.xlu0 %2154  ;;  %3468 = vmatprep.subr.bf16.mxu1 %v3699_v23  ;;  %v2223_v28 = vsel %vm1867_vm11, %v2219_v63, %v3559_v60 }
 0x400   :  { %v2161_v50 = vsel %vm1867_vm11, %v3563_v58, %v2155_v25  ;;  %v2162_v48 = vsel %vm1867_vm11, %v3564_v8, %v5080_v59  ;;  %3460 = vmatprep.mubr.bf16.mxu0 %v2555_v46 }
 0x401   :  { %v2165_v30 = vsel %vm2130_vm6, %v2161_v50, %v2155_v25  ;;  %v2166_v0 = vsel %vm2130_vm6, %v2162_v48, %v5080_v59  ;;  %v3567_v6 = vpop.permute.xlu1 %3566 }
 0x402   :  { %v2556_v35 = vpack.c.bf16 %v2166_v0, %v2165_v30  ;;  %3469 = vmatpush3.bf16.msra.mxu1 %v3699_v23  ;;  %v3569_v5 = vunpack.i.h.bf16 %v3567_v6  ;;  %v3568_v2 = vunpack.i.l.bf16 %v3567_v6 }
 0x403   :  { %v3577_v4 = vpop.permute.xlu0 %3576  ;;  %3470 = vmatprep.subr.bf16.mxu1 %v3700_v62 }
 0x404   :  { %v3579_v13 = vunpack.i.h.bf16 %v3577_v4  ;;  %v3578_v59 = vunpack.i.l.bf16 %v3577_v4  ;;  %3461 = vmatmul.mubr.bf16.vlgmr.msra.gmra.mrb[40].mxu0 %v2556_v35 }
 0x405   :  { %v3572_v49 = vpop.permute.xlu1 %3571 }
 0x406   :  { %3471 = vmatpush3.bf16.msra.mxu1 %v3700_v62  ;;  %v2226_v41 = vsel %vm2130_vm6, %v2222_v12, %v3578_v59  ;;  %v2227_v32 = vsel %vm2130_vm6, %v2223_v28, %v3579_v13  ;;  %v3574_v40 = vunpack.i.h.bf16 %v3572_v49  ;;  %v3573_v27 = vunpack.i.l.bf16 %v3572_v49 }
 0x407   :  { %3472 = vmatprep.subr.bf16.mxu1 %v3701_v29  ;;  %v2718_v18 = vpack.c.bf16 %v2227_v32, %v2226_v41 }
 0x408   :  { %v2221_v17 = vsel %vm5603_vm12, %v3554_v51, %v3574_v40  ;;  %v2220_v43 = vsel %vm5604_vm0, %v3553_v19, %v3573_v27 }
 0x409   :  { %3480 = vmatprep.mubr.bf16.mxu1 %v2718_v18  ;;  %v3582_v14 = vpop.permute.xlu1 %3581  ;;  %v2224_v38 = vsel %vm1867_vm11, %v2220_v43, %v3568_v2  ;;  %v2225_v36 = vsel %vm1867_vm11, %v2221_v17, %v3569_v5 }
 0x40a   :  { %3473 = vmatpush3.bf16.msra.mxu1 %v3701_v29  ;;  %v3584_v15 = vunpack.i.h.bf16 %v3582_v14  ;;  %v3583_v24 = vunpack.i.l.bf16 %v3582_v14 }
 0x40b   :  { %3474 = vmatprep.subr.bf16.mxu1 %v3702_v39 }
 0x40c   :  { %v2228_v21 = vsel %vm2130_vm6, %v2224_v38, %v3583_v24  ;;  %v2229_v54 = vsel %vm2130_vm6, %v2225_v36, %v3584_v15 }
 0x40d   :  { %v2719_v55 = vpack.c.bf16 %v2229_v54, %v2228_v21 }
 0x40e   :  { %3475 = vmatpush3.bf16.msra.mxu1 %v3702_v39 }
 0x40f   :  { %3476 = vmatprep.subr.bf16.mxu1 %v3703_v45 }
 0x412   :  { %3477 = vmatpush3.bf16.msra.mxu1 %v3703_v45 }
 0x413   :  { %3478 = vmatprep.subr.bf16.mxu1 %v3704_v20 }
 0x416   :  { %3479 = vmatpush3.bf16.msra.mxu1 %v3704_v20 }
 0x419   :  { %3481 = vmatmul.mubr.bf16.vlgmr.msra.gmra.mrb[44].mxu1 %v2719_v55 }
 0x44c   :  { %v3422_v44 = vpop.f32.mrb[36].mxu0 }
 0x44d   :  { %v2346_v7 = vadd.f32 %v3422_v44, %v5280_v31  ;;  %v2337_v10 = vpop.f32.mrb[37].mxu0 }
 0x44e   :  { %v2338_v1 = vadd.f32 %v5280_v31, %v2337_v10  ;;  %v3423_v56 = vpop.f32.mrb[38].mxu0 }
 0x44f   :  { %v2354_v37 = vsub.f32 0.0, %v2346_v7  ;;  %v2349_v42 = vadd.f32 %v3423_v56, %v5280_v31  ;;  %v2340_v11 = vpop.f32.mrb[39].mxu0 }
 0x450   :  { %v2352_v22 = vsub.f32 0.0, %v2338_v1  ;;  %v2341_v23 = vadd.f32 %v5280_v31, %v2340_v11 }
 0x451   :  { %v2360_v34 = vmul.f32 1.442695, %v2354_v37  ;;  %v2355_v47 = vsub.f32 0.0, %v2349_v42 }
 0x452   :  { %v2356_v57 = vmul.f32 1.442695, %v2352_v22  ;;  %v2353_v52 = vsub.f32 0.0, %v2341_v23 }
 0x453   :  { %3705 = vpow2.f32 %v2360_v34  ;;  %v2362_v61 = vmul.f32 1.442695, %v2355_v47 }
 0x454   :  { %3707 = vpow2.f32 %v2356_v57  ;;  %v2358_v8 = vmul.f32 1.442695, %v2353_v52 }
 0x455   :  { %3709 = vpow2.f32 %v2362_v61 }
 0x456   :  { %3711 = vpow2.f32 %v2358_v8 }
 0x45d   :  { %v3706_v58 = vpop.eup %3705 }
 0x45e   :  { %v3708_v25 = vpop.eup %3707  ;;  %v2366_v46 = vadd.f32 1.0, %v3706_v58 }
 0x45f   :  { %v3710_v62 = vpop.eup %3709  ;;  %v2364_v53 = vadd.f32 1.0, %v3708_v25 }
 0x460   :  { %v3712_v3 = vpop.eup %3711  ;;  %3713 = vrcp.f32 %v2366_v46  ;;  %v2367_v50 = vadd.f32 1.0, %v3710_v62 }
 0x461   :  { %3715 = vrcp.f32 %v2364_v53  ;;  %v2365_v48 = vadd.f32 1.0, %v3712_v3 }
 0x462   :  { %3717 = vrcp.f32 %v2367_v50 }
 0x463   :  { %3719 = vrcp.f32 %v2365_v48 }
 0x46a   :  { %v3714_v60 = vpop.eup %3713 }
 0x46b   :  { %v3716_v16 = vpop.eup %3715 }
 0x46c   :  { %v3718_v30 = vpop.eup %3717 }
 0x46d   :  { %v3720_v0 = vpop.eup %3719  ;;  %v3155_v6 = vpack.c.bf16 %v3718_v30, %v3714_v60 }
 0x46e   :  { %v3150_v33 = vpack.c.bf16 %v3720_v0, %v3716_v16 }
 0x46f   :  { %3187 = vst [vmem:[%s5331_s9 + $0x8] sm:$0xff] %v3155_v6  }
 0x470   :  { %3151 = vst [vmem:[%s5331_s9] sm:$0xff] %v3150_v33  }
 0x4cc   :  { %v3442_v26 = vpop.f32.mrb[40].mxu1 }
 0x4cd   :  { %v2508_v35 = vadd.f32 %v3442_v26, %v5280_v31  ;;  %v2499_v4 = vpop.f32.mrb[41].mxu1 }
 0x4ce   :  { %v2500_v29 = vadd.f32 %v5280_v31, %v2499_v4  ;;  %v3443_v63 = vpop.f32.mrb[42].mxu1 }
 0x4cf   :  { %v2516_v9 = vsub.f32 0.0, %v2508_v35  ;;  %v2511_v13 = vadd.f32 %v3443_v63, %v5280_v31  ;;  %v2502_v59 = vpop.f32.mrb[43].mxu1 }
 0x4d0   :  { %v2514_v12 = vsub.f32 0.0, %v2500_v29  ;;  %v2503_v28 = vadd.f32 %v5280_v31, %v2502_v59 }
 0x4d1   :  { %v2522_v41 = vmul.f32 1.442695, %v2516_v9  ;;  %v2517_v32 = vsub.f32 0.0, %v2511_v13 }
 0x4d2   :  { %v2518_v49 = vmul.f32 1.442695, %v2514_v12  ;;  %v2515_v18 = vsub.f32 0.0, %v2503_v28 }
 0x4d3   :  { %3721 = vpow2.f32 %v2522_v41  ;;  %v2524_v39 = vmul.f32 1.442695, %v2517_v32 }
 0x4d4   :  { %3723 = vpow2.f32 %v2518_v49  ;;  %v2520_v45 = vmul.f32 1.442695, %v2515_v18 }
 0x4d5   :  { %3725 = vpow2.f32 %v2524_v39 }
 0x4d6   :  { %3727 = vpow2.f32 %v2520_v45 }
 0x4d7   :  { %v3462_v40 = vpop.f32.mrb[40].mxu0 }
 0x4d8   :  { %v2671_v27 = vadd.f32 %v3462_v40, %v5280_v31  ;;  %v2662_v14 = vpop.f32.mrb[41].mxu0 }
 0x4d9   :  { %v2663_v51 = vadd.f32 %v5280_v31, %v2662_v14  ;;  %v3463_v19 = vpop.f32.mrb[42].mxu0 }
 0x4da   :  { %v2679_v20 = vsub.f32 0.0, %v2671_v27  ;;  %v2674_v17 = vadd.f32 %v3463_v19, %v5280_v31  ;;  %v2665_v43 = vpop.f32.mrb[43].mxu0 }
 0x4db   :  { %v2677_v15 = vsub.f32 0.0, %v2663_v51  ;;  %v2666_v24 = vadd.f32 %v5280_v31, %v2665_v43 }
 0x4dc   :  { %v2685_v5 = vmul.f32 1.442695, %v2679_v20  ;;  %v2680_v2 = vsub.f32 0.0, %v2674_v17 }
 0x4dd   :  { %v3722_v38 = vpop.eup %3721  ;;  %v2681_v36 = vmul.f32 1.442695, %v2677_v15  ;;  %v2678_v21 = vsub.f32 0.0, %v2666_v24 }
 0x4de   :  { %v3724_v54 = vpop.eup %3723  ;;  %v2528_v55 = vadd.f32 1.0, %v3722_v38  ;;  %3729 = vpow2.f32 %v2685_v5  ;;  %v2687_v56 = vmul.f32 1.442695, %v2680_v2 }
 0x4df   :  { %v3726_v44 = vpop.eup %3725  ;;  %v2526_v7 = vadd.f32 1.0, %v3724_v54  ;;  %3731 = vpow2.f32 %v2681_v36  ;;  %v2683_v42 = vmul.f32 1.442695, %v2678_v21 }
 0x4e0   :  { %v3728_v10 = vpop.eup %3727  ;;  %3733 = vrcp.f32 %v2528_v55  ;;  %v2529_v1 = vadd.f32 1.0, %v3726_v44 }
 0x4e1   :  { %3735 = vrcp.f32 %v2526_v7  ;;  %v2527_v37 = vadd.f32 1.0, %v3728_v10 }
 0x4e2   :  { %3737 = vrcp.f32 %v2529_v1 }
 0x4e3   :  { %3739 = vrcp.f32 %v2527_v37 }
 0x4e4   :  { %3741 = vpow2.f32 %v2687_v56 }
 0x4e5   :  { %3743 = vpow2.f32 %v2683_v42 }
 0x4e8   :  { %v3730_v11 = vpop.eup %3729 }
 0x4e9   :  { %v3732_v22 = vpop.eup %3731  ;;  %v2691_v47 = vadd.f32 1.0, %v3730_v11 }
 0x4ea   :  { %v3734_v23 = vpop.eup %3733  ;;  %v2689_v52 = vadd.f32 1.0, %v3732_v22 }
 0x4eb   :  { %v3736_v34 = vpop.eup %3735  ;;  %3745 = vrcp.f32 %v2691_v47 }
 0x4ec   :  { %v3738_v57 = vpop.eup %3737  ;;  %v3482_v61 = vpop.f32.mrb[44].mxu1  ;;  %3747 = vrcp.f32 %v2689_v52 }
 0x4ed   :  { %v3740_v8 = vpop.eup %3739  ;;  %v3165_v58 = vpack.c.bf16 %v3738_v57, %v3734_v23  ;;  %v2834_v25 = vadd.f32 %v3482_v61, %v5280_v31  ;;  %v2825_v46 = vpop.f32.mrb[45].mxu1 }
 0x4ee   :  { %v3742_v62 = vpop.eup %3741  ;;  %v3160_v53 = vpack.c.bf16 %v3740_v8, %v3736_v34  ;;  %v2826_v3 = vadd.f32 %v5280_v31, %v2825_v46  ;;  %v3483_v50 = vpop.f32.mrb[46].mxu1 }
 0x4ef   :  { %v3744_v48 = vpop.eup %3743  ;;  %3189 = vst [vmem:[%s5331_s9 + $0x18] sm:$0xff] %v3165_v58   ;;  %v2692_v60 = vadd.f32 1.0, %v3742_v62  ;;  %v2842_v16 = vsub.f32 0.0, %v2834_v25  ;;  %v2837_v30 = vadd.f32 %v3483_v50, %v5280_v31  ;;  %v2828_v0 = vpop.f32.mrb[47].mxu1 }
 0x4f0   :  { %3188 = vst [vmem:[%s5331_s9 + $0x10] sm:$0xff] %v3160_v53   ;;  %v2690_v6 = vadd.f32 1.0, %v3744_v48  ;;  %v2840_v33 = vsub.f32 0.0, %v2826_v3  ;;  %v2829_v26 = vadd.f32 %v5280_v31, %v2828_v0 }
 0x4f1   :  { %3749 = vrcp.f32 %v2692_v60  ;;  %v2848_v35 = vmul.f32 1.442695, %v2842_v16  ;;  %v2843_v4 = vsub.f32 0.0, %v2837_v30 }
 0x4f2   :  { %3751 = vrcp.f32 %v2690_v6  ;;  %v2844_v29 = vmul.f32 1.442695, %v2840_v33  ;;  %v2841_v63 = vsub.f32 0.0, %v2829_v26 }
 0x4f3   :  { %3753 = vpow2.f32 %v2848_v35  ;;  %v2850_v9 = vmul.f32 1.442695, %v2843_v4 }
 0x4f4   :  { %3755 = vpow2.f32 %v2844_v29  ;;  %v2846_v13 = vmul.f32 1.442695, %v2841_v63 }
 0x4f5   :  { %3757 = vpow2.f32 %v2850_v9  ;;  %v3746_v59 = vpop.eup %3745 }
 0x4f6   :  { %3759 = vpow2.f32 %v2846_v13  ;;  %v3748_v12 = vpop.eup %3747 }
 0x4fb   :  { %v3750_v28 = vpop.eup %3749 }
 0x4fc   :  { %v3752_v41 = vpop.eup %3751  ;;  %v3175_v32 = vpack.c.bf16 %v3750_v28, %v3746_v59 }
 0x4fd   :  { %v3754_v49 = vpop.eup %3753  ;;  %v3170_v18 = vpack.c.bf16 %v3752_v41, %v3748_v12 }
 0x4fe   :  { %v3756_v31 = vpop.eup %3755  ;;  %3191 = vst [vmem:[%s5331_s9 + $0x28] sm:$0xff] %v3175_v32   ;;  %v2854_v39 = vadd.f32 1.0, %v3754_v49 }
 0x4ff   :  { %v3758_v45 = vpop.eup %3757  ;;  %3190 = vst [vmem:[%s5331_s9 + $0x20] sm:$0xff] %v3170_v18   ;;  %v2852_v40 = vadd.f32 1.0, %v3756_v31 }
 0x500   :  { %v3760_v27 = vpop.eup %3759  ;;  %3761 = vrcp.f32 %v2854_v39  ;;  %v2855_v14 = vadd.f32 1.0, %v3758_v45 }
 0x501   :  { %3763 = vrcp.f32 %v2852_v40  ;;  %v2853_v51 = vadd.f32 1.0, %v3760_v27 }
 0x502   :  { %3765 = vrcp.f32 %v2855_v14 }
 0x503   :  { %3767 = vrcp.f32 %v2853_v51 }
 0x50a   :  { %v3762_v19 = vpop.eup %3761 }
 0x50b   :  { %v3764_v20 = vpop.eup %3763 }
 0x50c   :  { %v3766_v17 = vpop.eup %3765 }
 0x50d   :  { %v3768_v43 = vpop.eup %3767  ;;  %v3185_v15 = vpack.c.bf16 %v3766_v17, %v3762_v19 }
 0x50e   :  { %v3180_v24 = vpack.c.bf16 %v3768_v43, %v3764_v20 }
 0x50f   :  { %3193 = vst [vmem:[%s5331_s9 + $0x38] sm:$0xff] %v3185_v15  }
 0x510   :  { %3192 = vst [vmem:[%s5331_s9 + $0x30] sm:$0xff] %v3180_v24  }

</bundles_post_ra>
